<compile_context>
chip_gen: v7x
topology: tpu7x:2x2x1
jax: 0.10.0
libtpu: 0.0.40
codegen_flags: <defaults>
</compile_context>

<pallas_src>
import numpy as np
import jax
import jax.numpy as jnp
from jax import lax
from jax.experimental import pallas as pl
from jax.experimental.pallas import tpu as pltpu


LANE = 128        # TPU lane width
B_TILE_MAX = 64   # max batch rows per grid step (review: raise from 8)


def _round_up(x, m):
    return ((x + m - 1) // m) * m


# ----------------------------- Pallas kernel ---------------------------------

def _make_deepconn_kernel(bt, L, K, KD, KDp, use_roll=True):
    """Factory closing over static batch-tile / review-length / conv-width."""
    T = L - K + 1          # valid conv output positions per review
    N = bt * L             # flattened (batch_tile * words) rows per tower

    def shifted(e, k):
        # rows n -> n+k (rows that spill past a review are masked before pooling)
        if use_roll:
            return pltpu.roll(e, shift=N - k, axis=0)        # XLU sublane rotation
        return jnp.concatenate([e[k:, :], jnp.zeros((k, e.shape[1]), e.dtype)], axis=0)

    def kernel(u_tok_ref, i_tok_ref, w2v_ref,
               u_cw_ref, u_cb_ref, u_fw_ref, u_fb_ref,
               i_cw_ref, i_cb_ref, i_fw_ref, i_fb_ref,
               vs_ref, vs2_ref, lw_ref,
               bias_ref, out_ref):
        w2v = w2v_ref[...]                                    # [Vp, D] bf16, resident
        Vp, D = w2v.shape

        # ---- fused embedding gather for BOTH towers: one [2N, Vp] @ [Vp, D] MXU pass ----
        tok = jnp.concatenate([u_tok_ref[...], i_tok_ref[...]], axis=0)     # [2N, 1] int32
        iota = lax.broadcasted_iota(jnp.int32, (2 * N, Vp), 1)
        onehot = jnp.where(tok == iota, 1.0, 0.0).astype(jnp.bfloat16)
        emb = jnp.dot(onehot, w2v, preferred_element_type=jnp.float32)      # [2N, D] f32
        u_emb = emb[:N]
        i_emb = emb[N:]

        def tower(e, cw_ref, cb_ref, fw_ref, fb_ref):
            # --- im2col via sublane rolls; lane-pad the contraction to KDp ---------------
            parts = [e] + [shifted(e, k) for k in range(1, K)]
            if KDp > KD:
                parts.append(jnp.zeros((N, KDp - KD), jnp.float32))
            xc = jnp.concatenate(parts, axis=-1).astype(jnp.bfloat16)       # [N, KDp]
            # --- single conv matmul (bf16 in, f32 accumulate) ----------------------------
            conv = jnp.dot(xc, cw_ref[...], preferred_element_type=jnp.float32)
            conv = jnp.maximum(conv + cb_ref[...], 0.0)                      # bias + ReLU
            cp = conv.shape[-1]
            conv3 = conv.reshape(bt, L, cp)
            # Mask window positions that spill past the review (t >= T).  ReLU output is
            # >= 0 so masking to 0 preserves the max exactly (do NOT reorder / remove).
            valid = lax.broadcasted_iota(jnp.int32, (bt, L, cp), 1) < T
            pooled = jnp.max(jnp.where(valid, conv3, 0.0), axis=1)           # [bt, Cp]
            # --- per-tower Linear: bf16 operands, f32 accumulation -----------------------
            feat = jnp.dot(pooled.astype(jnp.bfloat16), fw_ref[...],
                           preferred_element_type=jnp.float32) + fb_ref[...]
            return feat                                                      # [bt, Lp] f32

        u = tower(u_emb, u_cw_ref, u_cb_ref, u_fw_ref, u_fb_ref)
        it = tower(i_emb, i_cw_ref, i_cb_ref, i_fw_ref, i_fb_ref)

        # ----------------- Factorization Machine (TorchFM) ---------------------------
        # user/item halves lane-concatenated -> one 256-wide contraction per matmul,
        # FM rank kept at its real (small) value.
        z = jnp.concatenate([u, it], axis=-1)                                # [bt, 2*Lp] f32
        zb = z.astype(jnp.bfloat16)
        z2b = (z * z).astype(jnp.bfloat16)
        zv = jnp.dot(zb, vs_ref[...], preferred_element_type=jnp.float32)    # [bt, F]
        z2v2 = jnp.dot(z2b, vs2_ref[...], preferred_element_type=jnp.float32)
        inter = 0.5 * (jnp.sum(zv * zv, axis=-1, keepdims=True)
                       - jnp.sum(z2v2, axis=-1, keepdims=True))              # [bt, 1]
        # FM linear term as a VPU row-sum (avoids an N=1 matmul).
        lin = jnp.sum(z * lw_ref[...], axis=-1, keepdims=True)

        rating = bias_ref[0, 0] + inter + lin                                # [bt, 1]
        # Lane-dense output slab: broadcast the rating across all 128 lanes (unmasked vst).
        out_ref[...] = jnp.broadcast_to(rating, out_ref.shape)

    return kernel


# ------------------------------ JAX wrapper -----------------------------------

def _padded_block_bytes(r, c, dtype):
    return _round_up(max(r, 1), 8) * _round_up(max(c, 1), LANE) * jnp.dtype(dtype).itemsize


def _derive_vmem_limit(block_bytes):
    """Scoped-VMEM request from actual block/weight footprints (+headroom)."""
    try:
        phys = int(pltpu.get_tpu_info().vmem_capacity_bytes)
    except Exception:
        phys = 128 * 1024 * 1024
    want = 2 * int(block_bytes) + (16 << 20)      # 2x for compiler temporaries + headroom
    return int(max(32 << 20, min(want, (phys * 3) // 4)))


def deepconn_forward(params, data):
    # data mirrors the PyTorch tuple: (_, _, _, user_reviews, item_reviews, user_id, item_id)
    _, _, _, user_reviews, item_reviews, user_id, item_id = data
    final_shape = user_id.shape
    B = int(np.prod(user_id.shape))
    user_reviews = user_reviews.reshape(B, -1)
    item_reviews = item_reviews.reshape(B, -1)
    L = user_reviews.shape[1]

    w2v = params['word2vec']
    V, D = w2v.shape
    K, _, C = params['u_conv_w'].shape
    LAT = params['u_fc_w'].shape[1]
    KFM = params['fm_v'].shape[1]

    Vp = _round_up(V, LANE)          # lane-dense one-hot contraction
    Cp = _round_up(C, LANE)          # lane-pad conv channels
    Lp = _round_up(LAT, LANE)        # lane-pad latent
    KD = K * D
    KDp = _round_up(KD, LANE)        # lane-pad conv contraction

    # Adaptive batch tile: up to 64 rows per step (bt*L=1024 -> full 256-wide MXU passes),
    # but no bigger than needed for small B.  Large B gives G >= 2 parallel steps (megacore).
    bt = min(B_TILE_MAX, _round_up(max(B, 1), 8))
    Bp = _round_up(max(B, 1), bt)
    G = Bp // bt
    N = bt * L

    f32, bf16 = jnp.float32, jnp.bfloat16

    def pad2(a, r, c, dt):
        a = jnp.asarray(a, f32)
        return jnp.pad(a, ((0, r - a.shape[0]), (0, c - a.shape[1]))).astype(dt)

    # Zero-padding is exact: padded vocab rows / channels / latents stay 0 through
    # gather / ReLU / max / fc / FM.
    w2v_p = pad2(w2v, Vp, D, bf16)
    u_cw = pad2(params['u_conv_w'].reshape(KD, C), KDp, Cp, bf16)
    i_cw = pad2(params['i_conv_w'].reshape(KD, C), KDp, Cp, bf16)
    u_cb = pad2(params['u_conv_b'], 1, Cp, f32)
    i_cb = pad2(params['i_conv_b'], 1, Cp, f32)
    u_fw = pad2(params['u_fc_w'], Cp, Lp, bf16)
    i_fw = pad2(params['i_fc_w'], Cp, Lp, bf16)
    u_fb = pad2(params['u_fc_b'], 1, Lp, f32)
    i_fb = pad2(params['i_fc_b'], 1, Lp, f32)

    # FM factors: stack user/item halves along the contraction (2*Lp), keep rank = KFM.
    fm_v = jnp.asarray(params['fm_v'], f32)
    vs_f32 = jnp.concatenate([pad2(fm_v[:LAT], Lp, KFM, f32),
                              pad2(fm_v[LAT:], Lp, KFM, f32)], axis=0)       # [2*Lp, KFM]
    vs = vs_f32.astype(bf16)
    vs2 = (vs_f32 * vs_f32).astype(bf16)
    lw = jnp.asarray(params['fm_lin_w'], f32)                                # [2*LAT, 1]
    lws = jnp.concatenate([pad2(lw[:LAT].T, 1, Lp, f32),
                           pad2(lw[LAT:].T, 1, Lp, f32)], axis=-1)           # [1, 2*Lp]
    bias = (jnp.asarray(params['global_bias'], f32).reshape(1, 1)
            + jnp.asarray(params['fm_lin_b'], f32).reshape(1, 1))            # SMEM scalar

    # Token ids as a flattened (Bp*L, 1) int32 column: the one-hot gather needs word index
    # on sublanes anyway, so a lane-dense (bt, L) block would need an in-kernel lane->sublane
    # relayout.  Padded batch rows use token id 0 (a real vocab row) and are sliced off.
    def tok_prep(r):
        r = jnp.asarray(r, jnp.int32)
        r = jnp.pad(r, ((0, Bp - B), (0, 0)))
        return r.reshape(Bp * L, 1)

    u_tok = tok_prep(user_reviews)
    i_tok = tok_prep(item_reviews)

    tok_spec = pl.BlockSpec((N, 1), lambda b: (b, 0))
    out_spec = pl.BlockSpec((bt, LANE), lambda b: (b, 0))

    # Derive the scoped-VMEM request from actual footprints (review item).
    weight_blocks = [
        (Vp, D, bf16),
        (KDp, Cp, bf16), (1, Cp, f32), (Cp, Lp, bf16), (1, Lp, f32),
        (KDp, Cp, bf16), (1, Cp, f32), (Cp, Lp, bf16), (1, Lp, f32),
        (2 * Lp, KFM, bf16), (2 * Lp, KFM, bf16), (1, 2 * Lp, f32),
    ]
    stream_blocks = [(N, 1, jnp.int32), (N, 1, jnp.int32), (bt, LANE, f32)]
    inter_bytes = (2 * N * Vp * 2 + 2 * N * LANE * 4            # one-hot + gathered emb
                   + 2 * (N * KDp * 2 + N * Cp * 4))            # xc + conv, per tower
    block_bytes = (sum(_padded_block_bytes(r, c, d) for r, c, d in weight_blocks)
                   + 2 * sum(_padded_block_bytes(r, c, d) for r, c, d in stream_blocks)
                   + inter_bytes)
    vmem_limit = _derive_vmem_limit(block_bytes)

    def run(single_buffer_weights, use_roll):
        def resident(shape):
            # Resident weights: constant index_map; request single-buffering so they do not
            # pay the default 2x VMEM of the pipeline (decisive on v7x once the vocab grows).
            if single_buffer_weights and hasattr(pl, "Buffered"):
                return pl.BlockSpec(shape, lambda b: (0, 0), pipeline_mode=pl.Buffered(1))
            return pl.BlockSpec(shape, lambda b: (0, 0))

        in_specs = [
            tok_spec, tok_spec,
            resident((Vp, D)),
            resident((KDp, Cp)), resident((1, Cp)), resident((Cp, Lp)), resident((1, Lp)),
            resident((KDp, Cp)), resident((1, Cp)), resident((Cp, Lp)), resident((1, Lp)),
            resident((2 * Lp, KFM)), resident((2 * Lp, KFM)), resident((1, 2 * Lp)),
            pl.BlockSpec(memory_space=pltpu.MemorySpace.SMEM),   # scalar bias
        ]
        kernel = _make_deepconn_kernel(bt, L, K, KD, KDp, use_roll=use_roll)
        return pl.pallas_call(
            kernel,
            out_shape=jax.ShapeDtypeStruct((Bp, LANE), jnp.float32),
            grid=(G,),
            in_specs=in_specs,
            out_specs=out_spec,
            compiler_params=pltpu.CompilerParams(
                dimension_semantics=("parallel",),    # shards batch tiles across TCs on v7x
                vmem_limit_bytes=vmem_limit),
        )(u_tok, i_tok, w2v_p,
          u_cw, u_cb, u_fw, u_fb,
          i_cw, i_cb, i_fw, i_fb,
          vs, vs2, lws, bias)

    try:
        out = run(single_buffer_weights=True, use_roll=True)
    except Exception:
        # Graceful fallback to the previously validated configuration if pl.Buffered(1)
        # or pltpu.roll is unsupported on this jax/libtpu combination.
        out = run(single_buffer_weights=False, use_roll=False)

    return out[:B, 0].reshape(final_shape)


# ------------------------- pure-JAX reference (check) --------------------------

def deepconn_reference(params, data):
    _, _, _, user_reviews, item_reviews, user_id, item_id = data
    B = int(np.prod(user_id.shape))
    u_emb = jnp.take(params['word2vec'], user_reviews.reshape(B, -1), axis=0)
    i_emb = jnp.take(params['word2vec'], item_reviews.reshape(B, -1), axis=0)

    def tower(x, cw, cb, fw, fb):
        K = cw.shape[0]
        T = x.shape[1] - K + 1
        conv = sum(jnp.einsum('btd,dc->btc', x[:, k:k + T, :], cw[k]) for k in range(K))
        conv = jnp.maximum(conv + cb, 0.0)
        pooled = jnp.max(conv, axis=1)
        return pooled @ fw + fb

    u = tower(u_emb, params['u_conv_w'], params['u_conv_b'], params['u_fc_w'], params['u_fc_b'])
    it = tower(i_emb, params['i_conv_w'], params['i_conv_b'], params['i_fc_w'], params['i_fc_b'])
    z = jnp.concatenate([u, it], axis=-1)
    v = params['fm_v']
    inter = 0.5 * (jnp.sum((z @ v) ** 2, -1) - jnp.sum((z * z) @ (v * v), -1))
    lin = (z @ params['fm_lin_w'])[:, 0] + params['fm_lin_b'][0, 0]
    return (params['global_bias'][0, 0] + inter + lin).reshape(user_id.shape)


# ---------------------------------- main ---------------------------------------

if __name__ == "__main__":
    # Small, forward-consistent hyper-params.
    B = 2            # batch
    L = 16           # words per review
    D = 32           # word embedding size
    C = 32           # conv out channels
    LATENT = 32      # latent_size
    K = 3            # conv kernel width (over words)
    KFM = 8          # FM rank
    VOCAB = 50

    key = jax.random.PRNGKey(0)
    ks = jax.random.split(key, 16)

    params = {
        'word2vec':   jax.random.normal(ks[0], (VOCAB, D), jnp.float32) * 0.1,
        'u_conv_w':   jax.random.normal(ks[1], (K, D, C), jnp.float32) * 0.05,
        'u_conv_b':   jax.random.normal(ks[2], (1, C), jnp.float32) * 0.05,
        'u_fc_w':     jax.random.normal(ks[3], (C, LATENT), jnp.float32) * 0.05,
        'u_fc_b':     jax.random.normal(ks[4], (1, LATENT), jnp.float32) * 0.05,
        'i_conv_w':   jax.random.normal(ks[5], (K, D, C), jnp.float32) * 0.05,
        'i_conv_b':   jax.random.normal(ks[6], (1, C), jnp.float32) * 0.05,
        'i_fc_w':     jax.random.normal(ks[7], (C, LATENT), jnp.float32) * 0.05,
        'i_fc_b':     jax.random.normal(ks[8], (1, LATENT), jnp.float32) * 0.05,
        'fm_v':       jax.random.normal(ks[9], (2 * LATENT, KFM), jnp.float32) * 0.05,
        'fm_lin_w':   jax.random.normal(ks[10], (2 * LATENT, 1), jnp.float32) * 0.05,
        'fm_lin_b':   jnp.zeros((1, 1), jnp.float32),
        'global_bias': jnp.full((1, 1), 4.0, jnp.float32),
    }

    user_reviews = jax.random.randint(ks[11], (B, L), 0, VOCAB, dtype=jnp.int32)
    item_reviews = jax.random.randint(ks[12], (B, L), 0, VOCAB, dtype=jnp.int32)
    user_id = jax.random.randint(ks[13], (B,), 0, 10, dtype=jnp.int32)
    item_id = jax.random.randint(ks[14], (B,), 0, 10, dtype=jnp.int32)
    data = (None, None, None, user_reviews, item_reviews, user_id, item_id)

    rating = jax.block_until_ready(deepconn_forward(params, data))
    ref = jax.block_until_ready(deepconn_reference(params, data))

    # bf16 MXU inputs vs f32 reference -> loose-ish but meaningful tolerance.
    np.testing.assert_allclose(np.asarray(rating), np.asarray(ref), rtol=1e-2, atol=1e-2)

    print("KERNEL_OK")
</pallas_src>

<mosaic_0001>
module attributes {stable_mosaic.version = 11 : i64} {
  func.func @kernel(%arg0: i32, %arg1: memref<128x1xi32, #tpu.memory_space<vmem>>, %arg2: memref<128x1xi32, #tpu.memory_space<vmem>>, %arg3: memref<128x32xbf16, #tpu.memory_space<vmem>>, %arg4: memref<128x128xbf16, #tpu.memory_space<vmem>>, %arg5: memref<1x128xf32, #tpu.memory_space<vmem>>, %arg6: memref<128x128xbf16, #tpu.memory_space<vmem>>, %arg7: memref<1x128xf32, #tpu.memory_space<vmem>>, %arg8: memref<128x128xbf16, #tpu.memory_space<vmem>>, %arg9: memref<1x128xf32, #tpu.memory_space<vmem>>, %arg10: memref<128x128xbf16, #tpu.memory_space<vmem>>, %arg11: memref<1x128xf32, #tpu.memory_space<vmem>>, %arg12: memref<256x8xbf16, #tpu.memory_space<vmem>>, %arg13: memref<256x8xbf16, #tpu.memory_space<vmem>>, %arg14: memref<1x256xf32, #tpu.memory_space<vmem>>, %arg15: memref<1x1xf32, #tpu.memory_space<smem>>, %arg16: memref<8x128xf32, #tpu.memory_space<vmem>>) attributes {dimension_semantics = [#tpu.dimension_semantics<parallel>], iteration_bounds = array<i64: 1>, scalar_prefetch = 0 : i64, scratch_operands = 0 : i64, tpu.core_type = #tpu.core_type<tc>, window_params = [{transform_indices = @transform_0, window_bounds = array<i64: 128, 1>}, {transform_indices = @transform_1, window_bounds = array<i64: 128, 1>}, {pipeline_mode = #tpu.pipeline_mode<synchronous>, transform_indices = @transform_2, window_bounds = array<i64: 128, 32>}, {pipeline_mode = #tpu.pipeline_mode<synchronous>, transform_indices = @transform_3, window_bounds = array<i64: 128, 128>}, {pipeline_mode = #tpu.pipeline_mode<synchronous>, transform_indices = @transform_4, window_bounds = array<i64: 1, 128>}, {pipeline_mode = #tpu.pipeline_mode<synchronous>, transform_indices = @transform_5, window_bounds = array<i64: 128, 128>}, {pipeline_mode = #tpu.pipeline_mode<synchronous>, transform_indices = @transform_6, window_bounds = array<i64: 1, 128>}, {pipeline_mode = #tpu.pipeline_mode<synchronous>, transform_indices = @transform_7, window_bounds = array<i64: 128, 128>}, {pipeline_mode = #tpu.pipeline_mode<synchronous>, transform_indices = @transform_8, window_bounds = array<i64: 1, 128>}, {pipeline_mode = #tpu.pipeline_mode<synchronous>, transform_indices = @transform_9, window_bounds = array<i64: 128, 128>}, {pipeline_mode = #tpu.pipeline_mode<synchronous>, transform_indices = @transform_10, window_bounds = array<i64: 1, 128>}, {pipeline_mode = #tpu.pipeline_mode<synchronous>, transform_indices = @transform_11, window_bounds = array<i64: 256, 8>}, {pipeline_mode = #tpu.pipeline_mode<synchronous>, transform_indices = @transform_12, window_bounds = array<i64: 256, 8>}, {pipeline_mode = #tpu.pipeline_mode<synchronous>, transform_indices = @transform_13, window_bounds = array<i64: 1, 256>}, {transform_indices = @transform_14, window_bounds = array<i64: 1, 1>}, {transform_indices = @transform_15, window_bounds = array<i64: 8, 128>}]} {
    %c0 = arith.constant 0 : index
    %c0_0 = arith.constant 0 : index
    %0 = vector.load %arg3[%c0, %c0_0] : memref<128x32xbf16, #tpu.memory_space<vmem>>, vector<128x32xbf16>
    %c0_1 = arith.constant 0 : index
    %c0_2 = arith.constant 0 : index
    %1 = vector.load %arg1[%c0_1, %c0_2] : memref<128x1xi32, #tpu.memory_space<vmem>>, vector<128x1xi32>
    %c0_3 = arith.constant 0 : index
    %c0_4 = arith.constant 0 : index
    %2 = vector.load %arg2[%c0_3, %c0_4] : memref<128x1xi32, #tpu.memory_space<vmem>>, vector<128x1xi32>
    %3 = tpu.concatenate %1, %2 in 0 : vector<128x1xi32>, vector<128x1xi32> -> vector<256x1xi32>
    %4 = tpu.iota {dimensions = array<i32: 1>} : vector<256x128xi32>
    %5 = vector.broadcast %3 : vector<256x1xi32> to vector<256x128xi32>
    %6 = arith.cmpi eq, %5, %4 : vector<256x128xi32>
    %cst = arith.constant 1.000000e+00 : f32
    %cst_5 = arith.constant 0.000000e+00 : f32
    %7 = vector.broadcast %cst : f32 to vector<256x128xf32>
    %8 = vector.broadcast %cst_5 : f32 to vector<256x128xf32>
    %9 = arith.select %6, %7, %8 : vector<256x128xi1>, vector<256x128xf32>
    %10 = arith.truncf %9 : vector<256x128xf32> to vector<256x128xbf16>
    %cst_6 = arith.constant dense<0.000000e+00> : vector<256x32xf32>
    %11 = tpu.matmul %10, %0, %cst_6 {dimension_numbers = #tpu.dot_dimension_numbers<[1], [0], [0], [1], [0, 0, 1, 1], [], []>} : vector<256x128xbf16>, vector<128x32xbf16>, vector<256x32xf32> -> vector<256x32xf32>
    %12 = vector.extract_strided_slice %11 {offsets = [0, 0], sizes = [128, 32], strides = [1, 1]} : vector<256x32xf32> to vector<128x32xf32>
    %13 = vector.extract_strided_slice %11 {offsets = [128, 0], sizes = [128, 32], strides = [1, 1]} : vector<256x32xf32> to vector<128x32xf32>
    %c127_i32 = arith.constant 127 : i32
    %14 = tpu.dynamic_rotate %12 by %c127_i32 dim 0 : vector<128x32xf32>, i32 -> vector<128x32xf32>
    %c126_i32 = arith.constant 126 : i32
    %15 = tpu.dynamic_rotate %12 by %c126_i32 dim 0 : vector<128x32xf32>, i32 -> vector<128x32xf32>
    %cst_7 = arith.constant 0.000000e+00 : f32
    %16 = vector.broadcast %cst_7 : f32 to vector<128x32xf32>
    %17 = tpu.concatenate %12, %14, %15, %16 in 1 : vector<128x32xf32>, vector<128x32xf32>, vector<128x32xf32>, vector<128x32xf32> -> vector<128x128xf32>
    %18 = arith.truncf %17 : vector<128x128xf32> to vector<128x128xbf16>
    %c0_8 = arith.constant 0 : index
    %c0_9 = arith.constant 0 : index
    %19 = vector.load %arg4[%c0_8, %c0_9] : memref<128x128xbf16, #tpu.memory_space<vmem>>, vector<128x128xbf16>
    %cst_10 = arith.constant dense<0.000000e+00> : vector<128x128xf32>
    %20 = tpu.matmul %18, %19, %cst_10 {dimension_numbers = #tpu.dot_dimension_numbers<[1], [0], [0], [1], [0, 0, 1, 1], [], []>} : vector<128x128xbf16>, vector<128x128xbf16>, vector<128x128xf32> -> vector<128x128xf32>
    %c0_11 = arith.constant 0 : index
    %c0_12 = arith.constant 0 : index
    %21 = vector.load %arg5[%c0_11, %c0_12] : memref<1x128xf32, #tpu.memory_space<vmem>>, vector<1x128xf32>
    %22 = vector.broadcast %21 : vector<1x128xf32> to vector<128x128xf32>
    %23 = arith.addf %20, %22 : vector<128x128xf32>
    %cst_13 = arith.constant 0.000000e+00 : f32
    %24 = vector.broadcast %cst_13 : f32 to vector<128x128xf32>
    %25 = arith.maximumf %23, %24 : vector<128x128xf32>
    %26 = vector.shape_cast %25 : vector<128x128xf32> to vector<8x16x128xf32>
    %27 = tpu.iota {dimensions = array<i32: 1>} : vector<8x16x128xi32>
    %c14_i32 = arith.constant 14 : i32
    %28 = vector.broadcast %c14_i32 : i32 to vector<8x16x128xi32>
    %29 = arith.cmpi slt, %27, %28 : vector<8x16x128xi32>
    %cst_14 = arith.constant 0.000000e+00 : f32
    %30 = vector.broadcast %cst_14 : f32 to vector<8x16x128xf32>
    %31 = arith.select %29, %26, %30 : vector<8x16x128xi1>, vector<8x16x128xf32>
    %cst_15 = arith.constant dense<0xFF800000> : vector<8x128xf32>
    %32 = vector.multi_reduction <maximumf>, %31, %cst_15 [1] : vector<8x16x128xf32> to vector<8x128xf32>
    %33 = arith.truncf %32 : vector<8x128xf32> to vector<8x128xbf16>
    %c0_16 = arith.constant 0 : index
    %c0_17 = arith.constant 0 : index
    %34 = vector.load %arg6[%c0_16, %c0_17] : memref<128x128xbf16, #tpu.memory_space<vmem>>, vector<128x128xbf16>
    %cst_18 = arith.constant dense<0.000000e+00> : vector<8x128xf32>
    %35 = tpu.matmul %33, %34, %cst_18 {dimension_numbers = #tpu.dot_dimension_numbers<[1], [0], [0], [1], [0, 0, 1, 1], [], []>} : vector<8x128xbf16>, vector<128x128xbf16>, vector<8x128xf32> -> vector<8x128xf32>
    %c0_19 = arith.constant 0 : index
    %c0_20 = arith.constant 0 : index
    %36 = vector.load %arg7[%c0_19, %c0_20] : memref<1x128xf32, #tpu.memory_space<vmem>>, vector<1x128xf32>
    %37 = vector.broadcast %36 : vector<1x128xf32> to vector<8x128xf32>
    %38 = arith.addf %35, %37 : vector<8x128xf32>
    %c127_i32_21 = arith.constant 127 : i32
    %39 = tpu.dynamic_rotate %13 by %c127_i32_21 dim 0 : vector<128x32xf32>, i32 -> vector<128x32xf32>
    %c126_i32_22 = arith.constant 126 : i32
    %40 = tpu.dynamic_rotate %13 by %c126_i32_22 dim 0 : vector<128x32xf32>, i32 -> vector<128x32xf32>
    %cst_23 = arith.constant 0.000000e+00 : f32
    %41 = vector.broadcast %cst_23 : f32 to vector<128x32xf32>
    %42 = tpu.concatenate %13, %39, %40, %41 in 1 : vector<128x32xf32>, vector<128x32xf32>, vector<128x32xf32>, vector<128x32xf32> -> vector<128x128xf32>
    %43 = arith.truncf %42 : vector<128x128xf32> to vector<128x128xbf16>
    %c0_24 = arith.constant 0 : index
    %c0_25 = arith.constant 0 : index
    %44 = vector.load %arg8[%c0_24, %c0_25] : memref<128x128xbf16, #tpu.memory_space<vmem>>, vector<128x128xbf16>
    %cst_26 = arith.constant dense<0.000000e+00> : vector<128x128xf32>
    %45 = tpu.matmul %43, %44, %cst_26 {dimension_numbers = #tpu.dot_dimension_numbers<[1], [0], [0], [1], [0, 0, 1, 1], [], []>} : vector<128x128xbf16>, vector<128x128xbf16>, vector<128x128xf32> -> vector<128x128xf32>
    %c0_27 = arith.constant 0 : index
    %c0_28 = arith.constant 0 : index
    %46 = vector.load %arg9[%c0_27, %c0_28] : memref<1x128xf32, #tpu.memory_space<vmem>>, vector<1x128xf32>
    %47 = vector.broadcast %46 : vector<1x128xf32> to vector<128x128xf32>
    %48 = arith.addf %45, %47 : vector<128x128xf32>
    %cst_29 = arith.constant 0.000000e+00 : f32
    %49 = vector.broadcast %cst_29 : f32 to vector<128x128xf32>
    %50 = arith.maximumf %48, %49 : vector<128x128xf32>
    %51 = vector.shape_cast %50 : vector<128x128xf32> to vector<8x16x128xf32>
    %52 = tpu.iota {dimensions = array<i32: 1>} : vector<8x16x128xi32>
    %c14_i32_30 = arith.constant 14 : i32
    %53 = vector.broadcast %c14_i32_30 : i32 to vector<8x16x128xi32>
    %54 = arith.cmpi slt, %52, %53 : vector<8x16x128xi32>
    %cst_31 = arith.constant 0.000000e+00 : f32
    %55 = vector.broadcast %cst_31 : f32 to vector<8x16x128xf32>
    %56 = arith.select %54, %51, %55 : vector<8x16x128xi1>, vector<8x16x128xf32>
    %cst_32 = arith.constant dense<0xFF800000> : vector<8x128xf32>
    %57 = vector.multi_reduction <maximumf>, %56, %cst_32 [1] : vector<8x16x128xf32> to vector<8x128xf32>
    %58 = arith.truncf %57 : vector<8x128xf32> to vector<8x128xbf16>
    %c0_33 = arith.constant 0 : index
    %c0_34 = arith.constant 0 : index
    %59 = vector.load %arg10[%c0_33, %c0_34] : memref<128x128xbf16, #tpu.memory_space<vmem>>, vector<128x128xbf16>
    %cst_35 = arith.constant dense<0.000000e+00> : vector<8x128xf32>
    %60 = tpu.matmul %58, %59, %cst_35 {dimension_numbers = #tpu.dot_dimension_numbers<[1], [0], [0], [1], [0, 0, 1, 1], [], []>} : vector<8x128xbf16>, vector<128x128xbf16>, vector<8x128xf32> -> vector<8x128xf32>
    %c0_36 = arith.constant 0 : index
    %c0_37 = arith.constant 0 : index
    %61 = vector.load %arg11[%c0_36, %c0_37] : memref<1x128xf32, #tpu.memory_space<vmem>>, vector<1x128xf32>
    %62 = vector.broadcast %61 : vector<1x128xf32> to vector<8x128xf32>
    %63 = arith.addf %60, %62 : vector<8x128xf32>
    %64 = tpu.concatenate %38, %63 in 1 : vector<8x128xf32>, vector<8x128xf32> -> vector<8x256xf32>
    %65 = arith.truncf %64 : vector<8x256xf32> to vector<8x256xbf16>
    %66 = arith.mulf %64, %64 : vector<8x256xf32>
    %67 = arith.truncf %66 : vector<8x256xf32> to vector<8x256xbf16>
    %c0_38 = arith.constant 0 : index
    %c0_39 = arith.constant 0 : index
    %68 = vector.load %arg12[%c0_38, %c0_39] : memref<256x8xbf16, #tpu.memory_space<vmem>>, vector<256x8xbf16>
    %cst_40 = arith.constant dense<0.000000e+00> : vector<8x8xf32>
    %69 = tpu.matmul %65, %68, %cst_40 {dimension_numbers = #tpu.dot_dimension_numbers<[1], [0], [0], [1], [0, 0, 1, 1], [], []>} : vector<8x256xbf16>, vector<256x8xbf16>, vector<8x8xf32> -> vector<8x8xf32>
    %c0_41 = arith.constant 0 : index
    %c0_42 = arith.constant 0 : index
    %70 = vector.load %arg13[%c0_41, %c0_42] : memref<256x8xbf16, #tpu.memory_space<vmem>>, vector<256x8xbf16>
    %cst_43 = arith.constant dense<0.000000e+00> : vector<8x8xf32>
    %71 = tpu.matmul %67, %70, %cst_43 {dimension_numbers = #tpu.dot_dimension_numbers<[1], [0], [0], [1], [0, 0, 1, 1], [], []>} : vector<8x256xbf16>, vector<256x8xbf16>, vector<8x8xf32> -> vector<8x8xf32>
    %72 = arith.mulf %69, %69 : vector<8x8xf32>
    %cst_44 = arith.constant dense<0.000000e+00> : vector<8xf32>
    %73 = vector.multi_reduction <add>, %72, %cst_44 [1] : vector<8x8xf32> to vector<8xf32>
    %74 = vector.shape_cast %73 : vector<8xf32> to vector<8x1xf32>
    %cst_45 = arith.constant dense<0.000000e+00> : vector<8xf32>
    %75 = vector.multi_reduction <add>, %71, %cst_45 [1] : vector<8x8xf32> to vector<8xf32>
    %76 = vector.shape_cast %75 : vector<8xf32> to vector<8x1xf32>
    %77 = arith.subf %74, %76 : vector<8x1xf32>
    %cst_46 = arith.constant 5.000000e-01 : f32
    %78 = vector.broadcast %cst_46 : f32 to vector<8x1xf32>
    %79 = arith.mulf %78, %77 : vector<8x1xf32>
    %c0_47 = arith.constant 0 : index
    %c0_48 = arith.constant 0 : index
    %80 = vector.load %arg14[%c0_47, %c0_48] : memref<1x256xf32, #tpu.memory_space<vmem>>, vector<1x256xf32>
    %81 = vector.broadcast %80 : vector<1x256xf32> to vector<8x256xf32>
    %82 = arith.mulf %64, %81 : vector<8x256xf32>
    %cst_49 = arith.constant dense<0.000000e+00> : vector<8xf32>
    %83 = vector.multi_reduction <add>, %82, %cst_49 [1] : vector<8x256xf32> to vector<8xf32>
    %84 = vector.shape_cast %83 : vector<8xf32> to vector<8x1xf32>
    %c0_50 = arith.constant 0 : index
    %c0_51 = arith.constant 0 : index
    %85 = memref.load %arg15[%c0_50, %c0_51] : memref<1x1xf32, #tpu.memory_space<smem>>
    %86 = vector.broadcast %85 : f32 to vector<8x1xf32>
    %87 = arith.addf %86, %79 : vector<8x1xf32>
    %88 = arith.addf %87, %84 : vector<8x1xf32>
    %89 = vector.shape_cast %88 : vector<8x1xf32> to vector<8x1xf32>
    %90 = vector.broadcast %89 : vector<8x1xf32> to vector<8x128xf32>
    %c0_52 = arith.constant 0 : index
    %c0_53 = arith.constant 0 : index
    %91 = vector.load %arg16[%c0_52, %c0_53] : memref<8x128xf32, #tpu.memory_space<vmem>>, vector<8x128xf32>
    tpu.vector_store %arg16[%c0_52, %c0_53], %90 {strides = array<i32>} : memref<8x128xf32, #tpu.memory_space<vmem>>, vector<8x128xf32>,
    return
  }
  func.func @transform_0(%arg0: i32) -> (i32, i32) {
    %c0_i32 = arith.constant 0 : i32
    %c0_i32_0 = arith.constant 0 : i32
    return %arg0, %c0_i32 : i32, i32
  }
  func.func @transform_1(%arg0: i32) -> (i32, i32) {
    %c0_i32 = arith.constant 0 : i32
    %c0_i32_0 = arith.constant 0 : i32
    return %arg0, %c0_i32 : i32, i32
  }
  func.func @transform_2(%arg0: i32) -> (i32, i32) {
    %c0_i32 = arith.constant 0 : i32
    %c0_i32_0 = arith.constant 0 : i32
    %c0_i32_1 = arith.constant 0 : i32
    return %c0_i32, %c0_i32_0 : i32, i32
  }
  func.func @transform_3(%arg0: i32) -> (i32, i32) {
    %c0_i32 = arith.constant 0 : i32
    %c0_i32_0 = arith.constant 0 : i32
    %c0_i32_1 = arith.constant 0 : i32
    return %c0_i32, %c0_i32_0 : i32, i32
  }
  func.func @transform_4(%arg0: i32) -> (i32, i32) {
    %c0_i32 = arith.constant 0 : i32
    %c0_i32_0 = arith.constant 0 : i32
    %c0_i32_1 = arith.constant 0 : i32
    return %c0_i32, %c0_i32_0 : i32, i32
  }
  func.func @transform_5(%arg0: i32) -> (i32, i32) {
    %c0_i32 = arith.constant 0 : i32
    %c0_i32_0 = arith.constant 0 : i32
    %c0_i32_1 = arith.constant 0 : i32
    return %c0_i32, %c0_i32_0 : i32, i32
  }
  func.func @transform_6(%arg0: i32) -> (i32, i32) {
    %c0_i32 = arith.constant 0 : i32
    %c0_i32_0 = arith.constant 0 : i32
    %c0_i32_1 = arith.constant 0 : i32
    return %c0_i32, %c0_i32_0 : i32, i32
  }
  func.func @transform_7(%arg0: i32) -> (i32, i32) {
    %c0_i32 = arith.constant 0 : i32
    %c0_i32_0 = arith.constant 0 : i32
    %c0_i32_1 = arith.constant 0 : i32
    return %c0_i32, %c0_i32_0 : i32, i32
  }
  func.func @transform_8(%arg0: i32) -> (i32, i32) {
    %c0_i32 = arith.constant 0 : i32
    %c0_i32_0 = arith.constant 0 : i32
    %c0_i32_1 = arith.constant 0 : i32
    return %c0_i32, %c0_i32_0 : i32, i32
  }
  func.func @transform_9(%arg0: i32) -> (i32, i32) {
    %c0_i32 = arith.constant 0 : i32
    %c0_i32_0 = arith.constant 0 : i32
    %c0_i32_1 = arith.constant 0 : i32
    return %c0_i32, %c0_i32_0 : i32, i32
  }
  func.func @transform_10(%arg0: i32) -> (i32, i32) {
    %c0_i32 = arith.constant 0 : i32
    %c0_i32_0 = arith.constant 0 : i32
    %c0_i32_1 = arith.constant 0 : i32
    return %c0_i32, %c0_i32_0 : i32, i32
  }
  func.func @transform_11(%arg0: i32) -> (i32, i32) {
    %c0_i32 = arith.constant 0 : i32
    %c0_i32_0 = arith.constant 0 : i32
    %c0_i32_1 = arith.constant 0 : i32
    return %c0_i32, %c0_i32_0 : i32, i32
  }
  func.func @transform_12(%arg0: i32) -> (i32, i32) {
    %c0_i32 = arith.constant 0 : i32
    %c0_i32_0 = arith.constant 0 : i32
    %c0_i32_1 = arith.constant 0 : i32
    return %c0_i32, %c0_i32_0 : i32, i32
  }
  func.func @transform_13(%arg0: i32) -> (i32, i32) {
    %c0_i32 = arith.constant 0 : i32
    %c0_i32_0 = arith.constant 0 : i32
    %c0_i32_1 = arith.constant 0 : i32
    return %c0_i32, %c0_i32_0 : i32, i32
  }
  func.func @transform_14(%arg0: i32) -> (i32, i32) {
    %c0_i32 = arith.constant 0 : i32
    %c0_i32_0 = arith.constant 0 : i32
    %c0_i32_1 = arith.constant 0 : i32
    return %c0_i32, %c0_i32_0 : i32, i32
  }
  func.func @transform_15(%arg0: i32) -> (i32, i32) {
    %c0_i32 = arith.constant 0 : i32
    %c0_i32_0 = arith.constant 0 : i32
    return %arg0, %c0_i32 : i32, i32
  }
}

module attributes {stable_mosaic.version = 11 : i64} {
  func.func @kernel(%arg0: i32, %arg1: memref<128x1xi32, #tpu.memory_space<vmem>>, %arg2: memref<128x1xi32, #tpu.memory_space<vmem>>, %arg3: memref<128x32xbf16, #tpu.memory_space<vmem>>, %arg4: memref<128x128xbf16, #tpu.memory_space<vmem>>, %arg5: memref<1x128xf32, #tpu.memory_space<vmem>>, %arg6: memref<128x128xbf16, #tpu.memory_space<vmem>>, %arg7: memref<1x128xf32, #tpu.memory_space<vmem>>, %arg8: memref<128x128xbf16, #tpu.memory_space<vmem>>, %arg9: memref<1x128xf32, #tpu.memory_space<vmem>>, %arg10: memref<128x128xbf16, #tpu.memory_space<vmem>>, %arg11: memref<1x128xf32, #tpu.memory_space<vmem>>, %arg12: memref<256x8xbf16, #tpu.memory_space<vmem>>, %arg13: memref<256x8xbf16, #tpu.memory_space<vmem>>, %arg14: memref<1x256xf32, #tpu.memory_space<vmem>>, %arg15: memref<1x1xf32, #tpu.memory_space<smem>>, %arg16: memref<8x128xf32, #tpu.memory_space<vmem>>) attributes {dimension_semantics = [#tpu.dimension_semantics<parallel>], iteration_bounds = array<i64: 1>, scalar_prefetch = 0 : i64, scratch_operands = 0 : i64, tpu.core_type = #tpu.core_type<tc>, window_params = [{transform_indices = @transform_0, window_bounds = array<i64: 128, 1>}, {transform_indices = @transform_1, window_bounds = array<i64: 128, 1>}, {pipeline_mode = #tpu.pipeline_mode<synchronous>, transform_indices = @transform_2, window_bounds = array<i64: 128, 32>}, {pipeline_mode = #tpu.pipeline_mode<synchronous>, transform_indices = @transform_3, window_bounds = array<i64: 128, 128>}, {pipeline_mode = #tpu.pipeline_mode<synchronous>, transform_indices = @transform_4, window_bounds = array<i64: 1, 128>}, {pipeline_mode = #tpu.pipeline_mode<synchronous>, transform_indices = @transform_5, window_bounds = array<i64: 128, 128>}, {pipeline_mode = #tpu.pipeline_mode<synchronous>, transform_indices = @transform_6, window_bounds = array<i64: 1, 128>}, {pipeline_mode = #tpu.pipeline_mode<synchronous>, transform_indices = @transform_7, window_bounds = array<i64: 128, 128>}, {pipeline_mode = #tpu.pipeline_mode<synchronous>, transform_indices = @transform_8, window_bounds = array<i64: 1, 128>}, {pipeline_mode = #tpu.pipeline_mode<synchronous>, transform_indices = @transform_9, window_bounds = array<i64: 128, 128>}, {pipeline_mode = #tpu.pipeline_mode<synchronous>, transform_indices = @transform_10, window_bounds = array<i64: 1, 128>}, {pipeline_mode = #tpu.pipeline_mode<synchronous>, transform_indices = @transform_11, window_bounds = array<i64: 256, 8>}, {pipeline_mode = #tpu.pipeline_mode<synchronous>, transform_indices = @transform_12, window_bounds = array<i64: 256, 8>}, {pipeline_mode = #tpu.pipeline_mode<synchronous>, transform_indices = @transform_13, window_bounds = array<i64: 1, 256>}, {transform_indices = @transform_14, window_bounds = array<i64: 1, 1>}, {transform_indices = @transform_15, window_bounds = array<i64: 8, 128>}]} {
    %c0 = arith.constant 0 : index
    %c0_0 = arith.constant 0 : index
    %0 = vector.load %arg3[%c0, %c0_0] : memref<128x32xbf16, #tpu.memory_space<vmem>>, vector<128x32xbf16>
    %c0_1 = arith.constant 0 : index
    %c0_2 = arith.constant 0 : index
    %1 = vector.load %arg1[%c0_1, %c0_2] : memref<128x1xi32, #tpu.memory_space<vmem>>, vector<128x1xi32>
    %c0_3 = arith.constant 0 : index
    %c0_4 = arith.constant 0 : index
    %2 = vector.load %arg2[%c0_3, %c0_4] : memref<128x1xi32, #tpu.memory_space<vmem>>, vector<128x1xi32>
    %3 = tpu.concatenate %1, %2 in 0 : vector<128x1xi32>, vector<128x1xi32> -> vector<256x1xi32>
    %4 = tpu.iota {dimensions = array<i32: 1>} : vector<256x128xi32>
    %5 = vector.broadcast %3 : vector<256x1xi32> to vector<256x128xi32>
    %6 = arith.cmpi eq, %5, %4 : vector<256x128xi32>
    %cst = arith.constant 1.000000e+00 : f32
    %cst_5 = arith.constant 0.000000e+00 : f32
    %7 = vector.broadcast %cst : f32 to vector<256x128xf32>
    %8 = vector.broadcast %cst_5 : f32 to vector<256x128xf32>
    %9 = arith.select %6, %7, %8 : vector<256x128xi1>, vector<256x128xf32>
    %10 = arith.truncf %9 : vector<256x128xf32> to vector<256x128xbf16>
    %cst_6 = arith.constant dense<0.000000e+00> : vector<256x32xf32>
    %11 = tpu.matmul %10, %0, %cst_6 {dimension_numbers = #tpu.dot_dimension_numbers<[1], [0], [0], [1], [0, 0, 1, 1], [], []>} : vector<256x128xbf16>, vector<128x32xbf16>, vector<256x32xf32> -> vector<256x32xf32>
    %12 = vector.extract_strided_slice %11 {offsets = [0, 0], sizes = [128, 32], strides = [1, 1]} : vector<256x32xf32> to vector<128x32xf32>
    %13 = vector.extract_strided_slice %11 {offsets = [128, 0], sizes = [128, 32], strides = [1, 1]} : vector<256x32xf32> to vector<128x32xf32>
    %14 = vector.extract_strided_slice %12 {offsets = [1, 0], sizes = [127, 32], strides = [1, 1]} : vector<128x32xf32> to vector<127x32xf32>
    %cst_7 = arith.constant 0.000000e+00 : f32
    %15 = vector.broadcast %cst_7 : f32 to vector<1x32xf32>
    %16 = tpu.concatenate %14, %15 in 0 : vector<127x32xf32>, vector<1x32xf32> -> vector<128x32xf32>
    %17 = vector.extract_strided_slice %12 {offsets = [2, 0], sizes = [126, 32], strides = [1, 1]} : vector<128x32xf32> to vector<126x32xf32>
    %cst_8 = arith.constant 0.000000e+00 : f32
    %18 = vector.broadcast %cst_8 : f32 to vector<2x32xf32>
    %19 = tpu.concatenate %17, %18 in 0 : vector<126x32xf32>, vector<2x32xf32> -> vector<128x32xf32>
    %cst_9 = arith.constant 0.000000e+00 : f32
    %20 = vector.broadcast %cst_9 : f32 to vector<128x32xf32>
    %21 = tpu.concatenate %12, %16, %19, %20 in 1 : vector<128x32xf32>, vector<128x32xf32>, vector<128x32xf32>, vector<128x32xf32> -> vector<128x128xf32>
    %22 = arith.truncf %21 : vector<128x128xf32> to vector<128x128xbf16>
    %c0_10 = arith.constant 0 : index
    %c0_11 = arith.constant 0 : index
    %23 = vector.load %arg4[%c0_10, %c0_11] : memref<128x128xbf16, #tpu.memory_space<vmem>>, vector<128x128xbf16>
    %cst_12 = arith.constant dense<0.000000e+00> : vector<128x128xf32>
    %24 = tpu.matmul %22, %23, %cst_12 {dimension_numbers = #tpu.dot_dimension_numbers<[1], [0], [0], [1], [0, 0, 1, 1], [], []>} : vector<128x128xbf16>, vector<128x128xbf16>, vector<128x128xf32> -> vector<128x128xf32>
    %c0_13 = arith.constant 0 : index
    %c0_14 = arith.constant 0 : index
    %25 = vector.load %arg5[%c0_13, %c0_14] : memref<1x128xf32, #tpu.memory_space<vmem>>, vector<1x128xf32>
    %26 = vector.broadcast %25 : vector<1x128xf32> to vector<128x128xf32>
    %27 = arith.addf %24, %26 : vector<128x128xf32>
    %cst_15 = arith.constant 0.000000e+00 : f32
    %28 = vector.broadcast %cst_15 : f32 to vector<128x128xf32>
    %29 = arith.maximumf %27, %28 : vector<128x128xf32>
    %30 = vector.shape_cast %29 : vector<128x128xf32> to vector<8x16x128xf32>
    %31 = tpu.iota {dimensions = array<i32: 1>} : vector<8x16x128xi32>
    %c14_i32 = arith.constant 14 : i32
    %32 = vector.broadcast %c14_i32 : i32 to vector<8x16x128xi32>
    %33 = arith.cmpi slt, %31, %32 : vector<8x16x128xi32>
    %cst_16 = arith.constant 0.000000e+00 : f32
    %34 = vector.broadcast %cst_16 : f32 to vector<8x16x128xf32>
    %35 = arith.select %33, %30, %34 : vector<8x16x128xi1>, vector<8x16x128xf32>
    %cst_17 = arith.constant dense<0xFF800000> : vector<8x128xf32>
    %36 = vector.multi_reduction <maximumf>, %35, %cst_17 [1] : vector<8x16x128xf32> to vector<8x128xf32>
    %37 = arith.truncf %36 : vector<8x128xf32> to vector<8x128xbf16>
    %c0_18 = arith.constant 0 : index
    %c0_19 = arith.constant 0 : index
    %38 = vector.load %arg6[%c0_18, %c0_19] : memref<128x128xbf16, #tpu.memory_space<vmem>>, vector<128x128xbf16>
    %cst_20 = arith.constant dense<0.000000e+00> : vector<8x128xf32>
    %39 = tpu.matmul %37, %38, %cst_20 {dimension_numbers = #tpu.dot_dimension_numbers<[1], [0], [0], [1], [0, 0, 1, 1], [], []>} : vector<8x128xbf16>, vector<128x128xbf16>, vector<8x128xf32> -> vector<8x128xf32>
    %c0_21 = arith.constant 0 : index
    %c0_22 = arith.constant 0 : index
    %40 = vector.load %arg7[%c0_21, %c0_22] : memref<1x128xf32, #tpu.memory_space<vmem>>, vector<1x128xf32>
    %41 = vector.broadcast %40 : vector<1x128xf32> to vector<8x128xf32>
    %42 = arith.addf %39, %41 : vector<8x128xf32>
    %43 = vector.extract_strided_slice %13 {offsets = [1, 0], sizes = [127, 32], strides = [1, 1]} : vector<128x32xf32> to vector<127x32xf32>
    %cst_23 = arith.constant 0.000000e+00 : f32
    %44 = vector.broadcast %cst_23 : f32 to vector<1x32xf32>
    %45 = tpu.concatenate %43, %44 in 0 : vector<127x32xf32>, vector<1x32xf32> -> vector<128x32xf32>
    %46 = vector.extract_strided_slice %13 {offsets = [2, 0], sizes = [126, 32], strides = [1, 1]} : vector<128x32xf32> to vector<126x32xf32>
    %cst_24 = arith.constant 0.000000e+00 : f32
    %47 = vector.broadcast %cst_24 : f32 to vector<2x32xf32>
    %48 = tpu.concatenate %46, %47 in 0 : vector<126x32xf32>, vector<2x32xf32> -> vector<128x32xf32>
    %cst_25 = arith.constant 0.000000e+00 : f32
    %49 = vector.broadcast %cst_25 : f32 to vector<128x32xf32>
    %50 = tpu.concatenate %13, %45, %48, %49 in 1 : vector<128x32xf32>, vector<128x32xf32>, vector<128x32xf32>, vector<128x32xf32> -> vector<128x128xf32>
    %51 = arith.truncf %50 : vector<128x128xf32> to vector<128x128xbf16>
    %c0_26 = arith.constant 0 : index
    %c0_27 = arith.constant 0 : index
    %52 = vector.load %arg8[%c0_26, %c0_27] : memref<128x128xbf16, #tpu.memory_space<vmem>>, vector<128x128xbf16>
    %cst_28 = arith.constant dense<0.000000e+00> : vector<128x128xf32>
    %53 = tpu.matmul %51, %52, %cst_28 {dimension_numbers = #tpu.dot_dimension_numbers<[1], [0], [0], [1], [0, 0, 1, 1], [], []>} : vector<128x128xbf16>, vector<128x128xbf16>, vector<128x128xf32> -> vector<128x128xf32>
    %c0_29 = arith.constant 0 : index
    %c0_30 = arith.constant 0 : index
    %54 = vector.load %arg9[%c0_29, %c0_30] : memref<1x128xf32, #tpu.memory_space<vmem>>, vector<1x128xf32>
    %55 = vector.broadcast %54 : vector<1x128xf32> to vector<128x128xf32>
    %56 = arith.addf %53, %55 : vector<128x128xf32>
    %cst_31 = arith.constant 0.000000e+00 : f32
    %57 = vector.broadcast %cst_31 : f32 to vector<128x128xf32>
    %58 = arith.maximumf %56, %57 : vector<128x128xf32>
    %59 = vector.shape_cast %58 : vector<128x128xf32> to vector<8x16x128xf32>
    %60 = tpu.iota {dimensions = array<i32: 1>} : vector<8x16x128xi32>
    %c14_i32_32 = arith.constant 14 : i32
    %61 = vector.broadcast %c14_i32_32 : i32 to vector<8x16x128xi32>
    %62 = arith.cmpi slt, %60, %61 : vector<8x16x128xi32>
    %cst_33 = arith.constant 0.000000e+00 : f32
    %63 = vector.broadcast %cst_33 : f32 to vector<8x16x128xf32>
    %64 = arith.select %62, %59, %63 : vector<8x16x128xi1>, vector<8x16x128xf32>
    %cst_34 = arith.constant dense<0xFF800000> : vector<8x128xf32>
    %65 = vector.multi_reduction <maximumf>, %64, %cst_34 [1] : vector<8x16x128xf32> to vector<8x128xf32>
    %66 = arith.truncf %65 : vector<8x128xf32> to vector<8x128xbf16>
    %c0_35 = arith.constant 0 : index
    %c0_36 = arith.constant 0 : index
    %67 = vector.load %arg10[%c0_35, %c0_36] : memref<128x128xbf16, #tpu.memory_space<vmem>>, vector<128x128xbf16>
    %cst_37 = arith.constant dense<0.000000e+00> : vector<8x128xf32>
    %68 = tpu.matmul %66, %67, %cst_37 {dimension_numbers = #tpu.dot_dimension_numbers<[1], [0], [0], [1], [0, 0, 1, 1], [], []>} : vector<8x128xbf16>, vector<128x128xbf16>, vector<8x128xf32> -> vector<8x128xf32>
    %c0_38 = arith.constant 0 : index
    %c0_39 = arith.constant 0 : index
    %69 = vector.load %arg11[%c0_38, %c0_39] : memref<1x128xf32, #tpu.memory_space<vmem>>, vector<1x128xf32>
    %70 = vector.broadcast %69 : vector<1x128xf32> to vector<8x128xf32>
    %71 = arith.addf %68, %70 : vector<8x128xf32>
    %72 = tpu.concatenate %42, %71 in 1 : vector<8x128xf32>, vector<8x128xf32> -> vector<8x256xf32>
    %73 = arith.truncf %72 : vector<8x256xf32> to vector<8x256xbf16>
    %74 = arith.mulf %72, %72 : vector<8x256xf32>
    %75 = arith.truncf %74 : vector<8x256xf32> to vector<8x256xbf16>
    %c0_40 = arith.constant 0 : index
    %c0_41 = arith.constant 0 : index
    %76 = vector.load %arg12[%c0_40, %c0_41] : memref<256x8xbf16, #tpu.memory_space<vmem>>, vector<256x8xbf16>
    %cst_42 = arith.constant dense<0.000000e+00> : vector<8x8xf32>
    %77 = tpu.matmul %73, %76, %cst_42 {dimension_numbers = #tpu.dot_dimension_numbers<[1], [0], [0], [1], [0, 0, 1, 1], [], []>} : vector<8x256xbf16>, vector<256x8xbf16>, vector<8x8xf32> -> vector<8x8xf32>
    %c0_43 = arith.constant 0 : index
    %c0_44 = arith.constant 0 : index
    %78 = vector.load %arg13[%c0_43, %c0_44] : memref<256x8xbf16, #tpu.memory_space<vmem>>, vector<256x8xbf16>
    %cst_45 = arith.constant dense<0.000000e+00> : vector<8x8xf32>
    %79 = tpu.matmul %75, %78, %cst_45 {dimension_numbers = #tpu.dot_dimension_numbers<[1], [0], [0], [1], [0, 0, 1, 1], [], []>} : vector<8x256xbf16>, vector<256x8xbf16>, vector<8x8xf32> -> vector<8x8xf32>
    %80 = arith.mulf %77, %77 : vector<8x8xf32>
    %cst_46 = arith.constant dense<0.000000e+00> : vector<8xf32>
    %81 = vector.multi_reduction <add>, %80, %cst_46 [1] : vector<8x8xf32> to vector<8xf32>
    %82 = vector.shape_cast %81 : vector<8xf32> to vector<8x1xf32>
    %cst_47 = arith.constant dense<0.000000e+00> : vector<8xf32>
    %83 = vector.multi_reduction <add>, %79, %cst_47 [1] : vector<8x8xf32> to vector<8xf32>
    %84 = vector.shape_cast %83 : vector<8xf32> to vector<8x1xf32>
    %85 = arith.subf %82, %84 : vector<8x1xf32>
    %cst_48 = arith.constant 5.000000e-01 : f32
    %86 = vector.broadcast %cst_48 : f32 to vector<8x1xf32>
    %87 = arith.mulf %86, %85 : vector<8x1xf32>
    %c0_49 = arith.constant 0 : index
    %c0_50 = arith.constant 0 : index
    %88 = vector.load %arg14[%c0_49, %c0_50] : memref<1x256xf32, #tpu.memory_space<vmem>>, vector<1x256xf32>
    %89 = vector.broadcast %88 : vector<1x256xf32> to vector<8x256xf32>
    %90 = arith.mulf %72, %89 : vector<8x256xf32>
    %cst_51 = arith.constant dense<0.000000e+00> : vector<8xf32>
    %91 = vector.multi_reduction <add>, %90, %cst_51 [1] : vector<8x256xf32> to vector<8xf32>
    %92 = vector.shape_cast %91 : vector<8xf32> to vector<8x1xf32>
    %c0_52 = arith.constant 0 : index
    %c0_53 = arith.constant 0 : index
    %93 = memref.load %arg15[%c0_52, %c0_53] : memref<1x1xf32, #tpu.memory_space<smem>>
    %94 = vector.broadcast %93 : f32 to vector<8x1xf32>
    %95 = arith.addf %94, %87 : vector<8x1xf32>
    %96 = arith.addf %95, %92 : vector<8x1xf32>
    %97 = vector.shape_cast %96 : vector<8x1xf32> to vector<8x1xf32>
    %98 = vector.broadcast %97 : vector<8x1xf32> to vector<8x128xf32>
    %c0_54 = arith.constant 0 : index
    %c0_55 = arith.constant 0 : index
    %99 = vector.load %arg16[%c0_54, %c0_55] : memref<8x128xf32, #tpu.memory_space<vmem>>, vector<8x128xf32>
    tpu.vector_store %arg16[%c0_54, %c0_55], %98 {strides = array<i32>} : memref<8x128xf32, #tpu.memory_space<vmem>>, vector<8x128xf32>,
    return
  }
  func.func @transform_0(%arg0: i32) -> (i32, i32) {
    %c0_i32 = arith.constant 0 : i32
    %c0_i32_0 = arith.constant 0 : i32
    return %arg0, %c0_i32 : i32, i32
  }
  func.func @transform_1(%arg0: i32) -> (i32, i32) {
    %c0_i32 = arith.constant 0 : i32
    %c0_i32_0 = arith.constant 0 : i32
    return %arg0, %c0_i32 : i32, i32
  }
  func.func @transform_2(%arg0: i32) -> (i32, i32) {
    %c0_i32 = arith.constant 0 : i32
    %c0_i32_0 = arith.constant 0 : i32
    %c0_i32_1 = arith.constant 0 : i32
    return %c0_i32, %c0_i32_0 : i32, i32
  }
  func.func @transform_3(%arg0: i32) -> (i32, i32) {
    %c0_i32 = arith.constant 0 : i32
    %c0_i32_0 = arith.constant 0 : i32
    %c0_i32_1 = arith.constant 0 : i32
    return %c0_i32, %c0_i32_0 : i32, i32
  }
  func.func @transform_4(%arg0: i32) -> (i32, i32) {
    %c0_i32 = arith.constant 0 : i32
    %c0_i32_0 = arith.constant 0 : i32
    %c0_i32_1 = arith.constant 0 : i32
    return %c0_i32, %c0_i32_0 : i32, i32
  }
  func.func @transform_5(%arg0: i32) -> (i32, i32) {
    %c0_i32 = arith.constant 0 : i32
    %c0_i32_0 = arith.constant 0 : i32
    %c0_i32_1 = arith.constant 0 : i32
    return %c0_i32, %c0_i32_0 : i32, i32
  }
  func.func @transform_6(%arg0: i32) -> (i32, i32) {
    %c0_i32 = arith.constant 0 : i32
    %c0_i32_0 = arith.constant 0 : i32
    %c0_i32_1 = arith.constant 0 : i32
    return %c0_i32, %c0_i32_0 : i32, i32
  }
  func.func @transform_7(%arg0: i32) -> (i32, i32) {
    %c0_i32 = arith.constant 0 : i32
    %c0_i32_0 = arith.constant 0 : i32
    %c0_i32_1 = arith.constant 0 : i32
    return %c0_i32, %c0_i32_0 : i32, i32
  }
  func.func @transform_8(%arg0: i32) -> (i32, i32) {
    %c0_i32 = arith.constant 0 : i32
    %c0_i32_0 = arith.constant 0 : i32
    %c0_i32_1 = arith.constant 0 : i32
    return %c0_i32, %c0_i32_0 : i32, i32
  }
  func.func @transform_9(%arg0: i32) -> (i32, i32) {
    %c0_i32 = arith.constant 0 : i32
    %c0_i32_0 = arith.constant 0 : i32
    %c0_i32_1 = arith.constant 0 : i32
    return %c0_i32, %c0_i32_0 : i32, i32
  }
  func.func @transform_10(%arg0: i32) -> (i32, i32) {
    %c0_i32 = arith.constant 0 : i32
    %c0_i32_0 = arith.constant 0 : i32
    %c0_i32_1 = arith.constant 0 : i32
    return %c0_i32, %c0_i32_0 : i32, i32
  }
  func.func @transform_11(%arg0: i32) -> (i32, i32) {
    %c0_i32 = arith.constant 0 : i32
    %c0_i32_0 = arith.constant 0 : i32
    %c0_i32_1 = arith.constant 0 : i32
    return %c0_i32, %c0_i32_0 : i32, i32
  }
  func.func @transform_12(%arg0: i32) -> (i32, i32) {
    %c0_i32 = arith.constant 0 : i32
    %c0_i32_0 = arith.constant 0 : i32
    %c0_i32_1 = arith.constant 0 : i32
    return %c0_i32, %c0_i32_0 : i32, i32
  }
  func.func @transform_13(%arg0: i32) -> (i32, i32) {
    %c0_i32 = arith.constant 0 : i32
    %c0_i32_0 = arith.constant 0 : i32
    %c0_i32_1 = arith.constant 0 : i32
    return %c0_i32, %c0_i32_0 : i32, i32
  }
  func.func @transform_14(%arg0: i32) -> (i32, i32) {
    %c0_i32 = arith.constant 0 : i32
    %c0_i32_0 = arith.constant 0 : i32
    %c0_i32_1 = arith.constant 0 : i32
    return %c0_i32, %c0_i32_0 : i32, i32
  }
  func.func @transform_15(%arg0: i32) -> (i32, i32) {
    %c0_i32 = arith.constant 0 : i32
    %c0_i32_0 = arith.constant 0 : i32
    return %arg0, %c0_i32 : i32, i32
  }
}

</mosaic_0001>

<bundles_post_ra>
// kernel: tpu_custom_call.1
= control target key start
LH: loop header
LB: loop body
LE: loop exit
PB: predicated region body
PF: predicated region fallthrough
CT: control target
= control target key end

     0   :  { %v2880_v2 = vmov 0   ;;  %s3909_s0 = inlined_call_operand.vmem [shape: s32[128,1], index: 0, kind: input, shape index: {}]   ;;  %s3910_s1 = inlined_call_operand.vmem [shape: s32[128,1], index: 1, kind: input, shape index: {}]   ;;  %s3911_s2 = inlined_call_operand.vmem [shape: bf16[128,32], index: 2, kind: input, shape index: {}]   ;;  %s3912_s3 = inlined_call_operand.vmem [shape: bf16[128,128], index: 3, kind: input, shape index: {}]   ;;  %s3913_s4 = inlined_call_operand.vmem [shape: f32[1,128], index: 4, kind: input, shape index: {}]   ;;  %s3914_s5 = inlined_call_operand.vmem [shape: bf16[128,128], index: 5, kind: input, shape index: {}]   ;;  %s3915_s6 = inlined_call_operand.vmem [shape: f32[1,128], index: 6, kind: input, shape index: {}]   ;;  %s3916_s7 = inlined_call_operand.vmem [shape: bf16[128,128], index: 7, kind: input, shape index: {}]   ;;  %s3917_s8 = inlined_call_operand.vmem [shape: f32[1,128], index: 8, kind: input, shape index: {}]   ;;  %s3918_s9 = inlined_call_operand.vmem [shape: bf16[128,128], index: 9, kind: input, shape index: {}]   ;;  %s3919_s10 = inlined_call_operand.vmem [shape: f32[1,128], index: 10, kind: input, shape index: {}]   ;;  %s3920_s11 = inlined_call_operand.vmem [shape: bf16[256,8], index: 11, kind: input, shape index: {}]   ;;  %s3921_s12 = inlined_call_operand.vmem [shape: bf16[256,8], index: 12, kind: input, shape index: {}]   ;;  %s3922_s13 = inlined_call_operand.vmem [shape: f32[1,256], index: 13, kind: input, shape index: {}]   ;;  %s3923_s14 = inlined_call_operand.<no memory space> [shape: f32[1,1], index: 14, kind: input, shape index: {}]   ;;  %s3924_s15 = inlined_call_operand.hbm [shape: f32[8,128], index: 15, kind: output, shape index: {}]  }
   0x1   :  { %v71_v0 = vld [vmem:[%s3909_s0 + $0x10] sm:$0xff]  ;;  %v69_v1 = vld [vmem:[%s3909_s0] sm:$0xff]  ;;  %2623 = vset.pattern.permute.xlu1 %v2880_v2  ;;  %2622 = vset.pattern.permute.xlu0 %v2880_v2  ;;  %v72_v3 = vld [vmem:[%s3909_s0 + $0x18] sm:$0xff] }
   0x2   :  { %110 = vperm.xlu1 %2623, %v71_v0   ;;  %104 = vperm.xlu0 %2622, %v69_v1   ;;  %v70_v4 = vld [vmem:[%s3909_s0 + $0x8] sm:$0xff]  ;;  %v73_v6 = vld [vmem:[%s3909_s0 + $0x20] sm:$0xff]  ;;  %v76_v7 = vld [vmem:[%s3909_s0 + $0x38] sm:$0xff] }
   0x3   :  { %v74_v5 = vld [vmem:[%s3909_s0 + $0x28] sm:$0xff]  ;;  %v75_v8 = vld [vmem:[%s3909_s0 + $0x30] sm:$0xff]  ;;  %v2784_v9 = vld [vmem:[%s3911_s2] sm:$0xff]  }
   0x4   :  { %v2785_v10 = vld [vmem:[%s3911_s2 + $0x8] sm:$0xff]   ;;  %2463 = vmatprep.subr.bf16.mxu0 %v2784_v9  ;;  %v77_v12 = vld [vmem:[%s3909_s0 + $0x40] sm:$0xff]  ;;  %v2786_v13 = vld [vmem:[%s3911_s2 + $0x10] sm:$0xff]  }
   0x5   :  { %v78_v11 = vld [vmem:[%s3909_s0 + $0x48] sm:$0xff]  ;;  %2464 = vmatpush3.bf16.msra.mxu0 %v2784_v9  ;;  %v80_v14 = vld [vmem:[%s3909_s0 + $0x58] sm:$0xff]  ;;  %v79_v15 = vld [vmem:[%s3909_s0 + $0x50] sm:$0xff] }
   0x6   :  { %113 = vperm.xlu1 %2623, %v72_v3   ;;  %107 = vperm.xlu0 %2622, %v70_v4   ;;  %v2787_v16 = vld [vmem:[%s3911_s2 + $0x18] sm:$0xff]   ;;  %v82_v17 = vld [vmem:[%s3909_s0 + $0x68] sm:$0xff]  ;;  %v81_v18 = vld [vmem:[%s3909_s0 + $0x60] sm:$0xff] }
   0x7   :  { %2465 = vmatprep.subr.bf16.mxu0 %v2785_v10  ;;  %v2788_v19 = vld [vmem:[%s3911_s2 + $0x20] sm:$0xff]   ;;  %v84_v20 = vld [vmem:[%s3909_s0 + $0x78] sm:$0xff]  ;;  %v83_v21 = vld [vmem:[%s3909_s0 + $0x70] sm:$0xff] }
   0x8   :  { %v2789_v22 = vld [vmem:[%s3911_s2 + $0x28] sm:$0xff]   ;;  %v85_v24 = vld [vmem:[%s3910_s1] sm:$0xff]  ;;  %v2790_v25 = vld [vmem:[%s3911_s2 + $0x30] sm:$0xff]  }
   0x9   :  { %2466 = vmatpush3.bf16.msra.mxu0 %v2785_v10  ;;  %v86_v23 = vld [vmem:[%s3910_s1 + $0x8] sm:$0xff]  ;;  %v88_v26 = vld [vmem:[%s3910_s1 + $0x18] sm:$0xff]  ;;  %v87_v27 = vld [vmem:[%s3910_s1 + $0x10] sm:$0xff] }
   0xa   :  { %119 = vperm.xlu1 %2623, %v74_v5   ;;  %116 = vperm.xlu0 %2622, %v73_v6   ;;  %v2791_v28 = vld [vmem:[%s3911_s2 + $0x38] sm:$0xff]   ;;  %v90_v29 = vld [vmem:[%s3910_s1 + $0x28] sm:$0xff]  ;;  %v89_v30 = vld [vmem:[%s3910_s1 + $0x20] sm:$0xff] }
   0xb   :  { %2467 = vmatprep.subr.bf16.mxu0 %v2786_v13  ;;  %v92_v31 = vld [vmem:[%s3910_s1 + $0x38] sm:$0xff]  ;;  %v91_v32 = vld [vmem:[%s3910_s1 + $0x30] sm:$0xff]  ;;  %v94_v33 = vld [vmem:[%s3910_s1 + $0x48] sm:$0xff] }
   0xc   :  { %v93_v34 = vld [vmem:[%s3910_s1 + $0x40] sm:$0xff]  ;;  %v96_v35 = vld [vmem:[%s3910_s1 + $0x58] sm:$0xff]  ;;  %v95_v36 = vld [vmem:[%s3910_s1 + $0x50] sm:$0xff] }
   0xd   :  { %2468 = vmatpush3.bf16.msra.mxu0 %v2786_v13  ;;  %v98_v37 = vld [vmem:[%s3910_s1 + $0x68] sm:$0xff]  ;;  %v97_v38 = vld [vmem:[%s3910_s1 + $0x60] sm:$0xff]  ;;  %v100_v39 = vld [vmem:[%s3910_s1 + $0x78] sm:$0xff] }
   0xe   :  { %125 = vperm.xlu1 %2623, %v76_v7   ;;  %122 = vperm.xlu0 %2622, %v75_v8   ;;  %v99_v40 = vld [vmem:[%s3910_s1 + $0x70] sm:$0xff] }
   0xf   :  { %2469 = vmatprep.subr.bf16.mxu0 %v2787_v16 }
  0x11   :  { %2470 = vmatpush3.bf16.msra.mxu0 %v2787_v16 }
  0x12   :  { %131 = vperm.xlu1 %2623, %v78_v11   ;;  %128 = vperm.xlu0 %2622, %v77_v12  }
  0x13   :  { %2471 = vmatprep.subr.bf16.mxu0 %v2788_v19 }
  0x15   :  { %2472 = vmatpush3.bf16.msra.mxu0 %v2788_v19 }
  0x16   :  { %137 = vperm.xlu1 %2623, %v80_v14   ;;  %134 = vperm.xlu0 %2622, %v79_v15  }
  0x17   :  { %2473 = vmatprep.subr.bf16.mxu0 %v2789_v22 }
  0x19   :  { %2474 = vmatpush3.bf16.msra.mxu0 %v2789_v22 }
  0x1a   :  { %143 = vperm.xlu1 %2623, %v82_v17   ;;  %140 = vperm.xlu0 %2622, %v81_v18  }
  0x1b   :  { %2475 = vmatprep.subr.bf16.mxu0 %v2790_v25 }
  0x1d   :  { %2476 = vmatpush3.bf16.msra.mxu0 %v2790_v25 }
  0x1e   :  { %149 = vperm.xlu1 %2623, %v84_v20   ;;  %146 = vperm.xlu0 %2622, %v83_v21  }
  0x1f   :  { %2477 = vmatprep.subr.bf16.mxu0 %v2791_v28 }
  0x21   :  { %2478 = vmatpush3.bf16.msra.mxu0 %v2791_v28 }
  0x22   :  { %155 = vperm.xlu1 %2623, %v86_v23   ;;  %152 = vperm.xlu0 %2622, %v85_v24  }
  0x26   :  { %161 = vperm.xlu1 %2623, %v88_v26   ;;  %158 = vperm.xlu0 %2622, %v87_v27  }
  0x2a   :  { %167 = vperm.xlu1 %2623, %v90_v29   ;;  %164 = vperm.xlu0 %2622, %v89_v30  }
  0x2e   :  { %173 = vperm.xlu1 %2623, %v92_v31   ;;  %170 = vperm.xlu0 %2622, %v91_v32  }
  0x32   :  { %179 = vperm.xlu1 %2623, %v94_v33   ;;  %176 = vperm.xlu0 %2622, %v93_v34  }
  0x36   :  { %185 = vperm.xlu1 %2623, %v96_v35   ;;  %182 = vperm.xlu0 %2622, %v95_v36  }
  0x3a   :  { %191 = vperm.xlu1 %2623, %v98_v37   ;;  %188 = vperm.xlu0 %2622, %v97_v38  }
  0x3b   :  { %21 = vsyncpa [#allocation4], 0  ;;  %v101_v41 = vlaneseq  ;;  %v2881_v47 = vmov 1.0|1.0   ;;  %v2792_v12 = vld [vmem:[%s3916_s7] sm:$0xff]   ;;  %v2794_v14 = vld [vmem:[%s3912_s3 + $0x8] sm:$0xff]  }
  0x3c   :  { %v2793_v13 = vld [vmem:[%s3912_s3] sm:$0xff]   ;;  %v2795_v15 = vld [vmem:[%s3916_s7 + $0x8] sm:$0xff]   ;;  %2563 = vmatprep.subr.bf16.mxu0 %v2792_v12  ;;  %v2796_v16 = vld [vmem:[%s3912_s3 + $0x10] sm:$0xff]   ;;  %s2882_s23 = smov 32   ;;  %s2883_s25 = smov 64  }
  0x3d   :  { %v3088_v44 = vand.u32 127, %v101_v41  ;;  %2511 = vmatprep.subr.bf16.mxu1 %v2793_v13  ;;  %v2798_v17 = vld [vmem:[%s3916_s7 + $0x10] sm:$0xff]   ;;  %v2797_v18 = vld [vmem:[%s3912_s3 + $0x18] sm:$0xff]   ;;  %v2799_v19 = vld [vmem:[%s3912_s3 + $0x20] sm:$0xff]   ;;  %v3166_v21 = vshrl.u32 %v101_v41, 7 }
  0x3e   :  { %197 = vperm.xlu1 %2623, %v100_v39   ;;  %194 = vperm.xlu0 %2622, %v99_v40   ;;  %v2800_v20 = vld [vmem:[%s3912_s3 + $0x28] sm:$0xff]   ;;  %v2801_v34 = vld [vmem:[%s3916_s7 + $0x18] sm:$0xff]   ;;  %v2802_v35 = vld [vmem:[%s3912_s3 + $0x30] sm:$0xff]  }
  0x3f   :  { %2512 = vmatpush3.bf16.msra.mxu1 %v2793_v13 }
  0x40   :  { %2513 = vmatprep.subr.bf16.mxu1 %v2794_v14 }
  0x43   :  { %2514 = vmatpush3.bf16.msra.mxu1 %v2794_v14 }
  0x44   :  { %2515 = vmatprep.subr.bf16.mxu1 %v2796_v16 }
  0x47   :  { %2516 = vmatpush3.bf16.msra.mxu1 %v2796_v16 }
  0x48   :  { %2517 = vmatprep.subr.bf16.mxu1 %v2797_v18 }
  0x4b   :  { %2518 = vmatpush3.bf16.msra.mxu1 %v2797_v18 }
  0x4c   :  { %2519 = vmatprep.subr.bf16.mxu1 %v2799_v19 }
  0x4f   :  { %2520 = vmatpush3.bf16.msra.mxu1 %v2799_v19 }
  0x50   :  { %2521 = vmatprep.subr.bf16.mxu1 %v2800_v20 }
  0x53   :  { %2522 = vmatpush3.bf16.msra.mxu1 %v2800_v20  ;;  %v2805_v20 = vld [vmem:[%s3916_s7 + $0x28] sm:$0xff]  }
  0x54   :  { %2523 = vmatprep.subr.bf16.mxu1 %v2802_v35 }
  0x57   :  { %2524 = vmatpush3.bf16.msra.mxu1 %v2802_v35 }
  0x81   :  { %v111_v42 = vpop.permute.xlu1 %110  ;;  %v105_v43 = vpop.permute.xlu0 %104 }
  0x82   :  { %vm201_vm0 = vcmp.eq.s32.totalorder %v111_v42, %v3088_v44  ;;  %vm199_vm3 = vcmp.eq.s32.totalorder %v105_v43, %v3088_v44 }
  0x85   :  { %v114_v45 = vpop.permute.xlu1 %113  ;;  %v108_v46 = vpop.permute.xlu0 %107 }
  0x86   :  { %vm202_vm1 = vcmp.eq.s32.totalorder %v114_v45, %v3088_v44  ;;  %vm200_vm2 = vcmp.eq.s32.totalorder %v108_v46, %v3088_v44  ;;  %v2803_v45 = vld [vmem:[%s3912_s3 + $0x38] sm:$0xff]  }
  0x87   :  { %vm2199_vm4 = vmpackc.low %vm202_vm1, %vm201_vm0  ;;  %2525 = vmatprep.subr.bf16.mxu1 %v2803_v45 }
  0x88   :  { %vm2197_vm5 = vmpackc.low %vm200_vm2, %vm199_vm3  ;;  %2526 = vmatpush3.bf16.msra.mxu1 %v2803_v45 }
  0x89   :  { %2479 = vmatprep.mubr.msk.bf16.mxu0 %vm2197_vm5, %v2881_v47  ;;  %v120_v48 = vpop.permute.xlu1 %119  ;;  %v117_v49 = vpop.permute.xlu0 %116 }
  0x8a   :  { %vm204_vm6 = vcmp.eq.s32.totalorder %v120_v48, %v3088_v44  ;;  %vm203_vm7 = vcmp.eq.s32.totalorder %v117_v49, %v3088_v44  ;;  %2480 = vmatmul.mubr.msk.bf16.vlgmr.msra.gmra.mrb[0].mxu0 %vm2199_vm4, %v2881_v47 }
  0x8b   :  { %vm2201_vm8 = vmpackc.low %vm204_vm6, %vm203_vm7  ;;  %2564 = vmatpush3.bf16.msra.mxu0 %v2792_v12 }
  0x8c   :  { %2483 = vmatprep.mubr.msk.bf16.mxu0 %vm2201_vm8, %v2881_v47  ;;  %2565 = vmatprep.subr.bf16.mxu0 %v2795_v15 }
  0x8d   :  { %v126_v50 = vpop.permute.xlu1 %125  ;;  %v123_v51 = vpop.permute.xlu0 %122 }
  0x8e   :  { %vm206_vm9 = vcmp.eq.s32.totalorder %v126_v50, %v3088_v44  ;;  %vm205_vm10 = vcmp.eq.s32.totalorder %v123_v51, %v3088_v44 }
  0x8f   :  { %vm2203_vm11 = vmpackc.low %vm206_vm9, %vm205_vm10  ;;  %2566 = vmatpush3.bf16.msra.mxu0 %v2795_v15 }
  0x90   :  { %2567 = vmatprep.subr.bf16.mxu0 %v2798_v17 }
  0x91   :  { %v132_v52 = vpop.permute.xlu1 %131  ;;  %v129_v53 = vpop.permute.xlu0 %128 }
  0x92   :  { %vm208_vm12 = vcmp.eq.s32.totalorder %v132_v52, %v3088_v44  ;;  %vm207_vm13 = vcmp.eq.s32.totalorder %v129_v53, %v3088_v44  ;;  %2484 = vmatmul.mubr.msk.bf16.gmra.mrb[4].mxu0 %vm2203_vm11, %v2881_v47 }
  0x93   :  { %vm2205_vm14 = vmpackc.low %vm208_vm12, %vm207_vm13  ;;  %2568 = vmatpush3.bf16.msra.mxu0 %v2798_v17 }
  0x94   :  { %2487 = vmatprep.mubr.msk.bf16.mxu0 %vm2205_vm14, %v2881_v47  ;;  %2569 = vmatprep.subr.bf16.mxu0 %v2801_v34 }
  0x95   :  { %v138_v54 = vpop.permute.xlu1 %137  ;;  %v135_v55 = vpop.permute.xlu0 %134 }
  0x96   :  { %vm210_vm15 = vcmp.eq.s32.totalorder %v138_v54, %v3088_v44  ;;  %vm209_vm0 = vcmp.eq.s32.totalorder %v135_v55, %v3088_v44 }
  0x97   :  { %vm2207_vm1 = vmpackc.low %vm210_vm15, %vm209_vm0  ;;  %2570 = vmatpush3.bf16.msra.mxu0 %v2801_v34 }
  0x99   :  { %v144_v56 = vpop.permute.xlu1 %143  ;;  %v141_v57 = vpop.permute.xlu0 %140 }
  0x9a   :  { %vm212_vm2 = vcmp.eq.s32.totalorder %v144_v56, %v3088_v44  ;;  %vm211_vm3 = vcmp.eq.s32.totalorder %v141_v57, %v3088_v44  ;;  %2488 = vmatmul.mubr.msk.bf16.gmra.mrb[8].mxu0 %vm2207_vm1, %v2881_v47 }
  0x9b   :  { %vm2209_vm4 = vmpackc.low %vm212_vm2, %vm211_vm3 }
  0x9c   :  { %2491 = vmatprep.mubr.msk.bf16.mxu0 %vm2209_vm4, %v2881_v47 }
  0x9d   :  { %v150_v58 = vpop.permute.xlu1 %149  ;;  %v147_v59 = vpop.permute.xlu0 %146 }
  0x9e   :  { %vm214_vm5 = vcmp.eq.s32.totalorder %v150_v58, %v3088_v44  ;;  %vm213_vm6 = vcmp.eq.s32.totalorder %v147_v59, %v3088_v44  ;;  %v2804_v59 = vld [vmem:[%s3916_s7 + $0x20] sm:$0xff]  }
  0x9f   :  { %vm2211_vm7 = vmpackc.low %vm214_vm5, %vm213_vm6  ;;  %2571 = vmatprep.subr.bf16.mxu0 %v2804_v59 }
  0xa0   :  { %2572 = vmatpush3.bf16.msra.mxu0 %v2804_v59 }
  0xa1   :  { %v156_v60 = vpop.permute.xlu1 %155  ;;  %v153_v61 = vpop.permute.xlu0 %152  ;;  %2573 = vmatprep.subr.bf16.mxu0 %v2805_v20 }
  0xa2   :  { %vm216_vm8 = vcmp.eq.s32.totalorder %v156_v60, %v3088_v44  ;;  %vm215_vm9 = vcmp.eq.s32.totalorder %v153_v61, %v3088_v44  ;;  %2492 = vmatmul.mubr.msk.bf16.gmra.mrb[12].mxu0 %vm2211_vm7, %v2881_v47 }
  0xa3   :  { %vm2213_vm10 = vmpackc.low %vm216_vm8, %vm215_vm9 }
  0xa4   :  { %2495 = vmatprep.mubr.msk.bf16.mxu0 %vm2213_vm10, %v2881_v47  ;;  %2574 = vmatpush3.bf16.msra.mxu0 %v2805_v20 }
  0xa5   :  { %v162_v62 = vpop.permute.xlu1 %161  ;;  %v159_v63 = vpop.permute.xlu0 %158 }
  0xa6   :  { %vm218_vm11 = vcmp.eq.s32.totalorder %v162_v62, %v3088_v44  ;;  %vm217_vm12 = vcmp.eq.s32.totalorder %v159_v63, %v3088_v44 }
  0xa7   :  { %vm2215_vm13 = vmpackc.low %vm218_vm11, %vm217_vm12 }
  0xa9   :  { %v168_v0 = vpop.permute.xlu1 %167  ;;  %v165_v1 = vpop.permute.xlu0 %164 }
  0xaa   :  { %vm220_vm14 = vcmp.eq.s32.totalorder %v168_v0, %v3088_v44  ;;  %vm219_vm15 = vcmp.eq.s32.totalorder %v165_v1, %v3088_v44  ;;  %2496 = vmatmul.mubr.msk.bf16.gmra.mrb[16].mxu0 %vm2215_vm13, %v2881_v47 }
  0xab   :  { %vm2217_vm0 = vmpackc.low %vm220_vm14, %vm219_vm15 }
  0xac   :  { %2499 = vmatprep.mubr.msk.bf16.mxu0 %vm2217_vm0, %v2881_v47  ;;  %vm506_vm0 = vcmp.lt.s32.totalorder %v3166_v21, 7 }
  0xad   :  { %v174_v2 = vpop.permute.xlu1 %173  ;;  %v171_v3 = vpop.permute.xlu0 %170 }
  0xae   :  { %vm222_vm1 = vcmp.eq.s32.totalorder %v174_v2, %v3088_v44  ;;  %vm221_vm2 = vcmp.eq.s32.totalorder %v171_v3, %v3088_v44 }
  0xaf   :  { %vm2219_vm3 = vmpackc.low %vm222_vm1, %vm221_vm2  ;;  %vm539_vm1 = vcmp.lt.s32.totalorder %v3166_v21, 6  ;;  %vm684_vm2 = vcmask 261120  }
  0xb1   :  { %v180_v4 = vpop.permute.xlu1 %179  ;;  %v177_v5 = vpop.permute.xlu0 %176 }
  0xb2   :  { %vm224_vm4 = vcmp.eq.s32.totalorder %v180_v4, %v3088_v44  ;;  %vm223_vm5 = vcmp.eq.s32.totalorder %v177_v5, %v3088_v44  ;;  %2500 = vmatmul.mubr.msk.bf16.gmra.mrb[20].mxu0 %vm2219_vm3, %v2881_v47  ;;  %vm701_vm3 = vcmask 523264  }
  0xb3   :  { %vm2221_vm6 = vmpackc.low %vm224_vm4, %vm223_vm5  ;;  %vm718_vm4 = vcmask 785408  }
  0xb4   :  { %2503 = vmatprep.mubr.msk.bf16.mxu0 %vm2221_vm6, %v2881_v47  ;;  %vm3501_vm5 = vmpackc.low %vm718_vm4, %vm718_vm4  ;;  %vm2885_vm6 = vmmov 0  }
  0xb5   :  { %v186_v6 = vpop.permute.xlu1 %185  ;;  %v183_v7 = vpop.permute.xlu0 %182 }
  0xb6   :  { %vm226_vm7 = vcmp.eq.s32.totalorder %v186_v6, %v3088_v44  ;;  %vm225_vm8 = vcmp.eq.s32.totalorder %v183_v7, %v3088_v44 }
  0xb7   :  { %vm2223_vm9 = vmpackc.low %vm226_vm7, %vm225_vm8  ;;  %vm1049_vm8 = vcmask 1041409  }
  0xb9   :  { %v192_v8 = vpop.permute.xlu1 %191  ;;  %v189_v9 = vpop.permute.xlu0 %188 }
  0xba   :  { %vm228_vm10 = vcmp.eq.s32.totalorder %v192_v8, %v3088_v44  ;;  %vm227_vm11 = vcmp.eq.s32.totalorder %v189_v9, %v3088_v44  ;;  %2504 = vmatmul.mubr.msk.bf16.gmra.mrb[24].mxu0 %vm2223_vm9, %v2881_v47  ;;  %vm1051_vm9 = vcmask 1042434  }
  0xbb   :  { %vm2225_vm12 = vmpackc.low %vm228_vm10, %vm227_vm11  ;;  %vm1053_vm10 = vcmask 1043459   ;;  %vm1055_vm11 = vcmask 1044484  }
  0xbc   :  { %2507 = vmatprep.mubr.msk.bf16.mxu0 %vm2225_vm12, %v2881_v47  ;;  %vm1057_vm12 = vcmask 1045509  }
  0xbd   :  { %v198_v10 = vpop.permute.xlu1 %197  ;;  %v195_v11 = vpop.permute.xlu0 %194 }
  0xbe   :  { %vm230_vm13 = vcmp.eq.s32.totalorder %v198_v10, %v3088_v44  ;;  %vm229_vm14 = vcmp.eq.s32.totalorder %v195_v11, %v3088_v44 }
  0xbf   :  { %vm2227_vm15 = vmpackc.low %vm230_vm13, %vm229_vm14  ;;  %vm1059_vm13 = vcmask 1046534   ;;  %vm1061_vm14 = vcmask 1047559  }
  0xc2   :  { %2508 = vmatmul.mubr.msk.bf16.gmra.mrb[28].mxu0 %vm2227_vm15, %v2881_v47  ;;  %vm2144_vm15 = vcmask 64512  }
 0x15d   :  { %v3168_v22 = vpop.f32.mrb[0].mxu0 }
 0x15e   :  { %v3170_v23 = vpop.f32.mrb[1].mxu0  ;;  %v490_v25 = vrot.slane %v3168_v22, 1  ;;  %v525_v26 = vrot.slane %v3168_v22, 2 }
 0x15f   :  { %v3172_v24 = vpop.f32.mrb[2].mxu0  ;;  %v488_v30 = vrot.slane %v3170_v23, 1  ;;  %v523_v31 = vrot.slane %v3170_v23, 2 }
 0x160   :  { %v491_v27 = vrot.slane %v3172_v24, 1  ;;  %v526_v28 = vrot.slane %v3172_v24, 2  ;;  %v3180_v29 = vpop.f32.mrb[3].mxu0 }
 0x161   :  { %v489_v32 = vrot.slane %v3180_v29, 1  ;;  %v524_v33 = vrot.slane %v3180_v29, 2 }
 0x162   :  { %v519_v36 = vsel %vm506_vm0, %v490_v25, %v491_v27  ;;  %v552_v37 = vsel %vm539_vm1, %v525_v26, %v526_v28 }
 0x163   :  { %v520_v38 = vsel %vm506_vm0, %v489_v32, %v490_v25  ;;  %v521_v39 = vsel %vm506_vm0, %v488_v30, %v489_v32  ;;  %v553_v40 = vsel %vm539_vm1, %v524_v33, %v525_v26  ;;  %v554_v41 = vsel %vm539_vm1, %v523_v31, %v524_v33 }
 0x164   :  { %v2624_v42 = vpack.i.bf16 %v520_v38, %v521_v39  ;;  %v2629_v43 = vpack.i.bf16 %v553_v40, %v554_v41 }
 0x165   :  { %v3208_v44 = vpop.f32.mrb[4].mxu0 }
 0x166   :  { %2625 = vrot.lane.b32.xlu0 %v2624_v42, %s2882_s23  ;;  %v3214_v46 = vpop.f32.mrb[5].mxu0  ;;  %v494_v50 = vrot.slane %v3208_v44, 1  ;;  %v529_v51 = vrot.slane %v3208_v44, 2 }
 0x167   :  { %v492_v47 = vrot.slane %v3214_v46, 1  ;;  %v527_v48 = vrot.slane %v3214_v46, 2  ;;  %v3218_v49 = vpop.f32.mrb[6].mxu0 }
 0x168   :  { %v495_v52 = vrot.slane %v3218_v49, 1  ;;  %v530_v53 = vrot.slane %v3218_v49, 2  ;;  %v3224_v54 = vpop.f32.mrb[7].mxu0 }
 0x169   :  { %v493_v55 = vrot.slane %v3224_v54, 1  ;;  %v528_v56 = vrot.slane %v3224_v54, 2  ;;  %v518_v57 = vsel %vm506_vm0, %v491_v27, %v492_v47  ;;  %v551_v58 = vsel %vm539_vm1, %v526_v28, %v527_v48 }
 0x16a   :  { %2630 = vrot.lane.b32.xlu0 %v2629_v43, %s2883_s25  ;;  %v2634_v60 = vpack.i.bf16 %v518_v57, %v519_v36  ;;  %v2639_v61 = vpack.i.bf16 %v551_v58, %v552_v37  ;;  %v515_v62 = vsel %vm506_vm0, %v494_v50, %v495_v52  ;;  %v548_v63 = vsel %vm539_vm1, %v529_v51, %v530_v53 }
 0x16b   :  { %v516_v0 = vsel %vm506_vm0, %v493_v55, %v494_v50  ;;  %v517_v1 = vsel %vm506_vm0, %v492_v47, %v493_v55  ;;  %v549_v2 = vsel %vm539_vm1, %v528_v56, %v529_v51  ;;  %v550_v3 = vsel %vm539_vm1, %v527_v48, %v528_v56  ;;  %v2806_v56 = vld [vmem:[%s3916_s7 + $0x30] sm:$0xff]  }
 0x16c   :  { %2635 = vrot.lane.b32.xlu1 %v2634_v60, %s2882_s23  ;;  %v2644_v4 = vpack.i.bf16 %v516_v0, %v517_v1  ;;  %v2649_v5 = vpack.i.bf16 %v549_v2, %v550_v3  ;;  %2575 = vmatprep.subr.bf16.mxu0 %v2806_v56 }
 0x16d   :  { %v3249_v6 = vpop.f32.mrb[8].mxu0  ;;  %2576 = vmatpush3.bf16.msra.mxu0 %v2806_v56 }
 0x16e   :  { %2645 = vrot.lane.b32.xlu0 %v2644_v4, %s2882_s23  ;;  %v3252_v7 = vpop.f32.mrb[9].mxu0  ;;  %v498_v11 = vrot.slane %v3249_v6, 1  ;;  %v533_v12 = vrot.slane %v3249_v6, 2 }
 0x16f   :  { %v496_v8 = vrot.slane %v3252_v7, 1  ;;  %v531_v9 = vrot.slane %v3252_v7, 2  ;;  %v3256_v10 = vpop.f32.mrb[10].mxu0 }
 0x170   :  { %v499_v13 = vrot.slane %v3256_v10, 1  ;;  %v534_v14 = vrot.slane %v3256_v10, 2  ;;  %2640 = vrot.lane.b32.xlu1 %v2639_v61, %s2883_s25  ;;  %v3263_v15 = vpop.f32.mrb[11].mxu0 }
 0x171   :  { %v497_v16 = vrot.slane %v3263_v15, 1  ;;  %v532_v17 = vrot.slane %v3263_v15, 2  ;;  %v514_v18 = vsel %vm506_vm0, %v495_v52, %v496_v8  ;;  %v547_v19 = vsel %vm539_vm1, %v530_v53, %v531_v9 }
 0x172   :  { %2650 = vrot.lane.b32.xlu0 %v2649_v5, %s2883_s25  ;;  %v2654_v25 = vpack.i.bf16 %v514_v18, %v515_v62  ;;  %v2659_v26 = vpack.i.bf16 %v547_v19, %v548_v63  ;;  %v511_v27 = vsel %vm506_vm0, %v498_v11, %v499_v13  ;;  %v544_v28 = vsel %vm539_vm1, %v533_v12, %v534_v14 }
 0x173   :  { %v512_v32 = vsel %vm506_vm0, %v497_v16, %v498_v11  ;;  %v513_v33 = vsel %vm506_vm0, %v496_v8, %v497_v16  ;;  %v545_v34 = vsel %vm539_vm1, %v532_v17, %v533_v12  ;;  %v546_v35 = vsel %vm539_vm1, %v531_v9, %v532_v17 }
 0x174   :  { %2655 = vrot.lane.b32.xlu1 %v2654_v25, %s2882_s23  ;;  %v2664_v36 = vpack.i.bf16 %v512_v32, %v513_v33  ;;  %v2669_v37 = vpack.i.bf16 %v545_v34, %v546_v35  ;;  %v2807_v25 = vld [vmem:[%s3916_s7 + $0x38] sm:$0xff]  }
 0x175   :  { %v3288_v38 = vpop.f32.mrb[12].mxu0  ;;  %2577 = vmatprep.subr.bf16.mxu0 %v2807_v25 }
 0x176   :  { %2665 = vrot.lane.b32.xlu0 %v2664_v36, %s2882_s23  ;;  %v3291_v39 = vpop.f32.mrb[13].mxu0  ;;  %v502_v43 = vrot.slane %v3288_v38, 1  ;;  %v537_v45 = vrot.slane %v3288_v38, 2  ;;  %2578 = vmatpush3.bf16.msra.mxu0 %v2807_v25 }
 0x177   :  { %v500_v40 = vrot.slane %v3291_v39, 1  ;;  %v535_v41 = vrot.slane %v3291_v39, 2  ;;  %v3295_v42 = vpop.f32.mrb[14].mxu0 }
 0x178   :  { %v503_v47 = vrot.slane %v3295_v42, 1  ;;  %v538_v48 = vrot.slane %v3295_v42, 2  ;;  %2660 = vrot.lane.b32.xlu1 %v2659_v26, %s2883_s25  ;;  %v3302_v50 = vpop.f32.mrb[15].mxu0 }
 0x179   :  { %v501_v51 = vrot.slane %v3302_v50, 1  ;;  %v536_v52 = vrot.slane %v3302_v50, 2  ;;  %v510_v53 = vsel %vm506_vm0, %v499_v13, %v500_v40  ;;  %v543_v55 = vsel %vm539_vm1, %v534_v14, %v535_v41 }
 0x17a   :  { %2670 = vrot.lane.b32.xlu0 %v2669_v37, %s2883_s25  ;;  %v2674_v57 = vpack.i.bf16 %v510_v53, %v511_v27  ;;  %v2679_v58 = vpack.i.bf16 %v543_v55, %v544_v28  ;;  %v507_v59 = vsel %vm506_vm0, %v502_v43, %v503_v47  ;;  %v522_v60 = vsel %vm506_vm0, %v503_v47, %v488_v30 }
 0x17b   :  { %v508_v61 = vsel %vm506_vm0, %v501_v51, %v502_v43  ;;  %v509_v62 = vsel %vm506_vm0, %v500_v40, %v501_v51  ;;  %v541_v63 = vsel %vm539_vm1, %v536_v52, %v537_v45  ;;  %v542_v0 = vsel %vm539_vm1, %v535_v41, %v536_v52 }
 0x17c   :  { %2675 = vrot.lane.b32.xlu1 %v2674_v57, %s2882_s23  ;;  %v2694_v1 = vpack.i.bf16 %v508_v61, %v509_v62  ;;  %v2699_v2 = vpack.i.bf16 %v541_v63, %v542_v0  ;;  %v2684_v3 = vpack.i.bf16 %v522_v60, %v507_v59  ;;  %v540_v30 = vsel %vm539_vm1, %v537_v45, %v538_v48 }
 0x17d   :  { %v3331_v4 = vpop.f32.mrb[16].mxu0  ;;  %v555_v5 = vsel %vm539_vm1, %v538_v48, %v523_v31 }
 0x17e   :  { %2695 = vrot.lane.b32.xlu0 %v2694_v1, %s2882_s23  ;;  %v3338_v8 = vpop.f32.mrb[17].mxu0  ;;  %v2689_v9 = vpack.i.bf16 %v555_v5, %v540_v30  ;;  %v1155_v12 = vrot.slane %v3331_v4, 1  ;;  %v1187_v13 = vrot.slane %v3331_v4, 2 }
 0x17f   :  { %v3340_v11 = vpop.f32.mrb[18].mxu0  ;;  %v1153_v31 = vrot.slane %v3338_v8, 1  ;;  %v1185_v18 = vrot.slane %v3338_v8, 2 }
 0x180   :  { %v1156_v14 = vrot.slane %v3340_v11, 1  ;;  %v1188_v16 = vrot.slane %v3340_v11, 2  ;;  %2680 = vrot.lane.b32.xlu1 %v2679_v58, %s2883_s25  ;;  %v3347_v17 = vpop.f32.mrb[19].mxu0 }
 0x181   :  { %v1154_v19 = vrot.slane %v3347_v17, 1  ;;  %v1186_v20 = vrot.slane %v3347_v17, 2 }
 0x182   :  { %2700 = vrot.lane.b32.xlu0 %v2699_v2, %s2883_s25  ;;  %v1181_v26 = vsel %vm506_vm0, %v1155_v12, %v1156_v14  ;;  %v1213_v27 = vsel %vm539_vm1, %v1187_v13, %v1188_v16 }
 0x183   :  { %v1182_v28 = vsel %vm506_vm0, %v1154_v19, %v1155_v12  ;;  %v1183_v32 = vsel %vm506_vm0, %v1153_v31, %v1154_v19  ;;  %v1214_v33 = vsel %vm539_vm1, %v1186_v20, %v1187_v13  ;;  %v1215_v34 = vsel %vm539_vm1, %v1185_v18, %v1186_v20 }
 0x184   :  { %2685 = vrot.lane.b32.xlu1 %v2684_v3, %s2882_s23  ;;  %v2704_v35 = vpack.i.bf16 %v1182_v28, %v1183_v32  ;;  %v2709_v36 = vpack.i.bf16 %v1214_v33, %v1215_v34 }
 0x185   :  { %v3374_v37 = vpop.f32.mrb[20].mxu0 }
 0x186   :  { %2705 = vrot.lane.b32.xlu0 %v2704_v35, %s2882_s23  ;;  %v3377_v40 = vpop.f32.mrb[21].mxu0  ;;  %v1159_v47 = vrot.slane %v3374_v37, 1  ;;  %v1191_v48 = vrot.slane %v3374_v37, 2 }
 0x187   :  { %v1157_v41 = vrot.slane %v3377_v40, 1  ;;  %v1189_v43 = vrot.slane %v3377_v40, 2  ;;  %v3381_v45 = vpop.f32.mrb[22].mxu0 }
 0x188   :  { %v1160_v51 = vrot.slane %v3381_v45, 1  ;;  %v1192_v52 = vrot.slane %v3381_v45, 2  ;;  %2690 = vrot.lane.b32.xlu1 %v2689_v9, %s2883_s25  ;;  %v3388_v53 = vpop.f32.mrb[23].mxu0 }
 0x189   :  { %v1158_v55 = vrot.slane %v3388_v53, 1  ;;  %v1190_v56 = vrot.slane %v3388_v53, 2  ;;  %v1180_v57 = vsel %vm506_vm0, %v1156_v14, %v1157_v41  ;;  %v1212_v58 = vsel %vm539_vm1, %v1188_v16, %v1189_v43 }
 0x18a   :  { %2710 = vrot.lane.b32.xlu0 %v2709_v36, %s2883_s25  ;;  %v2714_v59 = vpack.i.bf16 %v1180_v57, %v1181_v26  ;;  %v2719_v60 = vpack.i.bf16 %v1212_v58, %v1213_v27  ;;  %v1177_v61 = vsel %vm506_vm0, %v1159_v47, %v1160_v51  ;;  %v1209_v62 = vsel %vm539_vm1, %v1191_v48, %v1192_v52 }
 0x18b   :  { %v1178_v63 = vsel %vm506_vm0, %v1158_v55, %v1159_v47  ;;  %v1179_v0 = vsel %vm506_vm0, %v1157_v41, %v1158_v55  ;;  %v1210_v1 = vsel %vm539_vm1, %v1190_v56, %v1191_v48  ;;  %v1211_v2 = vsel %vm539_vm1, %v1189_v43, %v1190_v56 }
 0x18c   :  { %2715 = vrot.lane.b32.xlu1 %v2714_v59, %s2882_s23  ;;  %v2724_v3 = vpack.i.bf16 %v1178_v63, %v1179_v0  ;;  %v2729_v30 = vpack.i.bf16 %v1210_v1, %v1211_v2 }
 0x18d   :  { %v3410_v5 = vpop.f32.mrb[24].mxu0 }
 0x18e   :  { %2725 = vrot.lane.b32.xlu0 %v2724_v3, %s2882_s23  ;;  %v3413_v9 = vpop.f32.mrb[25].mxu0  ;;  %v1163_v16 = vrot.slane %v3410_v5, 1  ;;  %v1195_v19 = vrot.slane %v3410_v5, 2 }
 0x18f   :  { %v1161_v12 = vrot.slane %v3413_v9, 1  ;;  %v1193_v13 = vrot.slane %v3413_v9, 2  ;;  %v3417_v14 = vpop.f32.mrb[26].mxu0 }
 0x190   :  { %v1164_v20 = vrot.slane %v3417_v14, 1  ;;  %v1196_v25 = vrot.slane %v3417_v14, 2  ;;  %2720 = vrot.lane.b32.xlu1 %v2719_v60, %s2883_s25  ;;  %v3424_v26 = vpop.f32.mrb[27].mxu0 }
 0x191   :  { %v1162_v27 = vrot.slane %v3424_v26, 1  ;;  %v1194_v28 = vrot.slane %v3424_v26, 2  ;;  %v1176_v32 = vsel %vm506_vm0, %v1160_v51, %v1161_v12  ;;  %v1208_v33 = vsel %vm539_vm1, %v1192_v52, %v1193_v13 }
 0x192   :  { %2730 = vrot.lane.b32.xlu0 %v2729_v30, %s2883_s25  ;;  %v2734_v34 = vpack.i.bf16 %v1176_v32, %v1177_v61  ;;  %v2739_v35 = vpack.i.bf16 %v1208_v33, %v1209_v62  ;;  %v1173_v36 = vsel %vm506_vm0, %v1163_v16, %v1164_v20  ;;  %v1205_v41 = vsel %vm539_vm1, %v1195_v19, %v1196_v25 }
 0x193   :  { %v1174_v43 = vsel %vm506_vm0, %v1162_v27, %v1163_v16  ;;  %v1175_v47 = vsel %vm506_vm0, %v1161_v12, %v1162_v27  ;;  %v1206_v48 = vsel %vm539_vm1, %v1194_v28, %v1195_v19  ;;  %v1207_v51 = vsel %vm539_vm1, %v1193_v13, %v1194_v28 }
 0x194   :  { %2735 = vrot.lane.b32.xlu1 %v2734_v34, %s2882_s23  ;;  %v2744_v52 = vpack.i.bf16 %v1174_v43, %v1175_v47  ;;  %v2749_v55 = vpack.i.bf16 %v1206_v48, %v1207_v51 }
 0x195   :  { %v3446_v56 = vpop.f32.mrb[28].mxu0 }
 0x196   :  { %2745 = vrot.lane.b32.xlu0 %v2744_v52, %s2882_s23  ;;  %v3449_v57 = vpop.f32.mrb[29].mxu0  ;;  %v1167_v61 = vrot.slane %v3446_v56, 1  ;;  %v1199_v62 = vrot.slane %v3446_v56, 2 }
 0x197   :  { %v1165_v58 = vrot.slane %v3449_v57, 1  ;;  %v1197_v59 = vrot.slane %v3449_v57, 2  ;;  %v3453_v60 = vpop.f32.mrb[30].mxu0 }
 0x198   :  { %v1168_v63 = vrot.slane %v3453_v60, 1  ;;  %v1200_v0 = vrot.slane %v3453_v60, 2  ;;  %2740 = vrot.lane.b32.xlu1 %v2739_v35, %s2883_s25  ;;  %v3460_v1 = vpop.f32.mrb[31].mxu0 }
 0x199   :  { %v1166_v2 = vrot.slane %v3460_v1, 1  ;;  %v1198_v3 = vrot.slane %v3460_v1, 2  ;;  %v1172_v30 = vsel %vm506_vm0, %v1164_v20, %v1165_v58  ;;  %v1204_v12 = vsel %vm539_vm1, %v1196_v25, %v1197_v59 }
 0x19a   :  { %2750 = vrot.lane.b32.xlu0 %v2749_v55, %s2883_s25  ;;  %v2754_v13 = vpack.i.bf16 %v1172_v30, %v1173_v36  ;;  %v2759_v16 = vpack.i.bf16 %v1204_v12, %v1205_v41  ;;  %v1169_v19 = vsel %vm506_vm0, %v1167_v61, %v1168_v63  ;;  %v1184_v27 = vsel %vm506_vm0, %v1168_v63, %v1153_v31  ;;  %v2811_v63 = vld [vmem:[%s3914_s5 + $0x18] sm:$0xff]  }
 0x19b   :  { %v1170_v28 = vsel %vm506_vm0, %v1166_v2, %v1167_v61  ;;  %v1171_v20 = vsel %vm506_vm0, %v1165_v58, %v1166_v2  ;;  %v1202_v25 = vsel %vm539_vm1, %v1198_v3, %v1199_v62  ;;  %v1203_v32 = vsel %vm539_vm1, %v1197_v59, %v1198_v3 }
 0x19c   :  { %2755 = vrot.lane.b32.xlu1 %v2754_v13, %s2882_s23  ;;  %v2769_v33 = vpack.i.bf16 %v1170_v28, %v1171_v20  ;;  %v2774_v34 = vpack.i.bf16 %v1202_v25, %v1203_v32  ;;  %v2764_v35 = vpack.i.bf16 %v1184_v27, %v1169_v19  ;;  %v1201_v31 = vsel %vm539_vm1, %v1199_v62, %v1200_v0 }
 0x19d   :  { %v1216_v36 = vsel %vm539_vm1, %v1200_v0, %v1185_v18 }
 0x19e   :  { %2770 = vrot.lane.b32.xlu0 %v2769_v33, %s2882_s23  ;;  %v2779_v41 = vpack.i.bf16 %v1216_v36, %v1201_v31 }
 0x1a0   :  { %2760 = vrot.lane.b32.xlu1 %v2759_v16, %s2883_s25 }
 0x1a2   :  { %2775 = vrot.lane.b32.xlu0 %v2774_v34, %s2883_s25 }
 0x1a4   :  { %2765 = vrot.lane.b32.xlu1 %v2764_v35, %s2882_s23 }
 0x1a8   :  { %2780 = vrot.lane.b32.xlu1 %v2779_v41, %s2883_s25 }
 0x1d8   :  { %v2626_v43 = vpop.permute.xlu0 %2625 }
 0x1d9   :  { %v2628_v47 = vunpack.i.h.bf16 %v2626_v43  ;;  %v2627_v48 = vunpack.i.l.bf16 %v2626_v43 }
 0x1db   :  { %v685_v58 = vsel %vm684_vm2, %v3170_v23, %v2627_v48  ;;  %v686_v59 = vsel %vm684_vm2, %v3180_v29, %v2628_v47 }
 0x1dc   :  { %v2631_v51 = vpop.permute.xlu0 %2630 }
 0x1dd   :  { %v2633_v52 = vunpack.i.h.bf16 %v2631_v51  ;;  %v2632_v18 = vunpack.i.l.bf16 %v2631_v51 }
 0x1de   :  { %v2636_v55 = vpop.permute.xlu1 %2635 }
 0x1df   :  { %v702_v61 = vsel %vm701_vm3, %v685_v58, %v2632_v18  ;;  %v703_v62 = vsel %vm701_vm3, %v686_v59, %v2633_v52  ;;  %v2638_v0 = vunpack.i.h.bf16 %v2636_v55  ;;  %v2637_v2 = vunpack.i.l.bf16 %v2636_v55 }
 0x1e0   :  { %v2646_v3 = vpop.permute.xlu0 %2645  ;;  %v2239_v30 = vpack.c.bf16 %v703_v62, %v702_v61 }
 0x1e1   :  { %v2648_v12 = vunpack.i.h.bf16 %v2646_v3  ;;  %v2647_v13 = vunpack.i.l.bf16 %v2646_v3  ;;  %v688_v19 = vsel %vm684_vm2, %v3172_v24, %v2638_v0  ;;  %v687_v27 = vsel %vm684_vm2, %v3168_v22, %v2637_v2 }
 0x1e2   :  { %2527 = vmatprep.mubr.msk.bf16.mxu1 %vm3501_vm5, %v2239_v30  ;;  %v2641_v23 = vpop.permute.xlu1 %2640 }
 0x1e3   :  { %v2643_v16 = vunpack.i.h.bf16 %v2641_v23  ;;  %v2642_v29 = vunpack.i.l.bf16 %v2641_v23  ;;  %v690_v34 = vsel %vm684_vm2, %v3224_v54, %v2648_v12  ;;  %v689_v35 = vsel %vm684_vm2, %v3214_v46, %v2647_v13 }
 0x1e4   :  { %v2651_v28 = vpop.permute.xlu0 %2650 }
 0x1e5   :  { %v704_v20 = vsel %vm701_vm3, %v687_v27, %v2642_v29  ;;  %v705_v25 = vsel %vm701_vm3, %v688_v19, %v2643_v16  ;;  %v2653_v32 = vunpack.i.h.bf16 %v2651_v28  ;;  %v2652_v33 = vunpack.i.l.bf16 %v2651_v28 }
 0x1e6   :  { %v2242_v31 = vpack.c.bf16 %v705_v25, %v704_v20  ;;  %v2656_v36 = vpop.permute.xlu1 %2655 }
 0x1e7   :  { %v706_v24 = vsel %vm701_vm3, %v689_v35, %v2652_v33  ;;  %v707_v41 = vsel %vm701_vm3, %v690_v34, %v2653_v32  ;;  %v2658_v43 = vunpack.i.h.bf16 %v2656_v36  ;;  %v2657_v47 = vunpack.i.l.bf16 %v2656_v36 }
 0x1e8   :  { %v2245_v22 = vpack.c.bf16 %v707_v41, %v706_v24  ;;  %2528 = vmatmul.mubr.msk.bf16.vlgmr.msra.gmra.mrb[0].mxu1 %vm3501_vm5, %v2242_v31  ;;  %v2666_v48 = vpop.permute.xlu0 %2665 }
 0x1e9   :  { %v2668_v51 = vunpack.i.h.bf16 %v2666_v48  ;;  %v2667_v52 = vunpack.i.l.bf16 %v2666_v48  ;;  %v692_v55 = vsel %vm684_vm2, %v3218_v49, %v2658_v43  ;;  %v691_v58 = vsel %vm684_vm2, %v3208_v44, %v2657_v47 }
 0x1ea   :  { %2531 = vmatprep.mubr.msk.bf16.mxu1 %vm3501_vm5, %v2245_v22  ;;  %v2661_v54 = vpop.permute.xlu1 %2660 }
 0x1eb   :  { %v2663_v46 = vunpack.i.h.bf16 %v2661_v54  ;;  %v2662_v18 = vunpack.i.l.bf16 %v2661_v54  ;;  %v694_v3 = vsel %vm684_vm2, %v3263_v15, %v2668_v51  ;;  %v693_v30 = vsel %vm684_vm2, %v3252_v7, %v2667_v52 }
 0x1ec   :  { %v2671_v59 = vpop.permute.xlu0 %2670 }
 0x1ed   :  { %v708_v61 = vsel %vm701_vm3, %v691_v58, %v2662_v18  ;;  %v709_v62 = vsel %vm701_vm3, %v692_v55, %v2663_v46  ;;  %v2673_v0 = vunpack.i.h.bf16 %v2671_v59  ;;  %v2672_v2 = vunpack.i.l.bf16 %v2671_v59 }
 0x1ee   :  { %v2248_v12 = vpack.c.bf16 %v709_v62, %v708_v61  ;;  %v2676_v13 = vpop.permute.xlu1 %2675 }
 0x1ef   :  { %v710_v49 = vsel %vm701_vm3, %v693_v30, %v2672_v2  ;;  %v711_v23 = vsel %vm701_vm3, %v694_v3, %v2673_v0  ;;  %v2678_v16 = vunpack.i.h.bf16 %v2676_v13  ;;  %v2677_v29 = vunpack.i.l.bf16 %v2676_v13 }
 0x1f0   :  { %v2251_v44 = vpack.c.bf16 %v711_v23, %v710_v49  ;;  %2532 = vmatmul.mubr.msk.bf16.gmra.mrb[4].mxu1 %vm3501_vm5, %v2248_v12  ;;  %v2696_v19 = vpop.permute.xlu0 %2695 }
 0x1f1   :  { %v2698_v27 = vunpack.i.h.bf16 %v2696_v19  ;;  %v2697_v28 = vunpack.i.l.bf16 %v2696_v19  ;;  %v696_v25 = vsel %vm684_vm2, %v3256_v10, %v2678_v16  ;;  %v695_v32 = vsel %vm684_vm2, %v3249_v6, %v2677_v29 }
 0x1f2   :  { %2535 = vmatprep.mubr.msk.bf16.mxu1 %vm3501_vm5, %v2251_v44  ;;  %v2681_v15 = vpop.permute.xlu1 %2680 }
 0x1f3   :  { %v2683_v7 = vunpack.i.h.bf16 %v2681_v15  ;;  %v2682_v20 = vunpack.i.l.bf16 %v2681_v15  ;;  %v698_v24 = vsel %vm684_vm2, %v3302_v50, %v2698_v27  ;;  %v697_v41 = vsel %vm684_vm2, %v3291_v39, %v2697_v28 }
 0x1f4   :  { %v2701_v33 = vpop.permute.xlu0 %2700 }
 0x1f5   :  { %v712_v34 = vsel %vm701_vm3, %v695_v32, %v2682_v20  ;;  %v713_v35 = vsel %vm701_vm3, %v696_v25, %v2683_v7  ;;  %v2703_v31 = vunpack.i.h.bf16 %v2701_v33  ;;  %v2702_v36 = vunpack.i.l.bf16 %v2701_v33 }
 0x1f6   :  { %v2254_v22 = vpack.c.bf16 %v713_v35, %v712_v34  ;;  %v2686_v43 = vpop.permute.xlu1 %2685 }
 0x1f7   :  { %v714_v10 = vsel %vm701_vm3, %v697_v41, %v2702_v36  ;;  %v715_v47 = vsel %vm701_vm3, %v698_v24, %v2703_v31  ;;  %v2688_v48 = vunpack.i.h.bf16 %v2686_v43  ;;  %v2687_v51 = vunpack.i.l.bf16 %v2686_v43 }
 0x1f8   :  { %v2257_v6 = vpack.c.bf16 %v715_v47, %v714_v10  ;;  %2536 = vmatmul.mubr.msk.bf16.gmra.mrb[8].mxu1 %vm3501_vm5, %v2254_v22  ;;  %v2706_v52 = vpop.permute.xlu0 %2705 }
 0x1f9   :  { %v2708_v54 = vunpack.i.h.bf16 %v2706_v52  ;;  %v2707_v46 = vunpack.i.l.bf16 %v2706_v52  ;;  %v700_v55 = vsel %vm684_vm2, %v3295_v42, %v2688_v48  ;;  %v699_v58 = vsel %vm684_vm2, %v3288_v38, %v2687_v51 }
 0x1fa   :  { %v2691_v18 = vpop.permute.xlu1 %2690  ;;  %2539 = vmatprep.mubr.msk.bf16.mxu1 %vm3501_vm5, %v2257_v6 }
 0x1fb   :  { %v2693_v39 = vunpack.i.h.bf16 %v2691_v18  ;;  %v2692_v50 = vunpack.i.l.bf16 %v2691_v18  ;;  %v1346_v3 = vsel %vm684_vm2, %v3347_v17, %v2708_v54  ;;  %v1345_v30 = vsel %vm684_vm2, %v3338_v8, %v2707_v46 }
 0x1fc   :  { %v2711_v59 = vpop.permute.xlu0 %2710 }
 0x1fd   :  { %v716_v61 = vsel %vm701_vm3, %v699_v58, %v2692_v50  ;;  %v717_v62 = vsel %vm701_vm3, %v700_v55, %v2693_v39  ;;  %v2713_v0 = vunpack.i.h.bf16 %v2711_v59  ;;  %v2712_v2 = vunpack.i.l.bf16 %v2711_v59 }
 0x1fe   :  { %v2260_v12 = vpack.c.bf16 %v717_v62, %v716_v61  ;;  %v2716_v13 = vpop.permute.xlu1 %2715 }
 0x1ff   :  { %v1361_v42 = vsel %vm701_vm3, %v1345_v30, %v2712_v2  ;;  %v1362_v49 = vsel %vm701_vm3, %v1346_v3, %v2713_v0  ;;  %v2718_v23 = vunpack.i.h.bf16 %v2716_v13  ;;  %v2717_v44 = vunpack.i.l.bf16 %v2716_v13 }
 0x200   :  { %v2281_v38 = vpack.c.bf16 %v1362_v49, %v1361_v42  ;;  %2540 = vmatmul.mubr.msk.bf16.gmra.mrb[12].mxu1 %vm3501_vm5, %v2260_v12  ;;  %v2726_v16 = vpop.permute.xlu0 %2725 }
 0x201   :  { %v2728_v29 = vunpack.i.h.bf16 %v2726_v16  ;;  %v2727_v19 = vunpack.i.l.bf16 %v2726_v16  ;;  %v1348_v28 = vsel %vm684_vm2, %v3340_v11, %v2718_v23  ;;  %v1347_v15 = vsel %vm684_vm2, %v3331_v4, %v2717_v44 }
 0x202   :  { %2579 = vmatprep.mubr.msk.bf16.mxu0 %vm3501_vm5, %v2281_v38  ;;  %v2721_v17 = vpop.permute.xlu1 %2720 }
 0x203   :  { %v2723_v8 = vunpack.i.h.bf16 %v2721_v17  ;;  %v2722_v27 = vunpack.i.l.bf16 %v2721_v17  ;;  %v1350_v34 = vsel %vm684_vm2, %v3388_v53, %v2728_v29  ;;  %v1349_v35 = vsel %vm684_vm2, %v3377_v40, %v2727_v19 }
 0x204   :  { %v2731_v7 = vpop.permute.xlu0 %2730 }
 0x205   :  { %v1363_v20 = vsel %vm701_vm3, %v1347_v15, %v2722_v27  ;;  %v1364_v25 = vsel %vm701_vm3, %v1348_v28, %v2723_v8  ;;  %v2733_v32 = vunpack.i.h.bf16 %v2731_v7  ;;  %v2732_v33 = vunpack.i.l.bf16 %v2731_v7 }
 0x206   :  { %v2284_v31 = vpack.c.bf16 %v1364_v25, %v1363_v20  ;;  %v2736_v36 = vpop.permute.xlu1 %2735 }
 0x207   :  { %v1365_v11 = vsel %vm701_vm3, %v1349_v35, %v2732_v33  ;;  %v1366_v24 = vsel %vm701_vm3, %v1350_v34, %v2733_v32  ;;  %v2738_v41 = vunpack.i.h.bf16 %v2736_v36  ;;  %v2737_v22 = vunpack.i.l.bf16 %v2736_v36  ;;  %v2808_v35 = vld [vmem:[%s3914_s5] sm:$0xff]  }
 0x208   :  { %v2287_v4 = vpack.c.bf16 %v1366_v24, %v1365_v11  ;;  %2580 = vmatmul.mubr.msk.bf16.vlgmr.msra.gmra.mrb[32].mxu0 %vm3501_vm5, %v2284_v31  ;;  %v2746_v43 = vpop.permute.xlu0 %2745  ;;  %v2884_v31 = vmov 0.0   ;;  %v2812_v36 = vld [vmem:[%s3914_s5 + $0x20] sm:$0xff]   ;;  %v2813_v11 = vld [vmem:[%s3914_s5 + $0x28] sm:$0xff]   ;;  %v2814_v24 = vld [vmem:[%s3914_s5 + $0x30] sm:$0xff]  }
 0x209   :  { %v2748_v10 = vunpack.i.h.bf16 %v2746_v43  ;;  %v2747_v47 = vunpack.i.l.bf16 %v2746_v43  ;;  %v1352_v48 = vsel %vm684_vm2, %v3381_v45, %v2738_v41  ;;  %v1351_v51 = vsel %vm684_vm2, %v3374_v37, %v2737_v22  ;;  %2543 = vmatprep.subr.bf16.mxu1 %v2884_v31  ;;  %2559 = vmatprep.mubr.msk.bf16.mxu1 %vm2885_vm6, %v2884_v31  ;;  %v3665_v41 = vld [vmem:[%s3913_s4] ss:$0 sm:$0xff] }
 0x20a   :  { %2583 = vmatprep.mubr.msk.bf16.mxu0 %vm3501_vm5, %v2287_v4  ;;  %v2741_v53 = vpop.permute.xlu1 %2740  ;;  %2544 = vmatpush3.bf16.msra.mxu1 %v2808_v35  ;;  %v2815_v4 = vld [vmem:[%s3914_s5 + $0x38] sm:$0xff]   ;;  %v3668_v43 = vadd.s32 8, %v3166_v21 }
 0x20b   :  { %v2743_v40 = vunpack.i.h.bf16 %v2741_v53  ;;  %v2742_v6 = vunpack.i.l.bf16 %v2741_v53  ;;  %v1354_v50 = vsel %vm684_vm2, %v3424_v26, %v2748_v10  ;;  %v1353_v55 = vsel %vm684_vm2, %v3413_v9, %v2747_v47  ;;  %2545 = vmatprep.subr.bf16.mxu1 %v2884_v31 }
 0x20c   :  { %v2751_v52 = vpop.permute.xlu0 %2750  ;;  %vm929_vm7 = vcmp.lt.s32.totalorder %v3668_v43, 14 }
 0x20d   :  { %v1367_v54 = vsel %vm701_vm3, %v1351_v51, %v2742_v6  ;;  %v1368_v46 = vsel %vm701_vm3, %v1352_v48, %v2743_v40  ;;  %v2753_v18 = vunpack.i.h.bf16 %v2751_v52  ;;  %v2752_v39 = vunpack.i.l.bf16 %v2751_v52 }
 0x20e   :  { %v2290_v58 = vpack.c.bf16 %v1368_v46, %v1367_v54  ;;  %v2756_v59 = vpop.permute.xlu1 %2755 }
 0x20f   :  { %v1369_v45 = vsel %vm701_vm3, %v1353_v55, %v2752_v39  ;;  %v1370_v61 = vsel %vm701_vm3, %v1354_v50, %v2753_v18  ;;  %v2758_v62 = vunpack.i.h.bf16 %v2756_v59  ;;  %v2757_v0 = vunpack.i.l.bf16 %v2756_v59 }
 0x210   :  { %v2293_v37 = vpack.c.bf16 %v1370_v61, %v1369_v45  ;;  %2584 = vmatmul.mubr.msk.bf16.gmra.mrb[36].mxu0 %vm3501_vm5, %v2290_v58  ;;  %v2771_v2 = vpop.permute.xlu0 %2770 }
 0x211   :  { %v2773_v3 = vunpack.i.h.bf16 %v2771_v2  ;;  %v2772_v30 = vunpack.i.l.bf16 %v2771_v2  ;;  %v1356_v13 = vsel %vm684_vm2, %v3417_v14, %v2758_v62  ;;  %v1355_v42 = vsel %vm684_vm2, %v3410_v5, %v2757_v0 }
 0x212   :  { %2587 = vmatprep.mubr.msk.bf16.mxu0 %vm3501_vm5, %v2293_v37  ;;  %v2761_v26 = vpop.permute.xlu1 %2760 }
 0x213   :  { %v2763_v9 = vunpack.i.h.bf16 %v2761_v26  ;;  %v2762_v12 = vunpack.i.l.bf16 %v2761_v26  ;;  %v1358_v29 = vsel %vm684_vm2, %v3460_v1, %v2773_v3  ;;  %v1357_v19 = vsel %vm684_vm2, %v3449_v57, %v2772_v30 }
 0x214   :  { %v2776_v49 = vpop.permute.xlu0 %2775 }
 0x215   :  { %v1371_v38 = vsel %vm701_vm3, %v1355_v42, %v2762_v12  ;;  %v1372_v23 = vsel %vm701_vm3, %v1356_v13, %v2763_v9  ;;  %v2778_v44 = vunpack.i.h.bf16 %v2776_v49  ;;  %v2777_v16 = vunpack.i.l.bf16 %v2776_v49 }
 0x216   :  { %v2296_v17 = vpack.c.bf16 %v1372_v23, %v1371_v38  ;;  %v2766_v8 = vpop.permute.xlu1 %2765 }
 0x217   :  { %v1373_v14 = vsel %vm701_vm3, %v1357_v19, %v2777_v16  ;;  %v1374_v27 = vsel %vm701_vm3, %v1358_v29, %v2778_v44  ;;  %v2768_v28 = vunpack.i.h.bf16 %v2766_v8  ;;  %v2767_v15 = vunpack.i.l.bf16 %v2766_v8 }
 0x218   :  { %v2299_v5 = vpack.c.bf16 %v1374_v27, %v1373_v14  ;;  %2588 = vmatmul.mubr.msk.bf16.gmra.mrb[40].mxu0 %vm3501_vm5, %v2296_v17 }
 0x219   :  { %v1360_v57 = vsel %vm684_vm2, %v3453_v60, %v2768_v28  ;;  %v1359_v25 = vsel %vm684_vm2, %v3446_v56, %v2767_v15  ;;  %v2809_v56 = vld [vmem:[%s3914_s5 + $0x8] sm:$0xff]   ;;  %v2810_v60 = vld [vmem:[%s3914_s5 + $0x10] sm:$0xff]  }
 0x21a   :  { %v2781_v7 = vpop.permute.xlu1 %2780  ;;  %2591 = vmatprep.mubr.msk.bf16.mxu0 %vm3501_vm5, %v2299_v5  ;;  %2546 = vmatpush3.bf16.msra.mxu1 %v2809_v56 }
 0x21b   :  { %v2783_v1 = vunpack.i.h.bf16 %v2781_v7  ;;  %v2782_v20 = vunpack.i.l.bf16 %v2781_v7  ;;  %2547 = vmatprep.subr.bf16.mxu1 %v2884_v31 }
 0x21d   :  { %v1375_v32 = vsel %vm701_vm3, %v1359_v25, %v2782_v20  ;;  %v1376_v33 = vsel %vm701_vm3, %v1360_v57, %v2783_v1 }
 0x21e   :  { %v2302_v34 = vpack.c.bf16 %v1376_v33, %v1375_v32  ;;  %2548 = vmatpush3.bf16.msra.mxu1 %v2810_v60 }
 0x21f   :  { %2549 = vmatprep.subr.bf16.mxu1 %v2884_v31 }
 0x220   :  { %2592 = vmatmul.mubr.msk.bf16.gmra.mrb[44].mxu0 %vm3501_vm5, %v2302_v34 }
 0x222   :  { %2550 = vmatpush3.bf16.msra.mxu1 %v2811_v63 }
 0x223   :  { %2551 = vmatprep.subr.bf16.mxu1 %v2884_v31 }
 0x226   :  { %2552 = vmatpush3.bf16.msra.mxu1 %v2812_v36 }
 0x227   :  { %2553 = vmatprep.subr.bf16.mxu1 %v2884_v31 }
 0x22a   :  { %2554 = vmatpush3.bf16.msra.mxu1 %v2813_v11 }
 0x22b   :  { %2555 = vmatprep.subr.bf16.mxu1 %v2884_v31 }
 0x22e   :  { %2556 = vmatpush3.bf16.msra.mxu1 %v2814_v24 }
 0x22f   :  { %2557 = vmatprep.subr.bf16.mxu1 %v2884_v31 }
 0x232   :  { %2558 = vmatpush3.bf16.msra.mxu1 %v2815_v4 }
 0x233   :  { %2595 = vmatprep.subr.bf16.mxu1 %v2884_v31 }
 0x2bb   :  { %v2529_v22 = vpop.f32.mrb[0].mxu1 }
 0x2bc   :  { %v848_v10 = vpop.f32.mrb[1].mxu1  ;;  %v857_v47 = vadd.f32 %v2529_v22, %v3665_v41 }
 0x2bd   :  { %v2530_v53 = vpop.f32.mrb[2].mxu1  ;;  %v849_v40 = vadd.f32 %v3665_v41, %v848_v10 }
 0x2be   :  { %v860_v6 = vadd.f32 %v2530_v53, %v3665_v41  ;;  %v851_v48 = vpop.f32.mrb[3].mxu1  ;;  %v913_v54 = vmax.f32 %v857_v47, 0.0 }
 0x2bf   :  { %v852_v51 = vadd.f32 %v3665_v41, %v851_v48  ;;  %v911_v18 = vmax.f32 %v849_v40, 0.0 }
 0x2c0   :  { %v914_v52 = vmax.f32 %v860_v6, 0.0 }
 0x2c1   :  { %v912_v46 = vmax.f32 %v852_v51, 0.0 }
 0x2c2   :  { %v933_v39 = vsel %vm929_vm7, %v914_v52, 0.0 }
 0x2c3   :  { %v953_v50 = vmax.f32 %v913_v54, %v933_v39  ;;  %v931_v55 = vsel %vm929_vm7, %v912_v46, 0.0  ;;  %v2533_v58 = vpop.f32.mrb[4].mxu1 }
 0x2c4   :  { %v946_v59 = vmax.f32 %v911_v18, %v931_v55  ;;  %v864_v45 = vpop.f32.mrb[5].mxu1  ;;  %v873_v37 = vadd.f32 %v2533_v58, %v3665_v41 }
 0x2c5   :  { %v954_v61 = vrot.slane %v953_v50, 4  ;;  %v2534_v62 = vpop.f32.mrb[6].mxu1  ;;  %v865_v2 = vadd.f32 %v3665_v41, %v864_v45 }
 0x2c6   :  { %v947_v0 = vrot.slane %v946_v59, 4  ;;  %v876_v3 = vadd.f32 %v2534_v62, %v3665_v41  ;;  %v867_v30 = vpop.f32.mrb[7].mxu1  ;;  %v917_v49 = vmax.f32 %v873_v37, 0.0 }
 0x2c7   :  { %v955_v26 = vmax.f32 %v953_v50, %v954_v61  ;;  %v868_v9 = vadd.f32 %v3665_v41, %v867_v30  ;;  %v915_v44 = vmax.f32 %v865_v2, 0.0 }
 0x2c8   :  { %v948_v12 = vmax.f32 %v946_v59, %v947_v0  ;;  %v918_v13 = vmax.f32 %v876_v3, 0.0 }
 0x2c9   :  { %v956_v42 = vrot.slane %v955_v26, 2  ;;  %v916_v38 = vmax.f32 %v868_v9, 0.0 }
 0x2ca   :  { %v949_v23 = vrot.slane %v948_v12, 2  ;;  %v937_v16 = vsel %vm929_vm7, %v918_v13, 0.0 }
 0x2cb   :  { %v957_v29 = vmax.f32 %v955_v26, %v956_v42  ;;  %v967_v19 = vmax.f32 %v917_v49, %v937_v16  ;;  %v935_v17 = vsel %vm929_vm7, %v916_v38, 0.0  ;;  %v2537_v8 = vpop.f32.mrb[8].mxu1 }
 0x2cc   :  { %v950_v14 = vmax.f32 %v948_v12, %v949_v23  ;;  %v960_v27 = vmax.f32 %v915_v44, %v935_v17  ;;  %v880_v5 = vpop.f32.mrb[9].mxu1  ;;  %v889_v7 = vadd.f32 %v2537_v8, %v3665_v41 }
 0x2cd   :  { %v958_v28 = vrot.slane %v957_v29, 1  ;;  %v968_v15 = vrot.slane %v967_v19, 4  ;;  %v2538_v1 = vpop.f32.mrb[10].mxu1  ;;  %v881_v25 = vadd.f32 %v3665_v41, %v880_v5 }
 0x2ce   :  { %v951_v20 = vrot.slane %v950_v14, 1  ;;  %v961_v57 = vrot.slane %v960_v27, 4  ;;  %v892_v32 = vadd.f32 %v2538_v1, %v3665_v41  ;;  %v883_v33 = vpop.f32.mrb[11].mxu1  ;;  %v921_v4 = vmax.f32 %v889_v7, 0.0 }
 0x2cf   :  { %v959_v34 = vmax.f32 %v957_v29, %v958_v28  ;;  %v969_v35 = vmax.f32 %v967_v19, %v968_v15  ;;  %v884_v56 = vadd.f32 %v3665_v41, %v883_v33  ;;  %v919_v53 = vmax.f32 %v881_v25, 0.0  ;;  %v3703_v19 = vld [vmem:[%s3917_s8] ss:$0 sm:$0xff] }
 0x2d0   :  { %v952_v60 = vmax.f32 %v950_v14, %v951_v20  ;;  %v962_v63 = vmax.f32 %v960_v27, %v961_v57  ;;  %v922_v36 = vmax.f32 %v892_v32, 0.0 }
 0x2d1   :  { %v1003_v11 = vpack.c.bf16 %v959_v34, %v959_v34  ;;  %v970_v24 = vrot.slane %v969_v35, 2  ;;  %v920_v22 = vmax.f32 %v884_v56, 0.0 }
 0x2d2   :  { %v1002_v10 = vpack.c.bf16 %v952_v60, %v952_v60  ;;  %v963_v47 = vrot.slane %v962_v63, 2  ;;  %v941_v40 = vsel %vm929_vm7, %v922_v36, 0.0 }
 0x2d3   :  { %v1042_v6 = vunpack.c.l.b16 %v1003_v11  ;;  %v971_v48 = vmax.f32 %v969_v35, %v970_v24  ;;  %v981_v51 = vmax.f32 %v921_v4, %v941_v40  ;;  %v939_v52 = vsel %vm929_vm7, %v920_v22, 0.0  ;;  %v2541_v54 = vpop.f32.mrb[12].mxu1 }
 0x2d4   :  { %v1041_v46 = vunpack.c.l.b16 %v1002_v10  ;;  %v964_v18 = vmax.f32 %v962_v63, %v963_v47  ;;  %v974_v39 = vmax.f32 %v919_v53, %v939_v52  ;;  %v896_v50 = vpop.f32.mrb[13].mxu1  ;;  %v905_v62 = vadd.f32 %v2541_v54, %v3665_v41 }
 0x2d5   :  { %v972_v55 = vrot.slane %v971_v48, 1  ;;  %v982_v58 = vrot.slane %v981_v51, 4  ;;  %v2542_v59 = vpop.f32.mrb[14].mxu1  ;;  %v897_v30 = vadd.f32 %v3665_v41, %v896_v50 }
 0x2d6   :  { %v1050_v45 = vsel %vm1049_vm8, %v1042_v6, %v1041_v46  ;;  %v965_v61 = vrot.slane %v964_v18, 1  ;;  %v975_v37 = vrot.slane %v974_v39, 4  ;;  %v899_v0 = vpop.f32.mrb[15].mxu1  ;;  %v908_v26 = vadd.f32 %v2542_v59, %v3665_v41 }
 0x2d7   :  { %v973_v2 = vmax.f32 %v971_v48, %v972_v55  ;;  %v983_v3 = vmax.f32 %v981_v51, %v982_v58  ;;  %v900_v13 = vadd.f32 %v3665_v41, %v899_v0  ;;  %v925_v16 = vmax.f32 %v905_v62, 0.0 }
 0x2d8   :  { %v966_v9 = vmax.f32 %v964_v18, %v965_v61  ;;  %v976_v12 = vmax.f32 %v974_v39, %v975_v37  ;;  %v926_v38 = vmax.f32 %v908_v26, 0.0  ;;  %v923_v8 = vmax.f32 %v897_v30, 0.0 }
 0x2d9   :  { %v1005_v42 = vpack.c.bf16 %v973_v2, %v973_v2  ;;  %v984_v49 = vrot.slane %v983_v3, 2  ;;  %v924_v29 = vmax.f32 %v900_v13, 0.0 }
 0x2da   :  { %v1004_v23 = vpack.c.bf16 %v966_v9, %v966_v9  ;;  %v977_v44 = vrot.slane %v976_v12, 2  ;;  %v945_v14 = vsel %vm929_vm7, %v926_v38, 0.0 }
 0x2db   :  { %v985_v17 = vmax.f32 %v983_v3, %v984_v49  ;;  %v2581_v41 = vpop.f32.mrb[32].mxu0  ;;  %v995_v28 = vmax.f32 %v925_v16, %v945_v14  ;;  %v943_v15 = vsel %vm929_vm7, %v924_v29, 0.0  ;;  %v1044_v1 = vunpack.c.l.b16 %v1005_v42 }
 0x2dc   :  { %v1043_v27 = vunpack.c.l.b16 %v1004_v23  ;;  %v978_v5 = vmax.f32 %v976_v12, %v977_v44  ;;  %v1506_v7 = vpop.f32.mrb[33].mxu0  ;;  %v988_v57 = vmax.f32 %v923_v8, %v943_v15  ;;  %v1515_v25 = vadd.f32 %v2581_v41, %v3703_v19 }
 0x2dd   :  { %v986_v20 = vrot.slane %v985_v17, 1  ;;  %v2582_v32 = vpop.f32.mrb[34].mxu0  ;;  %v996_v35 = vrot.slane %v995_v28, 4  ;;  %v1507_v22 = vadd.f32 %v3703_v19, %v1506_v7 }
 0x2de   :  { %v1052_v33 = vsel %vm1051_vm9, %v1043_v27, %v1050_v45  ;;  %v979_v34 = vrot.slane %v978_v5, 1  ;;  %v1518_v56 = vadd.f32 %v2582_v32, %v3703_v19  ;;  %v1509_v60 = vpop.f32.mrb[35].mxu0  ;;  %v989_v11 = vrot.slane %v988_v57, 4 }
 0x2df   :  { %v987_v63 = vmax.f32 %v985_v17, %v986_v20  ;;  %v1054_v36 = vsel %vm1053_vm10, %v1044_v1, %v1052_v33  ;;  %v997_v4 = vmax.f32 %v995_v28, %v996_v35  ;;  %v1571_v40 = vmax.f32 %v1515_v25, 0.0 }
 0x2e0   :  { %v980_v24 = vmax.f32 %v978_v5, %v979_v34  ;;  %v1572_v10 = vmax.f32 %v1518_v56, 0.0  ;;  %v990_v53 = vmax.f32 %v988_v57, %v989_v11  ;;  %v1510_v6 = vadd.f32 %v3703_v19, %v1509_v60 }
 0x2e1   :  { %v1007_v47 = vpack.c.bf16 %v987_v63, %v987_v63  ;;  %v998_v51 = vrot.slane %v997_v4, 2  ;;  %v1569_v58 = vmax.f32 %v1507_v22, 0.0 }
 0x2e2   :  { %v1006_v48 = vpack.c.bf16 %v980_v24, %v980_v24  ;;  %v1588_v52 = vsel %vm929_vm7, %v1572_v10, 0.0  ;;  %v991_v54 = vrot.slane %v990_v53, 2  ;;  %v1570_v18 = vmax.f32 %v1510_v6, 0.0 }
 0x2e3   :  { %v1608_v46 = vmax.f32 %v1571_v40, %v1588_v52  ;;  %v2585_v39 = vpop.f32.mrb[36].mxu0  ;;  %v999_v55 = vmax.f32 %v997_v4, %v998_v51  ;;  %v1046_v45 = vunpack.c.l.b16 %v1007_v47 }
 0x2e4   :  { %v1045_v50 = vunpack.c.l.b16 %v1006_v48  ;;  %v1522_v59 = vpop.f32.mrb[37].mxu0  ;;  %v992_v61 = vmax.f32 %v990_v53, %v991_v54  ;;  %v1586_v62 = vsel %vm929_vm7, %v1570_v18, 0.0  ;;  %v1531_v26 = vadd.f32 %v2585_v39, %v3703_v19 }
 0x2e5   :  { %v1609_v37 = vrot.slane %v1608_v46, 4  ;;  %v2586_v0 = vpop.f32.mrb[38].mxu0  ;;  %v1000_v3 = vrot.slane %v999_v55, 1  ;;  %v1601_v30 = vmax.f32 %v1569_v58, %v1586_v62  ;;  %v1523_v42 = vadd.f32 %v3703_v19, %v1522_v59 }
 0x2e6   :  { %v1056_v2 = vsel %vm1055_vm11, %v1045_v50, %v1054_v36  ;;  %v1525_v9 = vpop.f32.mrb[39].mxu0  ;;  %v993_v12 = vrot.slane %v992_v61, 1  ;;  %v1534_v49 = vadd.f32 %v2586_v0, %v3703_v19  ;;  %v1575_v27 = vmax.f32 %v1531_v26, 0.0 }
 0x2e7   :  { %v1610_v13 = vmax.f32 %v1608_v46, %v1609_v37  ;;  %v1001_v38 = vmax.f32 %v999_v55, %v1000_v3  ;;  %v1602_v23 = vrot.slane %v1601_v30, 4  ;;  %v1526_v44 = vadd.f32 %v3703_v19, %v1525_v9  ;;  %v2816_v3 = vld [vmem:[%s3918_s9] sm:$0xff]  }
 0x2e8   :  { %v1058_v16 = vsel %vm1057_vm12, %v1046_v45, %v1056_v2  ;;  %v994_v29 = vmax.f32 %v992_v61, %v993_v12  ;;  %v1576_v8 = vmax.f32 %v1534_v49, 0.0  ;;  %v1573_v7 = vmax.f32 %v1523_v42, 0.0 }
 0x2e9   :  { %v1611_v17 = vrot.slane %v1610_v13, 2  ;;  %v1009_v14 = vpack.c.bf16 %v1001_v38, %v1001_v38  ;;  %v1603_v41 = vmax.f32 %v1601_v30, %v1602_v23  ;;  %v1574_v5 = vmax.f32 %v1526_v44, 0.0 }
 0x2ea   :  { %v1008_v28 = vpack.c.bf16 %v994_v29, %v994_v29  ;;  %v1592_v1 = vsel %vm929_vm7, %v1576_v8, 0.0 }
 0x2eb   :  { %v1612_v15 = vmax.f32 %v1610_v13, %v1611_v17  ;;  %v2589_v20 = vpop.f32.mrb[40].mxu0  ;;  %v1048_v57 = vunpack.c.l.b16 %v1009_v14  ;;  %v1604_v25 = vrot.slane %v1603_v41, 2  ;;  %v1622_v32 = vmax.f32 %v1575_v27, %v1592_v1 }
 0x2ec   :  { %v1590_v33 = vsel %vm929_vm7, %v1574_v5, 0.0  ;;  %v1538_v34 = vpop.f32.mrb[41].mxu0  ;;  %v1047_v35 = vunpack.c.l.b16 %v1008_v28  ;;  %v1547_v63 = vadd.f32 %v2589_v20, %v3703_v19  ;;  %v2817_v5 = vld [vmem:[%s3918_s9 + $0x8] sm:$0xff]  }
 0x2ed   :  { %v1613_v56 = vrot.slane %v1612_v15, 1  ;;  %v1615_v60 = vmax.f32 %v1573_v7, %v1590_v33  ;;  %v2590_v36 = vpop.f32.mrb[42].mxu0  ;;  %v1605_v11 = vmax.f32 %v1603_v41, %v1604_v25  ;;  %v1623_v24 = vrot.slane %v1622_v32, 4 }
 0x2ee   :  { %v1539_v4 = vadd.f32 %v3703_v19, %v1538_v34  ;;  %v1550_v22 = vadd.f32 %v2590_v36, %v3703_v19  ;;  %v1541_v10 = vpop.f32.mrb[43].mxu0  ;;  %v1579_v40 = vmax.f32 %v1547_v63, 0.0  ;;  %v1060_v50 = vsel %vm1059_vm13, %v1047_v35, %v1058_v16 }
 0x2ef   :  { %v1614_v47 = vmax.f32 %v1612_v15, %v1613_v56  ;;  %v1616_v53 = vrot.slane %v1615_v60, 4  ;;  %v1542_v6 = vadd.f32 %v3703_v19, %v1541_v10  ;;  %v1606_v48 = vrot.slane %v1605_v11, 1 }
 0x2f0   :  { %v1624_v51 = vmax.f32 %v1622_v32, %v1623_v24  ;;  %v1577_v52 = vmax.f32 %v1539_v4, 0.0  ;;  %v1580_v54 = vmax.f32 %v1550_v22, 0.0  ;;  %v1062_v45 = vsel %vm1061_vm14, %v1048_v57, %v1060_v50 }
 0x2f1   :  { %v1658_v46 = vpack.c.bf16 %v1614_v47, %v1614_v47  ;;  %v1617_v18 = vmax.f32 %v1615_v60, %v1616_v53  ;;  %v1578_v39 = vmax.f32 %v1542_v6, 0.0  ;;  %v1607_v55 = vmax.f32 %v1605_v11, %v1606_v48  ;;  %v2818_v11 = vld [vmem:[%s3918_s9 + $0x10] sm:$0xff]  }
 0x2f2   :  { %v1625_v58 = vrot.slane %v1624_v51, 2  ;;  %v1596_v59 = vsel %vm929_vm7, %v1580_v54, 0.0  ;;  %v1063_v12 = vpack.c.b16 %v1062_v45, %v1062_v45  ;;  %v2819_v54 = vld [vmem:[%s3918_s9 + $0x18] sm:$0xff]   ;;  %v2820_v45 = vld [vmem:[%s3918_s9 + $0x20] sm:$0xff]  }
 0x2f3   :  { %v1697_v61 = vunpack.c.l.b16 %v1658_v46  ;;  %v1618_v37 = vrot.slane %v1617_v18, 2  ;;  %v1636_v62 = vmax.f32 %v1579_v40, %v1596_v59  ;;  %v1594_v0 = vsel %vm929_vm7, %v1578_v39, 0.0  ;;  %v2593_v2 = vpop.f32.mrb[44].mxu0 }
 0x2f4   :  { %v1657_v30 = vpack.c.bf16 %v1607_v55, %v1607_v55  ;;  %v1626_v26 = vmax.f32 %v1624_v51, %v1625_v58  ;;  %v1629_v9 = vmax.f32 %v1577_v52, %v1594_v0  ;;  %v1554_v13 = vpop.f32.mrb[45].mxu0  ;;  %v1563_v38 = vadd.f32 %v2593_v2, %v3703_v19  ;;  %2560 = vmatmul.mubr.bf16.vlgmr.msra.gmra.mrb[16].mxu1 %v1063_v12 }
 0x2f5   :  { %v1619_v42 = vmax.f32 %v1617_v18, %v1618_v37  ;;  %v1637_v49 = vrot.slane %v1636_v62, 4  ;;  %v2594_v23 = vpop.f32.mrb[46].mxu0  ;;  %2596 = vmatpush3.bf16.msra.mxu1 %v2816_v3  ;;  %v1555_v27 = vadd.f32 %v3703_v19, %v1554_v13  ;;  %2611 = vmatprep.mubr.msk.bf16.mxu1 %vm2885_vm6, %v2884_v31 }
 0x2f6   :  { %v1696_v44 = vunpack.c.l.b16 %v1657_v30  ;;  %v1627_v16 = vrot.slane %v1626_v26, 1  ;;  %v1630_v29 = vrot.slane %v1629_v9, 4  ;;  %v1566_v17 = vadd.f32 %v2594_v23, %v3703_v19  ;;  %v1557_v8 = vpop.f32.mrb[47].mxu0  ;;  %2597 = vmatprep.subr.bf16.mxu1 %v2884_v31 }
 0x2f7   :  { %v1620_v14 = vrot.slane %v1619_v42, 1  ;;  %v1638_v41 = vmax.f32 %v1636_v62, %v1637_v49  ;;  %v1583_v25 = vmax.f32 %v1563_v38, 0.0  ;;  %v1558_v32 = vadd.f32 %v3703_v19, %v1557_v8  ;;  %v2822_v49 = vld [vmem:[%s3918_s9 + $0x30] sm:$0xff]  }
 0x2f8   :  { %v1704_v28 = vsel %vm1049_vm8, %v1697_v61, %v1696_v44  ;;  %v1628_v15 = vmax.f32 %v1626_v26, %v1627_v16  ;;  %v1631_v7 = vmax.f32 %v1629_v9, %v1630_v29  ;;  %v1584_v1 = vmax.f32 %v1566_v17, 0.0  ;;  %v2821_v26 = vld [vmem:[%s3918_s9 + $0x28] sm:$0xff]   ;;  %v2823_v16 = vld [vmem:[%s3918_s9 + $0x38] sm:$0xff]  }
 0x2f9   :  { %v1621_v20 = vmax.f32 %v1619_v42, %v1620_v14  ;;  %v1639_v57 = vrot.slane %v1638_v41, 2  ;;  %v1582_v36 = vmax.f32 %v1558_v32, 0.0  ;;  %2598 = vmatpush3.bf16.msra.mxu1 %v2817_v5  ;;  %v1581_v4 = vmax.f32 %v1555_v27, 0.0  ;;  %v2824_v14 = vld [vmem:[%s3920_s11 + $0x40] sm:$0xff]   ;;  %v2836_v32 = vld [vmem:[%s3921_s12 + $0x10] sm:$0xff]  }
 0x2fa   :  { %v1660_v33 = vpack.c.bf16 %v1628_v15, %v1628_v15  ;;  %v1632_v34 = vrot.slane %v1631_v7, 2  ;;  %v1600_v35 = vsel %vm929_vm7, %v1584_v1, 0.0  ;;  %2599 = vmatprep.subr.bf16.mxu1 %v2884_v31  ;;  %v2826_v27 = vld [vmem:[%s3921_s12 + $0x40] sm:$0xff]   ;;  %2419 = vmatprep.subr.bf16.mxu0 %v2824_v14  ;;  %v2829_v15 = vld [vmem:[%s3920_s11 + $0x8] sm:$0xff]  }
 0x2fb   :  { %v1659_v56 = vpack.c.bf16 %v1621_v20, %v1621_v20  ;;  %v1640_v60 = vmax.f32 %v1638_v41, %v1639_v57  ;;  %v1650_v63 = vmax.f32 %v1583_v25, %v1600_v35  ;;  %v1598_v47 = vsel %vm929_vm7, %v1582_v36, 0.0  ;;  %v2825_v41 = vld [vmem:[%s3920_s11] sm:$0xff]   ;;  %v2832_v1 = vld [vmem:[%s3921_s12 + $0x8] sm:$0xff]   ;;  %v2834_v20 = vld [vmem:[%s3921_s12 + $0x50] sm:$0xff]  }
 0x2fc   :  { %v1633_v24 = vmax.f32 %v1631_v7, %v1632_v34  ;;  %v1699_v53 = vunpack.c.l.b16 %v1660_v33  ;;  %v1643_v6 = vmax.f32 %v1581_v4, %v1598_v47  ;;  %v2828_v5 = vld [vmem:[%s3921_s12] sm:$0xff]   ;;  %2420 = vmatpush3.bf16.msra.mxu0 %v2825_v41  ;;  %v2831_v7 = vld [vmem:[%s3920_s11 + $0x50] sm:$0xff]   ;;  %v2835_v25 = vld [vmem:[%s3920_s11 + $0x58] sm:$0xff]  }
 0x2fd   :  { %v1698_v22 = vunpack.c.l.b16 %v1659_v56  ;;  %v1641_v19 = vrot.slane %v1640_v60, 1  ;;  %v1651_v10 = vrot.slane %v1650_v63, 4  ;;  %2600 = vmatpush3.bf16.msra.mxu1 %v2818_v11  ;;  %v2833_v57 = vld [vmem:[%s3920_s11 + $0x10] sm:$0xff]   ;;  %v2838_v33 = vld [vmem:[%s3921_s12 + $0x58] sm:$0xff]   ;;  %v2839_v35 = vld [vmem:[%s3920_s11 + $0x60] sm:$0xff]  }
 0x2fe   :  { %v1634_v40 = vrot.slane %v1633_v24, 1  ;;  %v1644_v18 = vrot.slane %v1643_v6, 4  ;;  %2601 = vmatprep.subr.bf16.mxu1 %v2884_v31  ;;  %v2837_v34 = vld [vmem:[%s3920_s11 + $0x18] sm:$0xff]   ;;  %v2843_v36 = vld [vmem:[%s3920_s11 + $0x68] sm:$0xff]   ;;  %v2844_v11 = vld [vmem:[%s3921_s12 + $0x20] sm:$0xff]  }
 0x2ff   :  { %v1705_v48 = vsel %vm1051_vm9, %v1698_v22, %v1704_v28  ;;  %v1642_v51 = vmax.f32 %v1640_v60, %v1641_v19  ;;  %v1652_v52 = vmax.f32 %v1650_v63, %v1651_v10  ;;  %v2830_v28 = vld [vmem:[%s3921_s12 + $0x48] sm:$0xff]   ;;  %v2840_v56 = vld [vmem:[%s3921_s12 + $0x18] sm:$0xff]   ;;  %v2842_v60 = vld [vmem:[%s3921_s12 + $0x60] sm:$0xff]  }
 0x300   :  { %v1635_v46 = vmax.f32 %v1633_v24, %v1634_v40  ;;  %v1706_v39 = vsel %vm1053_vm10, %v1699_v53, %v1705_v48  ;;  %v1645_v58 = vmax.f32 %v1643_v6, %v1644_v18  ;;  %v2841_v63 = vld [vmem:[%s3920_s11 + $0x20] sm:$0xff]   ;;  %v2846_v24 = vld [vmem:[%s3921_s12 + $0x68] sm:$0xff]   ;;  %v2847_v22 = vld [vmem:[%s3920_s11 + $0x70] sm:$0xff]  }
 0x301   :  { %v1662_v43 = vpack.c.bf16 %v1642_v51, %v1642_v51  ;;  %v1653_v50 = vrot.slane %v1652_v52, 2  ;;  %2602 = vmatpush3.bf16.msra.mxu1 %v2819_v54  ;;  %v2845_v4 = vld [vmem:[%s3920_s11 + $0x28] sm:$0xff]   ;;  %v2849_v10 = vld [vmem:[%s3920_s11 + $0x30] sm:$0xff]   ;;  %v2851_v40 = vld [vmem:[%s3920_s11 + $0x78] sm:$0xff]  }
 0x302   :  { %v1661_v55 = vpack.c.bf16 %v1635_v46, %v1635_v46  ;;  %v1646_v37 = vrot.slane %v1645_v58, 2  ;;  %2603 = vmatprep.subr.bf16.mxu1 %v2884_v31  ;;  %v2848_v19 = vld [vmem:[%s3921_s12 + $0x28] sm:$0xff]   ;;  %v2850_v47 = vld [vmem:[%s3921_s12 + $0x70] sm:$0xff]   ;;  %v2853_v6 = vld [vmem:[%s3920_s11 + $0x38] sm:$0xff]  }
 0x303   :  { %v1654_v59 = vmax.f32 %v1652_v52, %v1653_v50  ;;  %v1701_v62 = vunpack.c.l.b16 %v1662_v43  ;;  %v2852_v53 = vld [vmem:[%s3921_s12 + $0x30] sm:$0xff]   ;;  %v2854_v48 = vld [vmem:[%s3921_s12 + $0x78] sm:$0xff]   ;;  %v2157_v43 = vsub.s32 0, %v3166_v21  ;;  %v2161_v50 = vsub.s32 1, %v3166_v21 }
 0x304   :  { %v1700_v61 = vunpack.c.l.b16 %v1661_v55  ;;  %v1647_v2 = vmax.f32 %v1645_v58, %v1646_v37  ;;  %v2855_v51 = vld [vmem:[%s3921_s12 + $0x38] sm:$0xff]   ;;  %v2153_v55 = vld [vmem:[%s3922_s13] sm:$0x3]  ;;  %s2886_s13 = smov [#allocation3]  }
 0x305   :  { %v1655_v0 = vrot.slane %v1654_v59, 1  ;;  %2604 = vmatpush3.bf16.msra.mxu1 %v2820_v45  ;;  %v2158_v45 = vrot.slane %v2153_v55, %v2157_v43  ;;  %s2181_s22 = sshll.u32 %s2886_s13, 4  ;;  %s2182_s22 = int_to_ptr.vmem [resolvable:$true] %s2181_s22 }
 0x306   :  { %v1707_v3 = vsel %vm1055_vm11, %v1700_v61, %v1706_v39  ;;  %v1648_v12 = vrot.slane %v1647_v2, 1  ;;  %2605 = vmatprep.subr.bf16.mxu1 %v2884_v31  ;;  %v2262_v39 = vld [vmem:[%s3915_s6] ss:$0 sm:$0xff]  ;;  %v2162_v61 = vrot.slane %v2153_v55, %v2161_v50  ;;  %s2856_s23 = scalar_lea.vmem %s2182_s22, 128  ;;  %p2861_p1 = scmp.lt.s32.totalorder %s2182_s22, %s2182_s22 }
 0x307   :  { %v1656_v30 = vmax.f32 %v1654_v59, %v1655_v0  ;;  %v1708_v9 = vsel %vm1057_vm12, %v1701_v62, %v1707_v3  ;;  %v2304_v59 = vld [vmem:[%s3919_s10] ss:$0 sm:$0xff]  ;;  %p2857_p0 = scmp.ne.s32.totalorder %s2182_s22, %s2856_s23  ;;  %p2862_p2 = scmp.lt.s32.totalorder %s2856_s23, %s2856_s23 }
 0x308   :  { %v1649_v13 = vmax.f32 %v1647_v2, %v1648_v12 }
 0x309   :  { %v1664_v42 = vpack.c.bf16 %v1656_v30, %v1656_v30  ;;  %2606 = vmatpush3.bf16.msra.mxu1 %v2821_v26  ;;  %p2863_p3 = por %p2862_p2, %p2861_p1 }
 0x30a   :  { %v1663_v38 = vpack.c.bf16 %v1649_v13, %v1649_v13  ;;  %2607 = vmatprep.subr.bf16.mxu1 %v2884_v31 }
 0x30b   :  { %v1703_v44 = vunpack.c.l.b16 %v1664_v42  ;;  %p2864_p4 = pnand %p2863_p3, %p2857_p0 }
 0x30c   :  { %v1702_v23 = vunpack.c.l.b16 %v1663_v38 }
 0x30d   :  { %2608 = vmatpush3.bf16.msra.mxu1 %v2822_v49 }
 0x30e   :  { %2609 = vmatprep.subr.bf16.mxu1 %v2884_v31  ;;  %v1709_v29 = vsel %vm1059_vm13, %v1702_v23, %v1708_v9  ;;  %v2827_v31 = vld [vmem:[%s3920_s11 + $0x48] sm:$0xff]  }
 0x30f   :  { %v1710_v17 = vsel %vm1061_vm14, %v1703_v44, %v1709_v29  ;;  %2421 = vmatprep.subr.bf16.mxu0 %v2827_v31 }
 0x310   :  { %v1711_v8 = vpack.c.b16 %v1710_v17, %v1710_v17  ;;  %2422 = vmatpush3.bf16.msra.mxu0 %v2829_v15 }
 0x311   :  { %2610 = vmatpush3.bf16.msra.mxu1 %v2823_v16  ;;  %2423 = vmatprep.subr.bf16.mxu0 %v2831_v7 }
 0x312   :  { %2441 = vmatprep.subr.bf16.mxu1 %v2826_v27 }
 0x314   :  { %2612 = vmatmul.mubr.bf16.vlgmr.msra.gmra.mrb[20].mxu1 %v1711_v8  ;;  %2424 = vmatpush3.bf16.msra.mxu0 %v2833_v57  ;;  %v2171_v57 = vstv %s3923_s14 }
 0x315   :  { %2442 = vmatpush3.bf16.msra.mxu1 %v2828_v5  ;;  %2425 = vmatprep.subr.bf16.mxu0 %v2835_v25 }
 0x316   :  { %2443 = vmatprep.subr.bf16.mxu1 %v2830_v28 }
 0x318   :  { %2426 = vmatpush3.bf16.msra.mxu0 %v2837_v34 }
 0x319   :  { %2444 = vmatpush3.bf16.msra.mxu1 %v2832_v1  ;;  %2427 = vmatprep.subr.bf16.mxu0 %v2839_v35 }
 0x31a   :  { %2445 = vmatprep.subr.bf16.mxu1 %v2834_v20 }
 0x31c   :  { %2428 = vmatpush3.bf16.msra.mxu0 %v2841_v63 }
 0x31d   :  { %2446 = vmatpush3.bf16.msra.mxu1 %v2836_v32  ;;  %2429 = vmatprep.subr.bf16.mxu0 %v2843_v36 }
 0x31e   :  { %2447 = vmatprep.subr.bf16.mxu1 %v2838_v33 }
 0x320   :  { %2430 = vmatpush3.bf16.msra.mxu0 %v2845_v4 }
 0x321   :  { %2448 = vmatpush3.bf16.msra.mxu1 %v2840_v56  ;;  %2431 = vmatprep.subr.bf16.mxu0 %v2847_v22 }
 0x322   :  { %2449 = vmatprep.subr.bf16.mxu1 %v2842_v60 }
 0x324   :  { %2432 = vmatpush3.bf16.msra.mxu0 %v2849_v10 }
 0x325   :  { %2450 = vmatpush3.bf16.msra.mxu1 %v2844_v11  ;;  %2433 = vmatprep.subr.bf16.mxu0 %v2851_v40 }
 0x326   :  { %2451 = vmatprep.subr.bf16.mxu1 %v2846_v24 }
 0x328   :  { %2434 = vmatpush3.bf16.msra.mxu0 %v2853_v6 }
 0x329   :  { %2452 = vmatpush3.bf16.msra.mxu1 %v2848_v19 }
 0x32a   :  { %2453 = vmatprep.subr.bf16.mxu1 %v2850_v47 }
 0x32d   :  { %2454 = vmatpush3.bf16.msra.mxu1 %v2852_v53 }
 0x32e   :  { %2455 = vmatprep.subr.bf16.mxu1 %v2854_v48 }
 0x331   :  { %2456 = vmatpush3.bf16.msra.mxu1 %v2855_v51 }
 0x3c7   :  { %v1147_v52 = vpop.f32.mrb[16].mxu1 }
 0x3c8   :  { %v2561_v54 = vpop.f32.mrb[17].mxu1  ;;  %v1148_v58 = vadd.f32 %v2262_v39, %v1147_v52 }
 0x3c9   :  { %v1150_v46 = vpop.f32.mrb[18].mxu1 }
 0x3ca   :  { %v2562_v18 = vpop.f32.mrb[19].mxu1  ;;  %v1803_v2 = vmul.f32 %v1148_v58, %v1148_v58  ;;  %v2165_v21 = vmul.f32 %v2158_v45, %v1148_v58  ;;  %v1801_v13 = vpack.c.bf16 %v1148_v58, %v1148_v58 }
 0x3cc   :  { %v1805_v38 = vpack.c.bf16 %v1803_v2, %v1803_v2 }
 0x3e7   :  { %v1795_v37 = vpop.f32.mrb[20].mxu1 }
 0x3e8   :  { %v1796_v62 = vadd.f32 %v2304_v59, %v1795_v37  ;;  %v2613_v0 = vpop.f32.mrb[21].mxu1 }
 0x3e9   :  { %v1798_v3 = vpop.f32.mrb[22].mxu1 }
 0x3ea   :  { %v2614_v30 = vpop.f32.mrb[23].mxu1  ;;  %v1802_v26 = vpack.c.bf16 %v1796_v62, %v1796_v62  ;;  %v1804_v9 = vmul.f32 %v1796_v62, %v1796_v62  ;;  %v2166_v12 = vmul.f32 %v2162_v61, %v1796_v62 }
 0x3ec   :  { %1967 = vmatprep.mubr.bf16.mxu0 %v1802_v26  ;;  %v1806_v42 = vpack.c.bf16 %v1804_v9, %v1804_v9  ;;  %v2167_v49 = vadd.f32 %v2166_v12, %v2165_v21 }
 0x3ed   :  { %1968 = vmatmul.mubr.bf16.vlgmr.msra.gmra.mrb[48].mxu0 %v1801_v13 }
 0x3ee   :  { %2135 = vmatprep.mubr.bf16.mxu1 %v1806_v42 }
 0x3ef   :  { %2136 = vmatmul.mubr.bf16.vlgmr.msra.gmra.mrb[24].mxu1 %v1805_v38 }
 0x4c0   :  { %v2435_v23 = vpop.f32.mrb[48].mxu0 }
 0x4c1   :  { %v2436_v44 = vpop.f32.mrb[49].mxu0 }
 0x4c2   :  { %v2437_v16 = vadd.f32 %v2436_v44, %v2435_v23  ;;  %v2438_v29 = vpop.f32.mrb[50].mxu0  ;;  %v2457_v17 = vpop.f32.mrb[24].mxu1 }
 0x4c3   :  { %v2439_v8 = vpop.f32.mrb[51].mxu0  ;;  %v2458_v14 = vpop.f32.mrb[25].mxu1 }
 0x4c4   :  { %v2143_v41 = vmul.f32 %v2437_v16, %v2437_v16  ;;  %v2459_v27 = vadd.f32 %v2458_v14, %v2457_v17  ;;  %v2460_v31 = vpop.f32.mrb[26].mxu1 }
 0x4c5   :  { %v2461_v5 = vpop.f32.mrb[27].mxu1 }
 0x4c6   :  { %v2145_v28 = vsel %vm2144_vm15, %v2143_v41, 0.0  ;;  %v2148_v15 = vsel %vm2144_vm15, %v2459_v27, 0.0 }
 0x4c7   :  { %2146 = vadd.xlane.f32.xlu0 %v2145_v28  ;;  %2149 = vadd.xlane.f32.xlu1 %v2148_v15 }
 0x4cb   :  { %2168 = vadd.xlane.f32.xlu0 %v2167_v49 }
 0x554   :  { %v2147_v7 = vpop.xlane.xlu0 %2146  ;;  %v2150_v1 = vpop.xlane.xlu1 %2149 }
 0x555   :  { %v2151_v20 = vsub.f32 %v2147_v7, %v2150_v1 }
 0x557   :  { %v2152_v25 = vmul.f32 0.5, %v2151_v20 }
 0x558   :  { %v2169_v33 = vpop.xlane.xlu0 %2168 }
 0x559   :  { %v2172_v32 = vadd.f32 %v2171_v57, %v2152_v25 }
 0x55b   :  { %v2173_v34 = vadd.f32 %v2172_v32, %v2169_v33 }
 0x55d   :  { %2174 = vst [vmem:[#allocation3] sm:$0xff] %v2173_v34 }
 0x55e   :  { %2867 = shalt.err (!%p2864_p4)
}
 0x55f   :  { %s2868_s25 = scalar_lea.hbm %s3924_s15, 128 }
 0x560   :  { %p2869_p5 = scmp.ne.s32.totalorder %s3924_s15, %s2868_s25  ;;  %p2872_p6 = scmp.lt.u32.totalorder %s2868_s25, %s3924_s15 }
 0x562   :  { %p2874_p7 = pnand %p2872_p6, %p2869_p5 }
 0x564   :  { %2877 = shalt.err (!%p2874_p7)
}
 0x565   :  { %2184 = dma.vmem_to_hbm [thread:$0]  %s2182_s22, 128, %s3924_s15, [#allocation4]  }
 0x566   :  { %2878 = dma.done.wait [#allocation4], 128  }
 0x567   :  { %2879 = vsyncadd [#allocation4], 4294967168 }
 0x568   :  { %2188 = vsyncpa [#allocation4], 1 }

// kernel: tpu_custom_call.1
= control target key start
LH: loop header
LB: loop body
LE: loop exit
PB: predicated region body
PF: predicated region fallthrough
CT: control target
= control target key end

     0   :  { %v2856_v2 = vmov 0   ;;  %s3803_s0 = inlined_call_operand.vmem [shape: s32[128,1], index: 0, kind: input, shape index: {}]   ;;  %s3804_s1 = inlined_call_operand.vmem [shape: s32[128,1], index: 1, kind: input, shape index: {}]   ;;  %s3805_s2 = inlined_call_operand.vmem [shape: bf16[128,32], index: 2, kind: input, shape index: {}]   ;;  %s3806_s3 = inlined_call_operand.vmem [shape: bf16[128,128], index: 3, kind: input, shape index: {}]   ;;  %s3807_s4 = inlined_call_operand.vmem [shape: f32[1,128], index: 4, kind: input, shape index: {}]   ;;  %s3808_s5 = inlined_call_operand.vmem [shape: bf16[128,128], index: 5, kind: input, shape index: {}]   ;;  %s3809_s6 = inlined_call_operand.vmem [shape: f32[1,128], index: 6, kind: input, shape index: {}]   ;;  %s3810_s7 = inlined_call_operand.vmem [shape: bf16[128,128], index: 7, kind: input, shape index: {}]   ;;  %s3811_s8 = inlined_call_operand.vmem [shape: f32[1,128], index: 8, kind: input, shape index: {}]   ;;  %s3812_s9 = inlined_call_operand.vmem [shape: bf16[128,128], index: 9, kind: input, shape index: {}]   ;;  %s3813_s10 = inlined_call_operand.vmem [shape: f32[1,128], index: 10, kind: input, shape index: {}]   ;;  %s3814_s11 = inlined_call_operand.vmem [shape: bf16[256,8], index: 11, kind: input, shape index: {}]   ;;  %s3815_s12 = inlined_call_operand.vmem [shape: bf16[256,8], index: 12, kind: input, shape index: {}]   ;;  %s3816_s13 = inlined_call_operand.vmem [shape: f32[1,256], index: 13, kind: input, shape index: {}]   ;;  %s3817_s14 = inlined_call_operand.<no memory space> [shape: f32[1,1], index: 14, kind: input, shape index: {}]   ;;  %s3818_s15 = inlined_call_operand.hbm [shape: f32[8,128], index: 15, kind: output, shape index: {}]  }
   0x1   :  { %v71_v0 = vld [vmem:[%s3803_s0 + $0x10] sm:$0xff]  ;;  %v69_v1 = vld [vmem:[%s3803_s0] sm:$0xff]  ;;  %2599 = vset.pattern.permute.xlu1 %v2856_v2  ;;  %2598 = vset.pattern.permute.xlu0 %v2856_v2  ;;  %v72_v3 = vld [vmem:[%s3803_s0 + $0x18] sm:$0xff] }
   0x2   :  { %110 = vperm.xlu1 %2599, %v71_v0   ;;  %104 = vperm.xlu0 %2598, %v69_v1   ;;  %v70_v4 = vld [vmem:[%s3803_s0 + $0x8] sm:$0xff]  ;;  %v73_v6 = vld [vmem:[%s3803_s0 + $0x20] sm:$0xff]  ;;  %v76_v7 = vld [vmem:[%s3803_s0 + $0x38] sm:$0xff] }
   0x3   :  { %v74_v5 = vld [vmem:[%s3803_s0 + $0x28] sm:$0xff]  ;;  %v75_v8 = vld [vmem:[%s3803_s0 + $0x30] sm:$0xff]  ;;  %v2760_v9 = vld [vmem:[%s3805_s2] sm:$0xff]  }
   0x4   :  { %v2761_v10 = vld [vmem:[%s3805_s2 + $0x8] sm:$0xff]   ;;  %2439 = vmatprep.subr.bf16.mxu0 %v2760_v9  ;;  %v77_v12 = vld [vmem:[%s3803_s0 + $0x40] sm:$0xff]  ;;  %v2762_v13 = vld [vmem:[%s3805_s2 + $0x10] sm:$0xff]  }
   0x5   :  { %v78_v11 = vld [vmem:[%s3803_s0 + $0x48] sm:$0xff]  ;;  %2440 = vmatpush3.bf16.msra.mxu0 %v2760_v9  ;;  %v80_v14 = vld [vmem:[%s3803_s0 + $0x58] sm:$0xff]  ;;  %v79_v15 = vld [vmem:[%s3803_s0 + $0x50] sm:$0xff] }
   0x6   :  { %113 = vperm.xlu1 %2599, %v72_v3   ;;  %107 = vperm.xlu0 %2598, %v70_v4   ;;  %v2763_v16 = vld [vmem:[%s3805_s2 + $0x18] sm:$0xff]   ;;  %v82_v17 = vld [vmem:[%s3803_s0 + $0x68] sm:$0xff]  ;;  %v81_v18 = vld [vmem:[%s3803_s0 + $0x60] sm:$0xff] }
   0x7   :  { %2441 = vmatprep.subr.bf16.mxu0 %v2761_v10  ;;  %v2764_v19 = vld [vmem:[%s3805_s2 + $0x20] sm:$0xff]   ;;  %v84_v20 = vld [vmem:[%s3803_s0 + $0x78] sm:$0xff]  ;;  %v83_v21 = vld [vmem:[%s3803_s0 + $0x70] sm:$0xff] }
   0x8   :  { %v2765_v22 = vld [vmem:[%s3805_s2 + $0x28] sm:$0xff]   ;;  %v85_v24 = vld [vmem:[%s3804_s1] sm:$0xff]  ;;  %v2766_v25 = vld [vmem:[%s3805_s2 + $0x30] sm:$0xff]  }
   0x9   :  { %2442 = vmatpush3.bf16.msra.mxu0 %v2761_v10  ;;  %v86_v23 = vld [vmem:[%s3804_s1 + $0x8] sm:$0xff]  ;;  %v88_v26 = vld [vmem:[%s3804_s1 + $0x18] sm:$0xff]  ;;  %v87_v27 = vld [vmem:[%s3804_s1 + $0x10] sm:$0xff] }
   0xa   :  { %119 = vperm.xlu1 %2599, %v74_v5   ;;  %116 = vperm.xlu0 %2598, %v73_v6   ;;  %v2767_v28 = vld [vmem:[%s3805_s2 + $0x38] sm:$0xff]   ;;  %v90_v29 = vld [vmem:[%s3804_s1 + $0x28] sm:$0xff]  ;;  %v89_v30 = vld [vmem:[%s3804_s1 + $0x20] sm:$0xff] }
   0xb   :  { %2443 = vmatprep.subr.bf16.mxu0 %v2762_v13  ;;  %v92_v31 = vld [vmem:[%s3804_s1 + $0x38] sm:$0xff]  ;;  %v91_v32 = vld [vmem:[%s3804_s1 + $0x30] sm:$0xff]  ;;  %v94_v33 = vld [vmem:[%s3804_s1 + $0x48] sm:$0xff] }
   0xc   :  { %v93_v34 = vld [vmem:[%s3804_s1 + $0x40] sm:$0xff]  ;;  %v96_v35 = vld [vmem:[%s3804_s1 + $0x58] sm:$0xff]  ;;  %v95_v36 = vld [vmem:[%s3804_s1 + $0x50] sm:$0xff] }
   0xd   :  { %2444 = vmatpush3.bf16.msra.mxu0 %v2762_v13  ;;  %v98_v37 = vld [vmem:[%s3804_s1 + $0x68] sm:$0xff]  ;;  %v97_v38 = vld [vmem:[%s3804_s1 + $0x60] sm:$0xff]  ;;  %v100_v39 = vld [vmem:[%s3804_s1 + $0x78] sm:$0xff] }
   0xe   :  { %125 = vperm.xlu1 %2599, %v76_v7   ;;  %122 = vperm.xlu0 %2598, %v75_v8   ;;  %v99_v40 = vld [vmem:[%s3804_s1 + $0x70] sm:$0xff] }
   0xf   :  { %2445 = vmatprep.subr.bf16.mxu0 %v2763_v16 }
  0x11   :  { %2446 = vmatpush3.bf16.msra.mxu0 %v2763_v16 }
  0x12   :  { %131 = vperm.xlu1 %2599, %v78_v11   ;;  %128 = vperm.xlu0 %2598, %v77_v12  }
  0x13   :  { %2447 = vmatprep.subr.bf16.mxu0 %v2764_v19 }
  0x15   :  { %2448 = vmatpush3.bf16.msra.mxu0 %v2764_v19 }
  0x16   :  { %137 = vperm.xlu1 %2599, %v80_v14   ;;  %134 = vperm.xlu0 %2598, %v79_v15  }
  0x17   :  { %2449 = vmatprep.subr.bf16.mxu0 %v2765_v22 }
  0x19   :  { %2450 = vmatpush3.bf16.msra.mxu0 %v2765_v22 }
  0x1a   :  { %143 = vperm.xlu1 %2599, %v82_v17   ;;  %140 = vperm.xlu0 %2598, %v81_v18  }
  0x1b   :  { %2451 = vmatprep.subr.bf16.mxu0 %v2766_v25 }
  0x1d   :  { %2452 = vmatpush3.bf16.msra.mxu0 %v2766_v25 }
  0x1e   :  { %149 = vperm.xlu1 %2599, %v84_v20   ;;  %146 = vperm.xlu0 %2598, %v83_v21  }
  0x1f   :  { %2453 = vmatprep.subr.bf16.mxu0 %v2767_v28 }
  0x21   :  { %2454 = vmatpush3.bf16.msra.mxu0 %v2767_v28 }
  0x22   :  { %155 = vperm.xlu1 %2599, %v86_v23   ;;  %152 = vperm.xlu0 %2598, %v85_v24  }
  0x26   :  { %161 = vperm.xlu1 %2599, %v88_v26   ;;  %158 = vperm.xlu0 %2598, %v87_v27  }
  0x2a   :  { %167 = vperm.xlu1 %2599, %v90_v29   ;;  %164 = vperm.xlu0 %2598, %v89_v30  }
  0x2e   :  { %173 = vperm.xlu1 %2599, %v92_v31   ;;  %170 = vperm.xlu0 %2598, %v91_v32  }
  0x32   :  { %179 = vperm.xlu1 %2599, %v94_v33   ;;  %176 = vperm.xlu0 %2598, %v93_v34  }
  0x36   :  { %185 = vperm.xlu1 %2599, %v96_v35   ;;  %182 = vperm.xlu0 %2598, %v95_v36  }
  0x3a   :  { %191 = vperm.xlu1 %2599, %v98_v37   ;;  %188 = vperm.xlu0 %2598, %v97_v38  }
  0x3b   :  { %21 = vsyncpa [#allocation4], 0  ;;  %v101_v41 = vlaneseq  ;;  %v2857_v47 = vmov 1.0|1.0   ;;  %v2768_v12 = vld [vmem:[%s3810_s7] sm:$0xff]   ;;  %v2770_v14 = vld [vmem:[%s3806_s3 + $0x8] sm:$0xff]  }
  0x3c   :  { %v2769_v13 = vld [vmem:[%s3806_s3] sm:$0xff]   ;;  %v2771_v15 = vld [vmem:[%s3810_s7 + $0x8] sm:$0xff]   ;;  %2539 = vmatprep.subr.bf16.mxu0 %v2768_v12  ;;  %v2772_v16 = vld [vmem:[%s3806_s3 + $0x10] sm:$0xff]   ;;  %s2858_s23 = smov 32   ;;  %s2859_s25 = smov 64  }
  0x3d   :  { %v3064_v44 = vand.u32 127, %v101_v41  ;;  %2487 = vmatprep.subr.bf16.mxu1 %v2769_v13  ;;  %v2774_v17 = vld [vmem:[%s3810_s7 + $0x10] sm:$0xff]   ;;  %v2773_v18 = vld [vmem:[%s3806_s3 + $0x18] sm:$0xff]   ;;  %v2775_v19 = vld [vmem:[%s3806_s3 + $0x20] sm:$0xff]  }
  0x3e   :  { %197 = vperm.xlu1 %2599, %v100_v39   ;;  %194 = vperm.xlu0 %2598, %v99_v40   ;;  %v2776_v20 = vld [vmem:[%s3806_s3 + $0x28] sm:$0xff]   ;;  %v2777_v33 = vld [vmem:[%s3810_s7 + $0x18] sm:$0xff]   ;;  %v2778_v34 = vld [vmem:[%s3806_s3 + $0x30] sm:$0xff]  }
  0x3f   :  { %2488 = vmatpush3.bf16.msra.mxu1 %v2769_v13 }
  0x40   :  { %2489 = vmatprep.subr.bf16.mxu1 %v2770_v14 }
  0x43   :  { %2490 = vmatpush3.bf16.msra.mxu1 %v2770_v14 }
  0x44   :  { %2491 = vmatprep.subr.bf16.mxu1 %v2772_v16 }
  0x47   :  { %2492 = vmatpush3.bf16.msra.mxu1 %v2772_v16 }
  0x48   :  { %2493 = vmatprep.subr.bf16.mxu1 %v2773_v18 }
  0x4b   :  { %2494 = vmatpush3.bf16.msra.mxu1 %v2773_v18 }
  0x4c   :  { %2495 = vmatprep.subr.bf16.mxu1 %v2775_v19 }
  0x4f   :  { %2496 = vmatpush3.bf16.msra.mxu1 %v2775_v19 }
  0x50   :  { %2497 = vmatprep.subr.bf16.mxu1 %v2776_v20 }
  0x53   :  { %2498 = vmatpush3.bf16.msra.mxu1 %v2776_v20  ;;  %v2781_v20 = vld [vmem:[%s3810_s7 + $0x28] sm:$0xff]  }
  0x54   :  { %2499 = vmatprep.subr.bf16.mxu1 %v2778_v34 }
  0x57   :  { %2500 = vmatpush3.bf16.msra.mxu1 %v2778_v34 }
  0x81   :  { %v111_v42 = vpop.permute.xlu1 %110  ;;  %v105_v43 = vpop.permute.xlu0 %104 }
  0x82   :  { %vm201_vm0 = vcmp.eq.s32.totalorder %v111_v42, %v3064_v44  ;;  %vm199_vm3 = vcmp.eq.s32.totalorder %v105_v43, %v3064_v44 }
  0x85   :  { %v114_v45 = vpop.permute.xlu1 %113  ;;  %v108_v46 = vpop.permute.xlu0 %107 }
  0x86   :  { %vm202_vm1 = vcmp.eq.s32.totalorder %v114_v45, %v3064_v44  ;;  %vm200_vm2 = vcmp.eq.s32.totalorder %v108_v46, %v3064_v44  ;;  %v2779_v45 = vld [vmem:[%s3806_s3 + $0x38] sm:$0xff]  }
  0x87   :  { %vm2175_vm4 = vmpackc.low %vm202_vm1, %vm201_vm0  ;;  %2501 = vmatprep.subr.bf16.mxu1 %v2779_v45 }
  0x88   :  { %vm2173_vm5 = vmpackc.low %vm200_vm2, %vm199_vm3  ;;  %2502 = vmatpush3.bf16.msra.mxu1 %v2779_v45 }
  0x89   :  { %2455 = vmatprep.mubr.msk.bf16.mxu0 %vm2173_vm5, %v2857_v47  ;;  %v120_v48 = vpop.permute.xlu1 %119  ;;  %v117_v49 = vpop.permute.xlu0 %116 }
  0x8a   :  { %vm204_vm6 = vcmp.eq.s32.totalorder %v120_v48, %v3064_v44  ;;  %vm203_vm7 = vcmp.eq.s32.totalorder %v117_v49, %v3064_v44  ;;  %2456 = vmatmul.mubr.msk.bf16.vlgmr.msra.gmra.mrb[0].mxu0 %vm2175_vm4, %v2857_v47 }
  0x8b   :  { %vm2177_vm8 = vmpackc.low %vm204_vm6, %vm203_vm7  ;;  %2540 = vmatpush3.bf16.msra.mxu0 %v2768_v12 }
  0x8c   :  { %2459 = vmatprep.mubr.msk.bf16.mxu0 %vm2177_vm8, %v2857_v47  ;;  %2541 = vmatprep.subr.bf16.mxu0 %v2771_v15 }
  0x8d   :  { %v126_v50 = vpop.permute.xlu1 %125  ;;  %v123_v51 = vpop.permute.xlu0 %122 }
  0x8e   :  { %vm206_vm9 = vcmp.eq.s32.totalorder %v126_v50, %v3064_v44  ;;  %vm205_vm10 = vcmp.eq.s32.totalorder %v123_v51, %v3064_v44 }
  0x8f   :  { %vm2179_vm11 = vmpackc.low %vm206_vm9, %vm205_vm10  ;;  %2542 = vmatpush3.bf16.msra.mxu0 %v2771_v15 }
  0x90   :  { %2543 = vmatprep.subr.bf16.mxu0 %v2774_v17 }
  0x91   :  { %v132_v52 = vpop.permute.xlu1 %131  ;;  %v129_v53 = vpop.permute.xlu0 %128 }
  0x92   :  { %vm208_vm12 = vcmp.eq.s32.totalorder %v132_v52, %v3064_v44  ;;  %vm207_vm13 = vcmp.eq.s32.totalorder %v129_v53, %v3064_v44  ;;  %2460 = vmatmul.mubr.msk.bf16.gmra.mrb[4].mxu0 %vm2179_vm11, %v2857_v47 }
  0x93   :  { %vm2181_vm14 = vmpackc.low %vm208_vm12, %vm207_vm13  ;;  %2544 = vmatpush3.bf16.msra.mxu0 %v2774_v17 }
  0x94   :  { %2463 = vmatprep.mubr.msk.bf16.mxu0 %vm2181_vm14, %v2857_v47  ;;  %2545 = vmatprep.subr.bf16.mxu0 %v2777_v33 }
  0x95   :  { %v138_v54 = vpop.permute.xlu1 %137  ;;  %v135_v55 = vpop.permute.xlu0 %134 }
  0x96   :  { %vm210_vm15 = vcmp.eq.s32.totalorder %v138_v54, %v3064_v44  ;;  %vm209_vm0 = vcmp.eq.s32.totalorder %v135_v55, %v3064_v44 }
  0x97   :  { %vm2183_vm1 = vmpackc.low %vm210_vm15, %vm209_vm0  ;;  %2546 = vmatpush3.bf16.msra.mxu0 %v2777_v33 }
  0x99   :  { %v144_v56 = vpop.permute.xlu1 %143  ;;  %v141_v57 = vpop.permute.xlu0 %140 }
  0x9a   :  { %vm212_vm2 = vcmp.eq.s32.totalorder %v144_v56, %v3064_v44  ;;  %vm211_vm3 = vcmp.eq.s32.totalorder %v141_v57, %v3064_v44  ;;  %2464 = vmatmul.mubr.msk.bf16.gmra.mrb[8].mxu0 %vm2183_vm1, %v2857_v47 }
  0x9b   :  { %vm2185_vm4 = vmpackc.low %vm212_vm2, %vm211_vm3 }
  0x9c   :  { %2467 = vmatprep.mubr.msk.bf16.mxu0 %vm2185_vm4, %v2857_v47 }
  0x9d   :  { %v150_v58 = vpop.permute.xlu1 %149  ;;  %v147_v59 = vpop.permute.xlu0 %146 }
  0x9e   :  { %vm214_vm5 = vcmp.eq.s32.totalorder %v150_v58, %v3064_v44  ;;  %vm213_vm6 = vcmp.eq.s32.totalorder %v147_v59, %v3064_v44  ;;  %v2780_v59 = vld [vmem:[%s3810_s7 + $0x20] sm:$0xff]  }
  0x9f   :  { %vm2187_vm7 = vmpackc.low %vm214_vm5, %vm213_vm6  ;;  %2547 = vmatprep.subr.bf16.mxu0 %v2780_v59 }
  0xa0   :  { %2548 = vmatpush3.bf16.msra.mxu0 %v2780_v59 }
  0xa1   :  { %v156_v60 = vpop.permute.xlu1 %155  ;;  %v153_v61 = vpop.permute.xlu0 %152  ;;  %2549 = vmatprep.subr.bf16.mxu0 %v2781_v20 }
  0xa2   :  { %vm216_vm8 = vcmp.eq.s32.totalorder %v156_v60, %v3064_v44  ;;  %vm215_vm9 = vcmp.eq.s32.totalorder %v153_v61, %v3064_v44  ;;  %2468 = vmatmul.mubr.msk.bf16.gmra.mrb[12].mxu0 %vm2187_vm7, %v2857_v47 }
  0xa3   :  { %vm2189_vm10 = vmpackc.low %vm216_vm8, %vm215_vm9 }
  0xa4   :  { %2471 = vmatprep.mubr.msk.bf16.mxu0 %vm2189_vm10, %v2857_v47  ;;  %2550 = vmatpush3.bf16.msra.mxu0 %v2781_v20 }
  0xa5   :  { %v162_v62 = vpop.permute.xlu1 %161  ;;  %v159_v63 = vpop.permute.xlu0 %158 }
  0xa6   :  { %vm218_vm11 = vcmp.eq.s32.totalorder %v162_v62, %v3064_v44  ;;  %vm217_vm12 = vcmp.eq.s32.totalorder %v159_v63, %v3064_v44 }
  0xa7   :  { %vm2191_vm13 = vmpackc.low %vm218_vm11, %vm217_vm12 }
  0xa9   :  { %v168_v0 = vpop.permute.xlu1 %167  ;;  %v165_v1 = vpop.permute.xlu0 %164 }
  0xaa   :  { %vm220_vm14 = vcmp.eq.s32.totalorder %v168_v0, %v3064_v44  ;;  %vm219_vm15 = vcmp.eq.s32.totalorder %v165_v1, %v3064_v44  ;;  %2472 = vmatmul.mubr.msk.bf16.gmra.mrb[16].mxu0 %vm2191_vm13, %v2857_v47 }
  0xab   :  { %vm2193_vm0 = vmpackc.low %vm220_vm14, %vm219_vm15 }
  0xac   :  { %2475 = vmatprep.mubr.msk.bf16.mxu0 %vm2193_vm0, %v2857_v47  ;;  %vm504_vm0 = vcmask 1046528  }
  0xad   :  { %v174_v2 = vpop.permute.xlu1 %173  ;;  %v171_v3 = vpop.permute.xlu0 %170 }
  0xae   :  { %vm222_vm1 = vcmp.eq.s32.totalorder %v174_v2, %v3064_v44  ;;  %vm221_vm2 = vcmp.eq.s32.totalorder %v171_v3, %v3064_v44 }
  0xaf   :  { %vm2195_vm3 = vmpackc.low %vm222_vm1, %vm221_vm2  ;;  %vm538_vm1 = vcmask 1045504   ;;  %vm670_vm2 = vcmask 261120  }
  0xb1   :  { %v180_v4 = vpop.permute.xlu1 %179  ;;  %v177_v5 = vpop.permute.xlu0 %176 }
  0xb2   :  { %vm224_vm4 = vcmp.eq.s32.totalorder %v180_v4, %v3064_v44  ;;  %vm223_vm5 = vcmp.eq.s32.totalorder %v177_v5, %v3064_v44  ;;  %2476 = vmatmul.mubr.msk.bf16.gmra.mrb[20].mxu0 %vm2195_vm3, %v2857_v47  ;;  %vm687_vm3 = vcmask 523264  }
  0xb3   :  { %vm2197_vm6 = vmpackc.low %vm224_vm4, %vm223_vm5  ;;  %vm704_vm4 = vcmask 785408  }
  0xb4   :  { %2479 = vmatprep.mubr.msk.bf16.mxu0 %vm2197_vm6, %v2857_v47  ;;  %vm3392_vm5 = vmpackc.low %vm704_vm4, %vm704_vm4  ;;  %vm2861_vm6 = vmmov 0  }
  0xb5   :  { %v186_v6 = vpop.permute.xlu1 %185  ;;  %v183_v7 = vpop.permute.xlu0 %182 }
  0xb6   :  { %vm226_vm7 = vcmp.eq.s32.totalorder %v186_v6, %v3064_v44  ;;  %vm225_vm8 = vcmp.eq.s32.totalorder %v183_v7, %v3064_v44 }
  0xb7   :  { %vm2199_vm9 = vmpackc.low %vm226_vm7, %vm225_vm8  ;;  %vm1037_vm8 = vcmask 1041409  }
  0xb9   :  { %v192_v8 = vpop.permute.xlu1 %191  ;;  %v189_v9 = vpop.permute.xlu0 %188 }
  0xba   :  { %vm228_vm10 = vcmp.eq.s32.totalorder %v192_v8, %v3064_v44  ;;  %vm227_vm11 = vcmp.eq.s32.totalorder %v189_v9, %v3064_v44  ;;  %2480 = vmatmul.mubr.msk.bf16.gmra.mrb[24].mxu0 %vm2199_vm9, %v2857_v47  ;;  %vm1039_vm9 = vcmask 1042434  }
  0xbb   :  { %vm2201_vm12 = vmpackc.low %vm228_vm10, %vm227_vm11  ;;  %vm1041_vm10 = vcmask 1043459   ;;  %vm1043_vm11 = vcmask 1044484  }
  0xbc   :  { %2483 = vmatprep.mubr.msk.bf16.mxu0 %vm2201_vm12, %v2857_v47  ;;  %vm1045_vm12 = vcmask 1045509  }
  0xbd   :  { %v198_v10 = vpop.permute.xlu1 %197  ;;  %v195_v11 = vpop.permute.xlu0 %194 }
  0xbe   :  { %vm230_vm13 = vcmp.eq.s32.totalorder %v198_v10, %v3064_v44  ;;  %vm229_vm14 = vcmp.eq.s32.totalorder %v195_v11, %v3064_v44 }
  0xbf   :  { %vm2203_vm15 = vmpackc.low %vm230_vm13, %vm229_vm14  ;;  %vm1047_vm13 = vcmask 1046534   ;;  %vm1049_vm14 = vcmask 1047559  }
  0xc2   :  { %2484 = vmatmul.mubr.msk.bf16.gmra.mrb[28].mxu0 %vm2203_vm15, %v2857_v47  ;;  %vm2120_vm15 = vcmask 64512  }
 0x15d   :  { %v3141_v21 = vpop.f32.mrb[0].mxu0 }
 0x15e   :  { %v3143_v22 = vpop.f32.mrb[1].mxu0  ;;  %v508_v24 = vrot.slane %v3141_v21, 1  ;;  %v542_v25 = vrot.slane %v3141_v21, 2 }
 0x15f   :  { %v3145_v23 = vpop.f32.mrb[2].mxu0  ;;  %v505_v29 = vrot.slane %v3143_v22, 1  ;;  %v539_v30 = vrot.slane %v3143_v22, 2 }
 0x160   :  { %v510_v26 = vrot.slane %v3145_v23, 1  ;;  %v544_v27 = vrot.slane %v3145_v23, 2  ;;  %v3151_v28 = vpop.f32.mrb[3].mxu0 }
 0x161   :  { %v506_v31 = vrot.slane %v3151_v28, 1  ;;  %v540_v32 = vrot.slane %v3151_v28, 2 }
 0x162   :  { %v511_v35 = vsel %vm504_vm0, %v508_v24, %v510_v26  ;;  %v545_v36 = vsel %vm538_vm1, %v542_v25, %v544_v27 }
 0x163   :  { %v507_v37 = vsel %vm504_vm0, %v505_v29, %v506_v31  ;;  %v509_v38 = vsel %vm504_vm0, %v506_v31, %v508_v24  ;;  %v541_v39 = vsel %vm538_vm1, %v539_v30, %v540_v32  ;;  %v543_v40 = vsel %vm538_vm1, %v540_v32, %v542_v25 }
 0x164   :  { %v2600_v42 = vpack.i.bf16 %v509_v38, %v507_v37  ;;  %v2605_v43 = vpack.i.bf16 %v543_v40, %v541_v39 }
 0x165   :  { %v3169_v44 = vpop.f32.mrb[4].mxu0 }
 0x166   :  { %2601 = vrot.lane.b32.xlu0 %v2600_v42, %s2858_s23  ;;  %v3175_v46 = vpop.f32.mrb[5].mxu0  ;;  %v516_v50 = vrot.slane %v3169_v44, 1  ;;  %v550_v51 = vrot.slane %v3169_v44, 2 }
 0x167   :  { %v512_v47 = vrot.slane %v3175_v46, 1  ;;  %v546_v48 = vrot.slane %v3175_v46, 2  ;;  %v3179_v49 = vpop.f32.mrb[6].mxu0 }
 0x168   :  { %v518_v52 = vrot.slane %v3179_v49, 1  ;;  %v552_v53 = vrot.slane %v3179_v49, 2  ;;  %v3185_v54 = vpop.f32.mrb[7].mxu0 }
 0x169   :  { %v514_v55 = vrot.slane %v3185_v54, 1  ;;  %v548_v56 = vrot.slane %v3185_v54, 2  ;;  %v513_v57 = vsel %vm504_vm0, %v510_v26, %v512_v47  ;;  %v547_v58 = vsel %vm538_vm1, %v544_v27, %v546_v48 }
 0x16a   :  { %2606 = vrot.lane.b32.xlu0 %v2605_v43, %s2859_s25  ;;  %v2610_v60 = vpack.i.bf16 %v513_v57, %v511_v35  ;;  %v2615_v61 = vpack.i.bf16 %v547_v58, %v545_v36  ;;  %v519_v62 = vsel %vm504_vm0, %v516_v50, %v518_v52  ;;  %v553_v63 = vsel %vm538_vm1, %v550_v51, %v552_v53 }
 0x16b   :  { %v515_v0 = vsel %vm504_vm0, %v512_v47, %v514_v55  ;;  %v517_v1 = vsel %vm504_vm0, %v514_v55, %v516_v50  ;;  %v549_v2 = vsel %vm538_vm1, %v546_v48, %v548_v56  ;;  %v551_v3 = vsel %vm538_vm1, %v548_v56, %v550_v51 }
 0x16c   :  { %2611 = vrot.lane.b32.xlu1 %v2610_v60, %s2858_s23  ;;  %v2620_v4 = vpack.i.bf16 %v517_v1, %v515_v0  ;;  %v2625_v5 = vpack.i.bf16 %v551_v3, %v549_v2 }
 0x16d   :  { %v3202_v6 = vpop.f32.mrb[8].mxu0 }
 0x16e   :  { %2621 = vrot.lane.b32.xlu0 %v2620_v4, %s2858_s23  ;;  %v3205_v7 = vpop.f32.mrb[9].mxu0  ;;  %v524_v11 = vrot.slane %v3202_v6, 1  ;;  %v558_v12 = vrot.slane %v3202_v6, 2 }
 0x16f   :  { %v520_v8 = vrot.slane %v3205_v7, 1  ;;  %v554_v9 = vrot.slane %v3205_v7, 2  ;;  %v3209_v10 = vpop.f32.mrb[10].mxu0 }
 0x170   :  { %v526_v13 = vrot.slane %v3209_v10, 1  ;;  %v560_v14 = vrot.slane %v3209_v10, 2  ;;  %2616 = vrot.lane.b32.xlu1 %v2615_v61, %s2859_s25  ;;  %v3216_v15 = vpop.f32.mrb[11].mxu0 }
 0x171   :  { %v522_v16 = vrot.slane %v3216_v15, 1  ;;  %v556_v17 = vrot.slane %v3216_v15, 2  ;;  %v521_v18 = vsel %vm504_vm0, %v518_v52, %v520_v8  ;;  %v555_v19 = vsel %vm538_vm1, %v552_v53, %v554_v9  ;;  %v2782_v53 = vld [vmem:[%s3810_s7 + $0x30] sm:$0xff]  }
 0x172   :  { %2626 = vrot.lane.b32.xlu0 %v2625_v5, %s2859_s25  ;;  %v2630_v24 = vpack.i.bf16 %v521_v18, %v519_v62  ;;  %v2635_v25 = vpack.i.bf16 %v555_v19, %v553_v63  ;;  %v527_v26 = vsel %vm504_vm0, %v524_v11, %v526_v13  ;;  %v561_v27 = vsel %vm538_vm1, %v558_v12, %v560_v14 }
 0x173   :  { %v523_v29 = vsel %vm504_vm0, %v520_v8, %v522_v16  ;;  %v525_v30 = vsel %vm504_vm0, %v522_v16, %v524_v11  ;;  %v557_v31 = vsel %vm538_vm1, %v554_v9, %v556_v17  ;;  %v559_v32 = vsel %vm538_vm1, %v556_v17, %v558_v12  ;;  %2551 = vmatprep.subr.bf16.mxu0 %v2782_v53 }
 0x174   :  { %2631 = vrot.lane.b32.xlu1 %v2630_v24, %s2858_s23  ;;  %v2640_v33 = vpack.i.bf16 %v525_v30, %v523_v29  ;;  %v2645_v34 = vpack.i.bf16 %v559_v32, %v557_v31  ;;  %2552 = vmatpush3.bf16.msra.mxu0 %v2782_v53  ;;  %v2783_v24 = vld [vmem:[%s3810_s7 + $0x38] sm:$0xff]  }
 0x175   :  { %v3233_v35 = vpop.f32.mrb[12].mxu0  ;;  %2553 = vmatprep.subr.bf16.mxu0 %v2783_v24 }
 0x176   :  { %2641 = vrot.lane.b32.xlu0 %v2640_v33, %s2858_s23  ;;  %v3236_v36 = vpop.f32.mrb[13].mxu0  ;;  %v532_v40 = vrot.slane %v3233_v35, 1  ;;  %v566_v42 = vrot.slane %v3233_v35, 2 }
 0x177   :  { %v528_v37 = vrot.slane %v3236_v36, 1  ;;  %v562_v38 = vrot.slane %v3236_v36, 2  ;;  %v3240_v39 = vpop.f32.mrb[14].mxu0 }
 0x178   :  { %v534_v43 = vrot.slane %v3240_v39, 1  ;;  %v568_v45 = vrot.slane %v3240_v39, 2  ;;  %2636 = vrot.lane.b32.xlu1 %v2635_v25, %s2859_s25  ;;  %v3247_v47 = vpop.f32.mrb[15].mxu0  ;;  %2554 = vmatpush3.bf16.msra.mxu0 %v2783_v24 }
 0x179   :  { %v530_v48 = vrot.slane %v3247_v47, 1  ;;  %v564_v50 = vrot.slane %v3247_v47, 2  ;;  %v529_v51 = vsel %vm504_vm0, %v526_v13, %v528_v37  ;;  %v563_v52 = vsel %vm538_vm1, %v560_v14, %v562_v38 }
 0x17a   :  { %2646 = vrot.lane.b32.xlu0 %v2645_v34, %s2859_s25  ;;  %v2650_v55 = vpack.i.bf16 %v529_v51, %v527_v26  ;;  %v2655_v56 = vpack.i.bf16 %v563_v52, %v561_v27  ;;  %v535_v57 = vsel %vm504_vm0, %v532_v40, %v534_v43  ;;  %v537_v58 = vsel %vm504_vm0, %v534_v43, 0.0 }
 0x17b   :  { %v531_v59 = vsel %vm504_vm0, %v528_v37, %v530_v48  ;;  %v533_v60 = vsel %vm504_vm0, %v530_v48, %v532_v40  ;;  %v565_v61 = vsel %vm538_vm1, %v562_v38, %v564_v50  ;;  %v567_v62 = vsel %vm538_vm1, %v564_v50, %v566_v42 }
 0x17c   :  { %2651 = vrot.lane.b32.xlu1 %v2650_v55, %s2858_s23  ;;  %v2670_v63 = vpack.i.bf16 %v533_v60, %v531_v59  ;;  %v2675_v0 = vpack.i.bf16 %v567_v62, %v565_v61  ;;  %v2660_v1 = vpack.i.bf16 %v537_v58, %v535_v57  ;;  %v569_v2 = vsel %vm538_vm1, %v566_v42, %v568_v45 }
 0x17d   :  { %v3265_v3 = vpop.f32.mrb[16].mxu0  ;;  %v571_v4 = vsel %vm538_vm1, %v568_v45, 0.0 }
 0x17e   :  { %2671 = vrot.lane.b32.xlu0 %v2670_v63, %s2858_s23  ;;  %v3269_v5 = vpop.f32.mrb[17].mxu0  ;;  %v2665_v8 = vpack.i.bf16 %v571_v4, %v569_v2  ;;  %v1160_v11 = vrot.slane %v3265_v3, 1  ;;  %v1193_v12 = vrot.slane %v3265_v3, 2 }
 0x17f   :  { %v3271_v9 = vpop.f32.mrb[18].mxu0  ;;  %v1157_v17 = vrot.slane %v3269_v5, 1  ;;  %v1190_v18 = vrot.slane %v3269_v5, 2 }
 0x180   :  { %v1162_v13 = vrot.slane %v3271_v9, 1  ;;  %v1195_v14 = vrot.slane %v3271_v9, 2  ;;  %2656 = vrot.lane.b32.xlu1 %v2655_v56, %s2859_s25  ;;  %v3278_v16 = vpop.f32.mrb[19].mxu0 }
 0x181   :  { %v1158_v19 = vrot.slane %v3278_v16, 1  ;;  %v1191_v20 = vrot.slane %v3278_v16, 2 }
 0x182   :  { %2676 = vrot.lane.b32.xlu0 %v2675_v0, %s2859_s25  ;;  %v1163_v25 = vsel %vm504_vm0, %v1160_v11, %v1162_v13  ;;  %v1196_v26 = vsel %vm538_vm1, %v1193_v12, %v1195_v14 }
 0x183   :  { %v1159_v27 = vsel %vm504_vm0, %v1157_v17, %v1158_v19  ;;  %v1161_v29 = vsel %vm504_vm0, %v1158_v19, %v1160_v11  ;;  %v1192_v30 = vsel %vm538_vm1, %v1190_v18, %v1191_v20  ;;  %v1194_v31 = vsel %vm538_vm1, %v1191_v20, %v1193_v12 }
 0x184   :  { %2661 = vrot.lane.b32.xlu1 %v2660_v1, %s2858_s23  ;;  %v2680_v32 = vpack.i.bf16 %v1161_v29, %v1159_v27  ;;  %v2685_v33 = vpack.i.bf16 %v1194_v31, %v1192_v30 }
 0x185   :  { %v3295_v34 = vpop.f32.mrb[20].mxu0 }
 0x186   :  { %2681 = vrot.lane.b32.xlu0 %v2680_v32, %s2858_s23  ;;  %v3298_v37 = vpop.f32.mrb[21].mxu0  ;;  %v1168_v43 = vrot.slane %v3295_v34, 1  ;;  %v1201_v45 = vrot.slane %v3295_v34, 2 }
 0x187   :  { %v1164_v38 = vrot.slane %v3298_v37, 1  ;;  %v1197_v40 = vrot.slane %v3298_v37, 2  ;;  %v3302_v42 = vpop.f32.mrb[22].mxu0 }
 0x188   :  { %v1170_v48 = vrot.slane %v3302_v42, 1  ;;  %v1203_v50 = vrot.slane %v3302_v42, 2  ;;  %2666 = vrot.lane.b32.xlu1 %v2665_v8, %s2859_s25  ;;  %v3309_v51 = vpop.f32.mrb[23].mxu0 }
 0x189   :  { %v1166_v52 = vrot.slane %v3309_v51, 1  ;;  %v1199_v53 = vrot.slane %v3309_v51, 2  ;;  %v1165_v55 = vsel %vm504_vm0, %v1162_v13, %v1164_v38  ;;  %v1198_v56 = vsel %vm538_vm1, %v1195_v14, %v1197_v40 }
 0x18a   :  { %2686 = vrot.lane.b32.xlu0 %v2685_v33, %s2859_s25  ;;  %v2690_v57 = vpack.i.bf16 %v1165_v55, %v1163_v25  ;;  %v2695_v58 = vpack.i.bf16 %v1198_v56, %v1196_v26  ;;  %v1171_v59 = vsel %vm504_vm0, %v1168_v43, %v1170_v48  ;;  %v1204_v60 = vsel %vm538_vm1, %v1201_v45, %v1203_v50 }
 0x18b   :  { %v1167_v61 = vsel %vm504_vm0, %v1164_v38, %v1166_v52  ;;  %v1169_v62 = vsel %vm504_vm0, %v1166_v52, %v1168_v43  ;;  %v1200_v63 = vsel %vm538_vm1, %v1197_v40, %v1199_v53  ;;  %v1202_v0 = vsel %vm538_vm1, %v1199_v53, %v1201_v45 }
 0x18c   :  { %2691 = vrot.lane.b32.xlu1 %v2690_v57, %s2858_s23  ;;  %v2700_v1 = vpack.i.bf16 %v1169_v62, %v1167_v61  ;;  %v2705_v2 = vpack.i.bf16 %v1202_v0, %v1200_v63 }
 0x18d   :  { %v3323_v4 = vpop.f32.mrb[24].mxu0 }
 0x18e   :  { %2701 = vrot.lane.b32.xlu0 %v2700_v1, %s2858_s23  ;;  %v3326_v8 = vpop.f32.mrb[25].mxu0  ;;  %v1176_v14 = vrot.slane %v3323_v4, 1  ;;  %v1209_v17 = vrot.slane %v3323_v4, 2 }
 0x18f   :  { %v1172_v11 = vrot.slane %v3326_v8, 1  ;;  %v1205_v12 = vrot.slane %v3326_v8, 2  ;;  %v3330_v13 = vpop.f32.mrb[26].mxu0 }
 0x190   :  { %v1178_v18 = vrot.slane %v3330_v13, 1  ;;  %v1211_v19 = vrot.slane %v3330_v13, 2  ;;  %2696 = vrot.lane.b32.xlu1 %v2695_v58, %s2859_s25  ;;  %v3337_v20 = vpop.f32.mrb[27].mxu0 }
 0x191   :  { %v1174_v24 = vrot.slane %v3337_v20, 1  ;;  %v1207_v25 = vrot.slane %v3337_v20, 2  ;;  %v1173_v26 = vsel %vm504_vm0, %v1170_v48, %v1172_v11  ;;  %v1206_v27 = vsel %vm538_vm1, %v1203_v50, %v1205_v12 }
 0x192   :  { %2706 = vrot.lane.b32.xlu0 %v2705_v2, %s2859_s25  ;;  %v2710_v29 = vpack.i.bf16 %v1173_v26, %v1171_v59  ;;  %v2715_v30 = vpack.i.bf16 %v1206_v27, %v1204_v60  ;;  %v1179_v31 = vsel %vm504_vm0, %v1176_v14, %v1178_v18  ;;  %v1212_v32 = vsel %vm538_vm1, %v1209_v17, %v1211_v19 }
 0x193   :  { %v1175_v33 = vsel %vm504_vm0, %v1172_v11, %v1174_v24  ;;  %v1177_v38 = vsel %vm504_vm0, %v1174_v24, %v1176_v14  ;;  %v1208_v40 = vsel %vm538_vm1, %v1205_v12, %v1207_v25  ;;  %v1210_v43 = vsel %vm538_vm1, %v1207_v25, %v1209_v17 }
 0x194   :  { %2711 = vrot.lane.b32.xlu1 %v2710_v29, %s2858_s23  ;;  %v2720_v45 = vpack.i.bf16 %v1177_v38, %v1175_v33  ;;  %v2725_v48 = vpack.i.bf16 %v1210_v43, %v1208_v40 }
 0x195   :  { %v3351_v50 = vpop.f32.mrb[28].mxu0 }
 0x196   :  { %2721 = vrot.lane.b32.xlu0 %v2720_v45, %s2858_s23  ;;  %v3354_v52 = vpop.f32.mrb[29].mxu0  ;;  %v1184_v57 = vrot.slane %v3351_v50, 1  ;;  %v1217_v58 = vrot.slane %v3351_v50, 2 }
 0x197   :  { %v1180_v53 = vrot.slane %v3354_v52, 1  ;;  %v1213_v55 = vrot.slane %v3354_v52, 2  ;;  %v3358_v56 = vpop.f32.mrb[30].mxu0 }
 0x198   :  { %v1186_v59 = vrot.slane %v3358_v56, 1  ;;  %v1219_v60 = vrot.slane %v3358_v56, 2  ;;  %2716 = vrot.lane.b32.xlu1 %v2715_v30, %s2859_s25  ;;  %v3365_v61 = vpop.f32.mrb[31].mxu0 }
 0x199   :  { %v1182_v62 = vrot.slane %v3365_v61, 1  ;;  %v1215_v63 = vrot.slane %v3365_v61, 2  ;;  %v1181_v0 = vsel %vm504_vm0, %v1178_v18, %v1180_v53  ;;  %v1214_v1 = vsel %vm538_vm1, %v1211_v19, %v1213_v55 }
 0x19a   :  { %2726 = vrot.lane.b32.xlu0 %v2725_v48, %s2859_s25  ;;  %v2730_v2 = vpack.i.bf16 %v1181_v0, %v1179_v31  ;;  %v2735_v11 = vpack.i.bf16 %v1214_v1, %v1212_v32  ;;  %v1187_v12 = vsel %vm504_vm0, %v1184_v57, %v1186_v59  ;;  %v1189_v14 = vsel %vm504_vm0, %v1186_v59, 0.0  ;;  %v2787_v59 = vld [vmem:[%s3808_s5 + $0x18] sm:$0xff]  }
 0x19b   :  { %v1183_v17 = vsel %vm504_vm0, %v1180_v53, %v1182_v62  ;;  %v1185_v24 = vsel %vm504_vm0, %v1182_v62, %v1184_v57  ;;  %v1216_v25 = vsel %vm538_vm1, %v1213_v55, %v1215_v63  ;;  %v1218_v26 = vsel %vm538_vm1, %v1215_v63, %v1217_v58 }
 0x19c   :  { %2731 = vrot.lane.b32.xlu1 %v2730_v2, %s2858_s23  ;;  %v2745_v18 = vpack.i.bf16 %v1185_v24, %v1183_v17  ;;  %v2750_v19 = vpack.i.bf16 %v1218_v26, %v1216_v25  ;;  %v2740_v27 = vpack.i.bf16 %v1189_v14, %v1187_v12  ;;  %v1220_v29 = vsel %vm538_vm1, %v1217_v58, %v1219_v60 }
 0x19d   :  { %v1222_v30 = vsel %vm538_vm1, %v1219_v60, 0.0 }
 0x19e   :  { %2746 = vrot.lane.b32.xlu0 %v2745_v18, %s2858_s23  ;;  %v2755_v31 = vpack.i.bf16 %v1222_v30, %v1220_v29 }
 0x1a0   :  { %2736 = vrot.lane.b32.xlu1 %v2735_v11, %s2859_s25 }
 0x1a2   :  { %2751 = vrot.lane.b32.xlu0 %v2750_v19, %s2859_s25 }
 0x1a4   :  { %2741 = vrot.lane.b32.xlu1 %v2740_v27, %s2858_s23 }
 0x1a8   :  { %2756 = vrot.lane.b32.xlu1 %v2755_v31, %s2859_s25 }
 0x1d8   :  { %v2602_v32 = vpop.permute.xlu0 %2601 }
 0x1d9   :  { %v2604_v33 = vunpack.i.h.bf16 %v2602_v32  ;;  %v2603_v38 = vunpack.i.l.bf16 %v2602_v32 }
 0x1db   :  { %v671_v53 = vsel %vm670_vm2, %v3143_v22, %v2603_v38  ;;  %v672_v55 = vsel %vm670_vm2, %v3151_v28, %v2604_v33 }
 0x1dc   :  { %v2607_v40 = vpop.permute.xlu0 %2606 }
 0x1dd   :  { %v2609_v43 = vunpack.i.h.bf16 %v2607_v40  ;;  %v2608_v45 = vunpack.i.l.bf16 %v2607_v40 }
 0x1de   :  { %v2612_v48 = vpop.permute.xlu1 %2611 }
 0x1df   :  { %v688_v57 = vsel %vm687_vm3, %v671_v53, %v2608_v45  ;;  %v689_v58 = vsel %vm687_vm3, %v672_v55, %v2609_v43  ;;  %v2614_v60 = vunpack.i.h.bf16 %v2612_v48  ;;  %v2613_v62 = vunpack.i.l.bf16 %v2612_v48 }
 0x1e0   :  { %v2622_v63 = vpop.permute.xlu0 %2621  ;;  %v2215_v0 = vpack.c.bf16 %v689_v58, %v688_v57 }
 0x1e1   :  { %v2624_v1 = vunpack.i.h.bf16 %v2622_v63  ;;  %v2623_v2 = vunpack.i.l.bf16 %v2622_v63  ;;  %v674_v12 = vsel %vm670_vm2, %v3145_v23, %v2614_v60  ;;  %v673_v14 = vsel %vm670_vm2, %v3141_v21, %v2613_v62 }
 0x1e2   :  { %2503 = vmatprep.mubr.msk.bf16.mxu1 %vm3392_vm5, %v2215_v0  ;;  %v2617_v22 = vpop.permute.xlu1 %2616 }
 0x1e3   :  { %v2619_v11 = vunpack.i.h.bf16 %v2617_v22  ;;  %v2618_v28 = vunpack.i.l.bf16 %v2617_v22  ;;  %v676_v19 = vsel %vm670_vm2, %v3185_v54, %v2624_v1  ;;  %v675_v27 = vsel %vm670_vm2, %v3175_v46, %v2623_v2 }
 0x1e4   :  { %v2627_v17 = vpop.permute.xlu0 %2626 }
 0x1e5   :  { %v690_v24 = vsel %vm687_vm3, %v673_v14, %v2618_v28  ;;  %v691_v25 = vsel %vm687_vm3, %v674_v12, %v2619_v11  ;;  %v2629_v26 = vunpack.i.h.bf16 %v2627_v17  ;;  %v2628_v18 = vunpack.i.l.bf16 %v2627_v17 }
 0x1e6   :  { %v2218_v29 = vpack.c.bf16 %v691_v25, %v690_v24  ;;  %v2632_v30 = vpop.permute.xlu1 %2631 }
 0x1e7   :  { %v692_v23 = vsel %vm687_vm3, %v675_v27, %v2628_v18  ;;  %v693_v31 = vsel %vm687_vm3, %v676_v19, %v2629_v26  ;;  %v2634_v32 = vunpack.i.h.bf16 %v2632_v30  ;;  %v2633_v33 = vunpack.i.l.bf16 %v2632_v30 }
 0x1e8   :  { %v2221_v21 = vpack.c.bf16 %v693_v31, %v692_v23  ;;  %2504 = vmatmul.mubr.msk.bf16.vlgmr.msra.gmra.mrb[0].mxu1 %vm3392_vm5, %v2218_v29  ;;  %v2642_v38 = vpop.permute.xlu0 %2641 }
 0x1e9   :  { %v2644_v40 = vunpack.i.h.bf16 %v2642_v38  ;;  %v2643_v43 = vunpack.i.l.bf16 %v2642_v38  ;;  %v678_v48 = vsel %vm670_vm2, %v3179_v49, %v2634_v32  ;;  %v677_v53 = vsel %vm670_vm2, %v3169_v44, %v2633_v33 }
 0x1ea   :  { %2507 = vmatprep.mubr.msk.bf16.mxu1 %vm3392_vm5, %v2221_v21  ;;  %v2637_v54 = vpop.permute.xlu1 %2636 }
 0x1eb   :  { %v2639_v46 = vunpack.i.h.bf16 %v2637_v54  ;;  %v2638_v45 = vunpack.i.l.bf16 %v2637_v54  ;;  %v680_v63 = vsel %vm670_vm2, %v3216_v15, %v2644_v40  ;;  %v679_v0 = vsel %vm670_vm2, %v3205_v7, %v2643_v43 }
 0x1ec   :  { %v2647_v55 = vpop.permute.xlu0 %2646 }
 0x1ed   :  { %v694_v57 = vsel %vm687_vm3, %v677_v53, %v2638_v45  ;;  %v695_v58 = vsel %vm687_vm3, %v678_v48, %v2639_v46  ;;  %v2649_v60 = vunpack.i.h.bf16 %v2647_v55  ;;  %v2648_v62 = vunpack.i.l.bf16 %v2647_v55 }
 0x1ee   :  { %v2224_v1 = vpack.c.bf16 %v695_v58, %v694_v57  ;;  %v2652_v2 = vpop.permute.xlu1 %2651 }
 0x1ef   :  { %v696_v49 = vsel %vm687_vm3, %v679_v0, %v2648_v62  ;;  %v697_v22 = vsel %vm687_vm3, %v680_v63, %v2649_v60  ;;  %v2654_v11 = vunpack.i.h.bf16 %v2652_v2  ;;  %v2653_v28 = vunpack.i.l.bf16 %v2652_v2 }
 0x1f0   :  { %v2227_v44 = vpack.c.bf16 %v697_v22, %v696_v49  ;;  %2508 = vmatmul.mubr.msk.bf16.gmra.mrb[4].mxu1 %vm3392_vm5, %v2224_v1  ;;  %v2672_v12 = vpop.permute.xlu0 %2671 }
 0x1f1   :  { %v2674_v14 = vunpack.i.h.bf16 %v2672_v12  ;;  %v2673_v17 = vunpack.i.l.bf16 %v2672_v12  ;;  %v682_v25 = vsel %vm670_vm2, %v3209_v10, %v2654_v11  ;;  %v681_v26 = vsel %vm670_vm2, %v3202_v6, %v2653_v28 }
 0x1f2   :  { %2511 = vmatprep.mubr.msk.bf16.mxu1 %vm3392_vm5, %v2227_v44  ;;  %v2657_v15 = vpop.permute.xlu1 %2656 }
 0x1f3   :  { %v2659_v7 = vunpack.i.h.bf16 %v2657_v15  ;;  %v2658_v24 = vunpack.i.l.bf16 %v2657_v15  ;;  %v684_v23 = vsel %vm670_vm2, %v3247_v47, %v2674_v14  ;;  %v683_v31 = vsel %vm670_vm2, %v3236_v36, %v2673_v17 }
 0x1f4   :  { %v2677_v18 = vpop.permute.xlu0 %2676 }
 0x1f5   :  { %v698_v19 = vsel %vm687_vm3, %v681_v26, %v2658_v24  ;;  %v699_v27 = vsel %vm687_vm3, %v682_v25, %v2659_v7  ;;  %v2679_v29 = vunpack.i.h.bf16 %v2677_v18  ;;  %v2678_v30 = vunpack.i.l.bf16 %v2677_v18 }
 0x1f6   :  { %v2230_v21 = vpack.c.bf16 %v699_v27, %v698_v19  ;;  %v2662_v32 = vpop.permute.xlu1 %2661 }
 0x1f7   :  { %v700_v10 = vsel %vm687_vm3, %v683_v31, %v2678_v30  ;;  %v701_v33 = vsel %vm687_vm3, %v684_v23, %v2679_v29  ;;  %v2664_v38 = vunpack.i.h.bf16 %v2662_v32  ;;  %v2663_v40 = vunpack.i.l.bf16 %v2662_v32 }
 0x1f8   :  { %v2233_v6 = vpack.c.bf16 %v701_v33, %v700_v10  ;;  %2512 = vmatmul.mubr.msk.bf16.gmra.mrb[8].mxu1 %vm3392_vm5, %v2230_v21  ;;  %v2682_v43 = vpop.permute.xlu0 %2681 }
 0x1f9   :  { %v2684_v54 = vunpack.i.h.bf16 %v2682_v43  ;;  %v2683_v46 = vunpack.i.l.bf16 %v2682_v43  ;;  %v686_v48 = vsel %vm670_vm2, %v3240_v39, %v2664_v38  ;;  %v685_v53 = vsel %vm670_vm2, %v3233_v35, %v2663_v40 }
 0x1fa   :  { %v2667_v45 = vpop.permute.xlu1 %2666  ;;  %2515 = vmatprep.mubr.msk.bf16.mxu1 %vm3392_vm5, %v2233_v6 }
 0x1fb   :  { %v2669_v36 = vunpack.i.h.bf16 %v2667_v45  ;;  %v2668_v47 = vunpack.i.l.bf16 %v2667_v45  ;;  %v1322_v63 = vsel %vm670_vm2, %v3278_v16, %v2684_v54  ;;  %v1321_v0 = vsel %vm670_vm2, %v3269_v5, %v2683_v46 }
 0x1fc   :  { %v2687_v55 = vpop.permute.xlu0 %2686 }
 0x1fd   :  { %v702_v57 = vsel %vm687_vm3, %v685_v53, %v2668_v47  ;;  %v703_v58 = vsel %vm687_vm3, %v686_v48, %v2669_v36  ;;  %v2689_v60 = vunpack.i.h.bf16 %v2687_v55  ;;  %v2688_v62 = vunpack.i.l.bf16 %v2687_v55 }
 0x1fe   :  { %v2236_v1 = vpack.c.bf16 %v703_v58, %v702_v57  ;;  %v2692_v2 = vpop.permute.xlu1 %2691 }
 0x1ff   :  { %v1337_v39 = vsel %vm687_vm3, %v1321_v0, %v2688_v62  ;;  %v1338_v49 = vsel %vm687_vm3, %v1322_v63, %v2689_v60  ;;  %v2694_v22 = vunpack.i.h.bf16 %v2692_v2  ;;  %v2693_v44 = vunpack.i.l.bf16 %v2692_v2 }
 0x200   :  { %v2257_v35 = vpack.c.bf16 %v1338_v49, %v1337_v39  ;;  %2516 = vmatmul.mubr.msk.bf16.gmra.mrb[12].mxu1 %vm3392_vm5, %v2236_v1  ;;  %v2702_v11 = vpop.permute.xlu0 %2701 }
 0x201   :  { %v2704_v28 = vunpack.i.h.bf16 %v2702_v11  ;;  %v2703_v12 = vunpack.i.l.bf16 %v2702_v11  ;;  %v1324_v17 = vsel %vm670_vm2, %v3271_v9, %v2694_v22  ;;  %v1323_v15 = vsel %vm670_vm2, %v3265_v3, %v2693_v44 }
 0x202   :  { %2555 = vmatprep.mubr.msk.bf16.mxu0 %vm3392_vm5, %v2257_v35  ;;  %v2697_v16 = vpop.permute.xlu1 %2696 }
 0x203   :  { %v2699_v5 = vunpack.i.h.bf16 %v2697_v16  ;;  %v2698_v14 = vunpack.i.l.bf16 %v2697_v16  ;;  %v1326_v19 = vsel %vm670_vm2, %v3309_v51, %v2704_v28  ;;  %v1325_v27 = vsel %vm670_vm2, %v3298_v37, %v2703_v12 }
 0x204   :  { %v2707_v7 = vpop.permute.xlu0 %2706 }
 0x205   :  { %v1339_v24 = vsel %vm687_vm3, %v1323_v15, %v2698_v14  ;;  %v1340_v25 = vsel %vm687_vm3, %v1324_v17, %v2699_v5  ;;  %v2709_v26 = vunpack.i.h.bf16 %v2707_v7  ;;  %v2708_v18 = vunpack.i.l.bf16 %v2707_v7 }
 0x206   :  { %v2260_v29 = vpack.c.bf16 %v1340_v25, %v1339_v24  ;;  %v2712_v30 = vpop.permute.xlu1 %2711 }
 0x207   :  { %v1341_v9 = vsel %vm687_vm3, %v1325_v27, %v2708_v18  ;;  %v1342_v23 = vsel %vm687_vm3, %v1326_v19, %v2709_v26  ;;  %v2714_v31 = vunpack.i.h.bf16 %v2712_v30  ;;  %v2713_v21 = vunpack.i.l.bf16 %v2712_v30  ;;  %v2784_v27 = vld [vmem:[%s3808_s5] sm:$0xff]  }
 0x208   :  { %v2263_v3 = vpack.c.bf16 %v1342_v23, %v1341_v9  ;;  %2556 = vmatmul.mubr.msk.bf16.vlgmr.msra.gmra.mrb[32].mxu0 %vm3392_vm5, %v2260_v29  ;;  %v2722_v32 = vpop.permute.xlu0 %2721  ;;  %v2860_v29 = vmov 0.0   ;;  %v2788_v30 = vld [vmem:[%s3808_s5 + $0x20] sm:$0xff]   ;;  %v2789_v9 = vld [vmem:[%s3808_s5 + $0x28] sm:$0xff]   ;;  %v2790_v23 = vld [vmem:[%s3808_s5 + $0x30] sm:$0xff]  }
 0x209   :  { %v2724_v10 = vunpack.i.h.bf16 %v2722_v32  ;;  %v2723_v33 = vunpack.i.l.bf16 %v2722_v32  ;;  %v1328_v38 = vsel %vm670_vm2, %v3302_v42, %v2714_v31  ;;  %v1327_v40 = vsel %vm670_vm2, %v3295_v34, %v2713_v21  ;;  %2519 = vmatprep.subr.bf16.mxu1 %v2860_v29  ;;  %2535 = vmatprep.mubr.msk.bf16.mxu1 %vm2861_vm6, %v2860_v29  ;;  %v3559_v21 = vld [vmem:[%s3807_s4] ss:$0 sm:$0xff] }
 0x20a   :  { %2559 = vmatprep.mubr.msk.bf16.mxu0 %vm3392_vm5, %v2263_v3  ;;  %v2717_v51 = vpop.permute.xlu1 %2716  ;;  %2520 = vmatpush3.bf16.msra.mxu1 %v2784_v27  ;;  %v2791_v3 = vld [vmem:[%s3808_s5 + $0x38] sm:$0xff]   ;;  %v3554_v31 = vshrl.u32 %v101_v41, 7 }
 0x20b   :  { %v2719_v37 = vunpack.i.h.bf16 %v2717_v51  ;;  %v2718_v6 = vunpack.i.l.bf16 %v2717_v51  ;;  %v1330_v47 = vsel %vm670_vm2, %v3337_v20, %v2724_v10  ;;  %v1329_v48 = vsel %vm670_vm2, %v3326_v8, %v2723_v33  ;;  %2521 = vmatprep.subr.bf16.mxu1 %v2860_v29 }
 0x20c   :  { %v2727_v43 = vpop.permute.xlu0 %2726  ;;  %v3562_v10 = vadd.s32 8, %v3554_v31 }
 0x20d   :  { %v1343_v54 = vsel %vm687_vm3, %v1327_v40, %v2718_v6  ;;  %v1344_v46 = vsel %vm687_vm3, %v1328_v38, %v2719_v37  ;;  %v2729_v45 = vunpack.i.h.bf16 %v2727_v43  ;;  %v2728_v36 = vunpack.i.l.bf16 %v2727_v43 }
 0x20e   :  { %v2266_v53 = vpack.c.bf16 %v1344_v46, %v1343_v54  ;;  %v2732_v55 = vpop.permute.xlu1 %2731  ;;  %vm917_vm7 = vcmp.lt.s32.totalorder %v3562_v10, 14 }
 0x20f   :  { %v1345_v42 = vsel %vm687_vm3, %v1329_v48, %v2728_v36  ;;  %v1346_v57 = vsel %vm687_vm3, %v1330_v47, %v2729_v45  ;;  %v2734_v58 = vunpack.i.h.bf16 %v2732_v55  ;;  %v2733_v60 = vunpack.i.l.bf16 %v2732_v55 }
 0x210   :  { %v2269_v34 = vpack.c.bf16 %v1346_v57, %v1345_v42  ;;  %2560 = vmatmul.mubr.msk.bf16.gmra.mrb[36].mxu0 %vm3392_vm5, %v2266_v53  ;;  %v2747_v62 = vpop.permute.xlu0 %2746 }
 0x211   :  { %v2749_v63 = vunpack.i.h.bf16 %v2747_v62  ;;  %v2748_v0 = vunpack.i.l.bf16 %v2747_v62  ;;  %v1332_v2 = vsel %vm670_vm2, %v3330_v13, %v2734_v58  ;;  %v1331_v39 = vsel %vm670_vm2, %v3323_v4, %v2733_v60 }
 0x212   :  { %2563 = vmatprep.mubr.msk.bf16.mxu0 %vm3392_vm5, %v2269_v34  ;;  %v2737_v20 = vpop.permute.xlu1 %2736 }
 0x213   :  { %v2739_v8 = vunpack.i.h.bf16 %v2737_v20  ;;  %v2738_v1 = vunpack.i.l.bf16 %v2737_v20  ;;  %v1334_v28 = vsel %vm670_vm2, %v3365_v61, %v2749_v63  ;;  %v1333_v12 = vsel %vm670_vm2, %v3354_v52, %v2748_v0 }
 0x214   :  { %v2752_v49 = vpop.permute.xlu0 %2751 }
 0x215   :  { %v1347_v35 = vsel %vm687_vm3, %v1331_v39, %v2738_v1  ;;  %v1348_v22 = vsel %vm687_vm3, %v1332_v2, %v2739_v8  ;;  %v2754_v44 = vunpack.i.h.bf16 %v2752_v49  ;;  %v2753_v11 = vunpack.i.l.bf16 %v2752_v49 }
 0x216   :  { %v2272_v16 = vpack.c.bf16 %v1348_v22, %v1347_v35  ;;  %v2742_v5 = vpop.permute.xlu1 %2741 }
 0x217   :  { %v1349_v13 = vsel %vm687_vm3, %v1333_v12, %v2753_v11  ;;  %v1350_v14 = vsel %vm687_vm3, %v1334_v28, %v2754_v44  ;;  %v2744_v17 = vunpack.i.h.bf16 %v2742_v5  ;;  %v2743_v15 = vunpack.i.l.bf16 %v2742_v5 }
 0x218   :  { %v2275_v4 = vpack.c.bf16 %v1350_v14, %v1349_v13  ;;  %2564 = vmatmul.mubr.msk.bf16.gmra.mrb[40].mxu0 %vm3392_vm5, %v2272_v16 }
 0x219   :  { %v1336_v52 = vsel %vm670_vm2, %v3358_v56, %v2744_v17  ;;  %v1335_v25 = vsel %vm670_vm2, %v3351_v50, %v2743_v15  ;;  %v2785_v50 = vld [vmem:[%s3808_s5 + $0x8] sm:$0xff]   ;;  %v2786_v56 = vld [vmem:[%s3808_s5 + $0x10] sm:$0xff]  }
 0x21a   :  { %v2757_v7 = vpop.permute.xlu1 %2756  ;;  %2567 = vmatprep.mubr.msk.bf16.mxu0 %vm3392_vm5, %v2275_v4  ;;  %2522 = vmatpush3.bf16.msra.mxu1 %v2785_v50 }
 0x21b   :  { %v2759_v61 = vunpack.i.h.bf16 %v2757_v7  ;;  %v2758_v24 = vunpack.i.l.bf16 %v2757_v7  ;;  %2523 = vmatprep.subr.bf16.mxu1 %v2860_v29 }
 0x21d   :  { %v1351_v26 = vsel %vm687_vm3, %v1335_v25, %v2758_v24  ;;  %v1352_v18 = vsel %vm687_vm3, %v1336_v52, %v2759_v61 }
 0x21e   :  { %v2278_v19 = vpack.c.bf16 %v1352_v18, %v1351_v26  ;;  %2524 = vmatpush3.bf16.msra.mxu1 %v2786_v56 }
 0x21f   :  { %2525 = vmatprep.subr.bf16.mxu1 %v2860_v29 }
 0x220   :  { %2568 = vmatmul.mubr.msk.bf16.gmra.mrb[44].mxu0 %vm3392_vm5, %v2278_v19 }
 0x222   :  { %2526 = vmatpush3.bf16.msra.mxu1 %v2787_v59 }
 0x223   :  { %2527 = vmatprep.subr.bf16.mxu1 %v2860_v29 }
 0x226   :  { %2528 = vmatpush3.bf16.msra.mxu1 %v2788_v30 }
 0x227   :  { %2529 = vmatprep.subr.bf16.mxu1 %v2860_v29 }
 0x22a   :  { %2530 = vmatpush3.bf16.msra.mxu1 %v2789_v9 }
 0x22b   :  { %2531 = vmatprep.subr.bf16.mxu1 %v2860_v29 }
 0x22e   :  { %2532 = vmatpush3.bf16.msra.mxu1 %v2790_v23 }
 0x22f   :  { %2533 = vmatprep.subr.bf16.mxu1 %v2860_v29 }
 0x232   :  { %2534 = vmatpush3.bf16.msra.mxu1 %v2791_v3 }
 0x233   :  { %2571 = vmatprep.subr.bf16.mxu1 %v2860_v29 }
 0x2bb   :  { %v2505_v32 = vpop.f32.mrb[0].mxu1 }
 0x2bc   :  { %v834_v33 = vpop.f32.mrb[1].mxu1  ;;  %v843_v51 = vadd.f32 %v2505_v32, %v3559_v21 }
 0x2bd   :  { %v2506_v37 = vpop.f32.mrb[2].mxu1  ;;  %v835_v6 = vadd.f32 %v3559_v21, %v834_v33 }
 0x2be   :  { %v846_v38 = vadd.f32 %v2506_v37, %v3559_v21  ;;  %v837_v40 = vpop.f32.mrb[3].mxu1  ;;  %v899_v54 = vmax.f32 %v843_v51, 0.0 }
 0x2bf   :  { %v838_v41 = vadd.f32 %v3559_v21, %v837_v40  ;;  %v897_v45 = vmax.f32 %v835_v6, 0.0 }
 0x2c0   :  { %v900_v43 = vmax.f32 %v846_v38, 0.0 }
 0x2c1   :  { %v898_v46 = vmax.f32 %v838_v41, 0.0 }
 0x2c2   :  { %v921_v36 = vsel %vm917_vm7, %v900_v43, 0.0 }
 0x2c3   :  { %v941_v47 = vmax.f32 %v899_v54, %v921_v36  ;;  %v919_v48 = vsel %vm917_vm7, %v898_v46, 0.0  ;;  %v2509_v53 = vpop.f32.mrb[4].mxu1 }
 0x2c4   :  { %v934_v55 = vmax.f32 %v897_v45, %v919_v48  ;;  %v850_v42 = vpop.f32.mrb[5].mxu1  ;;  %v859_v34 = vadd.f32 %v2509_v53, %v3559_v21 }
 0x2c5   :  { %v942_v57 = vrot.slane %v941_v47, 4  ;;  %v2510_v58 = vpop.f32.mrb[6].mxu1  ;;  %v851_v62 = vadd.f32 %v3559_v21, %v850_v42 }
 0x2c6   :  { %v935_v60 = vrot.slane %v934_v55, 4  ;;  %v862_v63 = vadd.f32 %v2510_v58, %v3559_v21  ;;  %v853_v0 = vpop.f32.mrb[7].mxu1  ;;  %v903_v49 = vmax.f32 %v859_v34, 0.0 }
 0x2c7   :  { %v943_v20 = vmax.f32 %v941_v47, %v942_v57  ;;  %v854_v8 = vadd.f32 %v3559_v21, %v853_v0  ;;  %v901_v44 = vmax.f32 %v851_v62, 0.0 }
 0x2c8   :  { %v936_v1 = vmax.f32 %v934_v55, %v935_v60  ;;  %v904_v2 = vmax.f32 %v862_v63, 0.0 }
 0x2c9   :  { %v944_v39 = vrot.slane %v943_v20, 2  ;;  %v902_v35 = vmax.f32 %v854_v8, 0.0 }
 0x2ca   :  { %v937_v22 = vrot.slane %v936_v1, 2  ;;  %v925_v11 = vsel %vm917_vm7, %v904_v2, 0.0 }
 0x2cb   :  { %v945_v28 = vmax.f32 %v943_v20, %v944_v39  ;;  %v955_v12 = vmax.f32 %v903_v49, %v925_v11  ;;  %v923_v16 = vsel %vm917_vm7, %v902_v35, 0.0  ;;  %v2513_v5 = vpop.f32.mrb[8].mxu1 }
 0x2cc   :  { %v938_v13 = vmax.f32 %v936_v1, %v937_v22  ;;  %v948_v14 = vmax.f32 %v901_v44, %v923_v16  ;;  %v866_v4 = vpop.f32.mrb[9].mxu1  ;;  %v875_v7 = vadd.f32 %v2513_v5, %v3559_v21 }
 0x2cd   :  { %v946_v17 = vrot.slane %v945_v28, 1  ;;  %v956_v15 = vrot.slane %v955_v12, 4  ;;  %v2514_v61 = vpop.f32.mrb[10].mxu1  ;;  %v867_v25 = vadd.f32 %v3559_v21, %v866_v4 }
 0x2ce   :  { %v939_v24 = vrot.slane %v938_v13, 1  ;;  %v949_v52 = vrot.slane %v948_v14, 4  ;;  %v878_v26 = vadd.f32 %v2514_v61, %v3559_v21  ;;  %v869_v18 = vpop.f32.mrb[11].mxu1  ;;  %v907_v3 = vmax.f32 %v875_v7, 0.0 }
 0x2cf   :  { %v947_v19 = vmax.f32 %v945_v28, %v946_v17  ;;  %v957_v27 = vmax.f32 %v955_v12, %v956_v15  ;;  %v870_v50 = vadd.f32 %v3559_v21, %v869_v18  ;;  %v905_v37 = vmax.f32 %v867_v25, 0.0  ;;  %v3597_v12 = vld [vmem:[%s3811_s8] ss:$0 sm:$0xff] }
 0x2d0   :  { %v940_v56 = vmax.f32 %v938_v13, %v939_v24  ;;  %v950_v59 = vmax.f32 %v948_v14, %v949_v52  ;;  %v908_v30 = vmax.f32 %v878_v26, 0.0 }
 0x2d1   :  { %v991_v9 = vpack.c.bf16 %v947_v19, %v947_v19  ;;  %v958_v23 = vrot.slane %v957_v27, 2  ;;  %v906_v32 = vmax.f32 %v870_v50, 0.0 }
 0x2d2   :  { %v990_v33 = vpack.c.bf16 %v940_v56, %v940_v56  ;;  %v951_v51 = vrot.slane %v950_v59, 2  ;;  %v929_v6 = vsel %vm917_vm7, %v908_v30, 0.0 }
 0x2d3   :  { %v1030_v38 = vunpack.c.l.b16 %v991_v9  ;;  %v959_v40 = vmax.f32 %v957_v27, %v958_v23  ;;  %v969_v41 = vmax.f32 %v907_v3, %v929_v6  ;;  %v927_v43 = vsel %vm917_vm7, %v906_v32, 0.0  ;;  %v2517_v54 = vpop.f32.mrb[12].mxu1 }
 0x2d4   :  { %v1029_v46 = vunpack.c.l.b16 %v990_v33  ;;  %v952_v45 = vmax.f32 %v950_v59, %v951_v51  ;;  %v962_v36 = vmax.f32 %v905_v37, %v927_v43  ;;  %v882_v47 = vpop.f32.mrb[13].mxu1  ;;  %v891_v58 = vadd.f32 %v2517_v54, %v3559_v21 }
 0x2d5   :  { %v960_v48 = vrot.slane %v959_v40, 1  ;;  %v970_v53 = vrot.slane %v969_v41, 4  ;;  %v2518_v55 = vpop.f32.mrb[14].mxu1  ;;  %v883_v0 = vadd.f32 %v3559_v21, %v882_v47 }
 0x2d6   :  { %v1038_v42 = vsel %vm1037_vm8, %v1030_v38, %v1029_v46  ;;  %v953_v57 = vrot.slane %v952_v45, 1  ;;  %v963_v34 = vrot.slane %v962_v36, 4  ;;  %v885_v60 = vpop.f32.mrb[15].mxu1  ;;  %v894_v20 = vadd.f32 %v2518_v55, %v3559_v21 }
 0x2d7   :  { %v961_v62 = vmax.f32 %v959_v40, %v960_v48  ;;  %v971_v63 = vmax.f32 %v969_v41, %v970_v53  ;;  %v886_v2 = vadd.f32 %v3559_v21, %v885_v60  ;;  %v911_v11 = vmax.f32 %v891_v58, 0.0 }
 0x2d8   :  { %v954_v8 = vmax.f32 %v952_v45, %v953_v57  ;;  %v964_v1 = vmax.f32 %v962_v36, %v963_v34  ;;  %v912_v35 = vmax.f32 %v894_v20, 0.0  ;;  %v909_v5 = vmax.f32 %v883_v0, 0.0 }
 0x2d9   :  { %v993_v39 = vpack.c.bf16 %v961_v62, %v961_v62  ;;  %v972_v49 = vrot.slane %v971_v63, 2  ;;  %v910_v28 = vmax.f32 %v886_v2, 0.0 }
 0x2da   :  { %v992_v22 = vpack.c.bf16 %v954_v8, %v954_v8  ;;  %v965_v44 = vrot.slane %v964_v1, 2  ;;  %v933_v13 = vsel %vm917_vm7, %v912_v35, 0.0 }
 0x2db   :  { %v973_v16 = vmax.f32 %v971_v63, %v972_v49  ;;  %v2557_v21 = vpop.f32.mrb[32].mxu0  ;;  %v983_v17 = vmax.f32 %v911_v11, %v933_v13  ;;  %v931_v15 = vsel %vm917_vm7, %v910_v28, 0.0  ;;  %v1032_v61 = vunpack.c.l.b16 %v993_v39 }
 0x2dc   :  { %v1031_v14 = vunpack.c.l.b16 %v992_v22  ;;  %v966_v4 = vmax.f32 %v964_v1, %v965_v44  ;;  %v1482_v7 = vpop.f32.mrb[33].mxu0  ;;  %v976_v52 = vmax.f32 %v909_v5, %v931_v15  ;;  %v1491_v25 = vadd.f32 %v2557_v21, %v3597_v12 }
 0x2dd   :  { %v974_v24 = vrot.slane %v973_v16, 1  ;;  %v2558_v26 = vpop.f32.mrb[34].mxu0  ;;  %v984_v27 = vrot.slane %v983_v17, 4  ;;  %v1483_v32 = vadd.f32 %v3597_v12, %v1482_v7 }
 0x2de   :  { %v1040_v18 = vsel %vm1039_vm9, %v1031_v14, %v1038_v42  ;;  %v967_v19 = vrot.slane %v966_v4, 1  ;;  %v1494_v50 = vadd.f32 %v2558_v26, %v3597_v12  ;;  %v1485_v56 = vpop.f32.mrb[35].mxu0  ;;  %v977_v9 = vrot.slane %v976_v52, 4 }
 0x2df   :  { %v975_v59 = vmax.f32 %v973_v16, %v974_v24  ;;  %v1042_v30 = vsel %vm1041_vm10, %v1032_v61, %v1040_v18  ;;  %v985_v3 = vmax.f32 %v983_v17, %v984_v27  ;;  %v1547_v6 = vmax.f32 %v1491_v25, 0.0 }
 0x2e0   :  { %v968_v23 = vmax.f32 %v966_v4, %v967_v19  ;;  %v1548_v33 = vmax.f32 %v1494_v50, 0.0  ;;  %v978_v37 = vmax.f32 %v976_v52, %v977_v9  ;;  %v1486_v38 = vadd.f32 %v3597_v12, %v1485_v56 }
 0x2e1   :  { %v995_v51 = vpack.c.bf16 %v975_v59, %v975_v59  ;;  %v986_v41 = vrot.slane %v985_v3, 2  ;;  %v1545_v53 = vmax.f32 %v1483_v32, 0.0 }
 0x2e2   :  { %v994_v40 = vpack.c.bf16 %v968_v23, %v968_v23  ;;  %v1564_v43 = vsel %vm917_vm7, %v1548_v33, 0.0  ;;  %v979_v54 = vrot.slane %v978_v37, 2  ;;  %v1546_v45 = vmax.f32 %v1486_v38, 0.0 }
 0x2e3   :  { %v1584_v46 = vmax.f32 %v1547_v6, %v1564_v43  ;;  %v2561_v36 = vpop.f32.mrb[36].mxu0  ;;  %v987_v48 = vmax.f32 %v985_v3, %v986_v41  ;;  %v1034_v42 = vunpack.c.l.b16 %v995_v51 }
 0x2e4   :  { %v1033_v47 = vunpack.c.l.b16 %v994_v40  ;;  %v1498_v55 = vpop.f32.mrb[37].mxu0  ;;  %v980_v57 = vmax.f32 %v978_v37, %v979_v54  ;;  %v1562_v58 = vsel %vm917_vm7, %v1546_v45, 0.0  ;;  %v1507_v20 = vadd.f32 %v2561_v36, %v3597_v12 }
 0x2e5   :  { %v1585_v34 = vrot.slane %v1584_v46, 4  ;;  %v2562_v60 = vpop.f32.mrb[38].mxu0  ;;  %v988_v63 = vrot.slane %v987_v48, 1  ;;  %v1577_v0 = vmax.f32 %v1545_v53, %v1562_v58  ;;  %v1499_v39 = vadd.f32 %v3597_v12, %v1498_v55 }
 0x2e6   :  { %v1044_v62 = vsel %vm1043_vm11, %v1033_v47, %v1042_v30  ;;  %v1501_v8 = vpop.f32.mrb[39].mxu0  ;;  %v981_v1 = vrot.slane %v980_v57, 1  ;;  %v1510_v49 = vadd.f32 %v2562_v60, %v3597_v12  ;;  %v1551_v14 = vmax.f32 %v1507_v20, 0.0 }
 0x2e7   :  { %v1586_v2 = vmax.f32 %v1584_v46, %v1585_v34  ;;  %v989_v35 = vmax.f32 %v987_v48, %v988_v63  ;;  %v1578_v22 = vrot.slane %v1577_v0, 4  ;;  %v1502_v44 = vadd.f32 %v3597_v12, %v1501_v8  ;;  %v2792_v63 = vld [vmem:[%s3812_s9] sm:$0xff]  }
 0x2e8   :  { %v1046_v11 = vsel %vm1045_vm12, %v1034_v42, %v1044_v62  ;;  %v982_v28 = vmax.f32 %v980_v57, %v981_v1  ;;  %v1552_v5 = vmax.f32 %v1510_v49, 0.0  ;;  %v1549_v7 = vmax.f32 %v1499_v39, 0.0 }
 0x2e9   :  { %v1587_v16 = vrot.slane %v1586_v2, 2  ;;  %v997_v13 = vpack.c.bf16 %v989_v35, %v989_v35  ;;  %v1579_v21 = vmax.f32 %v1577_v0, %v1578_v22  ;;  %v1550_v4 = vmax.f32 %v1502_v44, 0.0 }
 0x2ea   :  { %v996_v17 = vpack.c.bf16 %v982_v28, %v982_v28  ;;  %v1568_v61 = vsel %vm917_vm7, %v1552_v5, 0.0 }
 0x2eb   :  { %v1588_v15 = vmax.f32 %v1586_v2, %v1587_v16  ;;  %v2565_v24 = vpop.f32.mrb[40].mxu0  ;;  %v1036_v52 = vunpack.c.l.b16 %v997_v13  ;;  %v1580_v25 = vrot.slane %v1579_v21, 2  ;;  %v1598_v26 = vmax.f32 %v1551_v14, %v1568_v61 }
 0x2ec   :  { %v1566_v18 = vsel %vm917_vm7, %v1550_v4, 0.0  ;;  %v1514_v19 = vpop.f32.mrb[41].mxu0  ;;  %v1035_v27 = vunpack.c.l.b16 %v996_v17  ;;  %v1523_v59 = vadd.f32 %v2565_v24, %v3597_v12  ;;  %v2793_v4 = vld [vmem:[%s3812_s9 + $0x8] sm:$0xff]  }
 0x2ed   :  { %v1589_v50 = vrot.slane %v1588_v15, 1  ;;  %v1591_v56 = vmax.f32 %v1549_v7, %v1566_v18  ;;  %v2566_v30 = vpop.f32.mrb[42].mxu0  ;;  %v1581_v9 = vmax.f32 %v1579_v21, %v1580_v25  ;;  %v1599_v23 = vrot.slane %v1598_v26, 4 }
 0x2ee   :  { %v1515_v3 = vadd.f32 %v3597_v12, %v1514_v19  ;;  %v1526_v32 = vadd.f32 %v2566_v30, %v3597_v12  ;;  %v1517_v33 = vpop.f32.mrb[43].mxu0  ;;  %v1555_v6 = vmax.f32 %v1523_v59, 0.0  ;;  %v1048_v47 = vsel %vm1047_vm13, %v1035_v27, %v1046_v11 }
 0x2ef   :  { %v1590_v51 = vmax.f32 %v1588_v15, %v1589_v50  ;;  %v1592_v37 = vrot.slane %v1591_v56, 4  ;;  %v1518_v38 = vadd.f32 %v3597_v12, %v1517_v33  ;;  %v1582_v40 = vrot.slane %v1581_v9, 1 }
 0x2f0   :  { %v1600_v41 = vmax.f32 %v1598_v26, %v1599_v23  ;;  %v1553_v43 = vmax.f32 %v1515_v3, 0.0  ;;  %v1556_v54 = vmax.f32 %v1526_v32, 0.0  ;;  %v1050_v42 = vsel %vm1049_vm14, %v1036_v52, %v1048_v47 }
 0x2f1   :  { %v1634_v46 = vpack.c.bf16 %v1590_v51, %v1590_v51  ;;  %v1593_v45 = vmax.f32 %v1591_v56, %v1592_v37  ;;  %v1554_v36 = vmax.f32 %v1518_v38, 0.0  ;;  %v1583_v48 = vmax.f32 %v1581_v9, %v1582_v40  ;;  %v2794_v9 = vld [vmem:[%s3812_s9 + $0x10] sm:$0xff]  }
 0x2f2   :  { %v1601_v53 = vrot.slane %v1600_v41, 2  ;;  %v1572_v55 = vsel %vm917_vm7, %v1556_v54, 0.0  ;;  %v1051_v1 = vpack.c.b16 %v1050_v42, %v1050_v42  ;;  %v2795_v54 = vld [vmem:[%s3812_s9 + $0x18] sm:$0xff]   ;;  %v2796_v42 = vld [vmem:[%s3812_s9 + $0x20] sm:$0xff]  }
 0x2f3   :  { %v1673_v57 = vunpack.c.l.b16 %v1634_v46  ;;  %v1594_v34 = vrot.slane %v1593_v45, 2  ;;  %v1612_v58 = vmax.f32 %v1555_v6, %v1572_v55  ;;  %v1570_v60 = vsel %vm917_vm7, %v1554_v36, 0.0  ;;  %v2569_v62 = vpop.f32.mrb[44].mxu0 }
 0x2f4   :  { %v1633_v0 = vpack.c.bf16 %v1583_v48, %v1583_v48  ;;  %v1602_v20 = vmax.f32 %v1600_v41, %v1601_v53  ;;  %v1605_v8 = vmax.f32 %v1553_v43, %v1570_v60  ;;  %v1530_v2 = vpop.f32.mrb[45].mxu0  ;;  %v1539_v35 = vadd.f32 %v2569_v62, %v3597_v12  ;;  %2536 = vmatmul.mubr.bf16.vlgmr.msra.gmra.mrb[16].mxu1 %v1051_v1 }
 0x2f5   :  { %v1595_v39 = vmax.f32 %v1593_v45, %v1594_v34  ;;  %v1613_v49 = vrot.slane %v1612_v58, 4  ;;  %v2570_v22 = vpop.f32.mrb[46].mxu0  ;;  %2572 = vmatpush3.bf16.msra.mxu1 %v2792_v63  ;;  %v1531_v14 = vadd.f32 %v3597_v12, %v1530_v2  ;;  %2587 = vmatprep.mubr.msk.bf16.mxu1 %vm2861_vm6, %v2860_v29 }
 0x2f6   :  { %v1672_v44 = vunpack.c.l.b16 %v1633_v0  ;;  %v1603_v11 = vrot.slane %v1602_v20, 1  ;;  %v1606_v28 = vrot.slane %v1605_v8, 4  ;;  %v1542_v16 = vadd.f32 %v2570_v22, %v3597_v12  ;;  %v1533_v5 = vpop.f32.mrb[47].mxu0  ;;  %2573 = vmatprep.subr.bf16.mxu1 %v2860_v29 }
 0x2f7   :  { %v1596_v13 = vrot.slane %v1595_v39, 1  ;;  %v1614_v21 = vmax.f32 %v1612_v58, %v1613_v49  ;;  %v1559_v25 = vmax.f32 %v1539_v35, 0.0  ;;  %v1534_v26 = vadd.f32 %v3597_v12, %v1533_v5  ;;  %v2798_v49 = vld [vmem:[%s3812_s9 + $0x30] sm:$0xff]  }
 0x2f8   :  { %v1680_v17 = vsel %vm1037_vm8, %v1673_v57, %v1672_v44  ;;  %v1604_v15 = vmax.f32 %v1602_v20, %v1603_v11  ;;  %v1607_v7 = vmax.f32 %v1605_v8, %v1606_v28  ;;  %v1560_v61 = vmax.f32 %v1542_v16, 0.0  ;;  %v2797_v20 = vld [vmem:[%s3812_s9 + $0x28] sm:$0xff]   ;;  %v2799_v11 = vld [vmem:[%s3812_s9 + $0x38] sm:$0xff]  }
 0x2f9   :  { %v1597_v24 = vmax.f32 %v1595_v39, %v1596_v13  ;;  %v1615_v52 = vrot.slane %v1614_v21, 2  ;;  %v1558_v30 = vmax.f32 %v1534_v26, 0.0  ;;  %2574 = vmatpush3.bf16.msra.mxu1 %v2793_v4  ;;  %v1557_v3 = vmax.f32 %v1531_v14, 0.0  ;;  %v2800_v13 = vld [vmem:[%s3814_s11 + $0x40] sm:$0xff]   ;;  %v2812_v26 = vld [vmem:[%s3815_s12 + $0x10] sm:$0xff]  }
 0x2fa   :  { %v1636_v18 = vpack.c.bf16 %v1604_v15, %v1604_v15  ;;  %v1608_v19 = vrot.slane %v1607_v7, 2  ;;  %v1576_v27 = vsel %vm917_vm7, %v1560_v61, 0.0  ;;  %2575 = vmatprep.subr.bf16.mxu1 %v2860_v29  ;;  %v2802_v14 = vld [vmem:[%s3815_s12 + $0x40] sm:$0xff]   ;;  %2395 = vmatprep.subr.bf16.mxu0 %v2800_v13  ;;  %v2805_v15 = vld [vmem:[%s3814_s11 + $0x8] sm:$0xff]  }
 0x2fb   :  { %v1635_v50 = vpack.c.bf16 %v1597_v24, %v1597_v24  ;;  %v1616_v56 = vmax.f32 %v1614_v21, %v1615_v52  ;;  %v1626_v59 = vmax.f32 %v1559_v25, %v1576_v27  ;;  %v1574_v51 = vsel %vm917_vm7, %v1558_v30, 0.0  ;;  %v2801_v21 = vld [vmem:[%s3814_s11] sm:$0xff]   ;;  %v2808_v61 = vld [vmem:[%s3815_s12 + $0x8] sm:$0xff]   ;;  %v2810_v24 = vld [vmem:[%s3815_s12 + $0x50] sm:$0xff]  }
 0x2fc   :  { %v1609_v23 = vmax.f32 %v1607_v7, %v1608_v19  ;;  %v1675_v37 = vunpack.c.l.b16 %v1636_v18  ;;  %v1619_v38 = vmax.f32 %v1557_v3, %v1574_v51  ;;  %v2804_v4 = vld [vmem:[%s3815_s12] sm:$0xff]   ;;  %2396 = vmatpush3.bf16.msra.mxu0 %v2801_v21  ;;  %v2807_v7 = vld [vmem:[%s3814_s11 + $0x50] sm:$0xff]   ;;  %v2811_v25 = vld [vmem:[%s3814_s11 + $0x58] sm:$0xff]  }
 0x2fd   :  { %v1674_v32 = vunpack.c.l.b16 %v1635_v50  ;;  %v1617_v12 = vrot.slane %v1616_v56, 1  ;;  %v1627_v33 = vrot.slane %v1626_v59, 4  ;;  %2576 = vmatpush3.bf16.msra.mxu1 %v2794_v9  ;;  %v2809_v52 = vld [vmem:[%s3814_s11 + $0x10] sm:$0xff]   ;;  %v2814_v18 = vld [vmem:[%s3815_s12 + $0x58] sm:$0xff]   ;;  %v2815_v27 = vld [vmem:[%s3814_s11 + $0x60] sm:$0xff]  }
 0x2fe   :  { %v1610_v6 = vrot.slane %v1609_v23, 1  ;;  %v1620_v45 = vrot.slane %v1619_v38, 4  ;;  %2577 = vmatprep.subr.bf16.mxu1 %v2860_v29  ;;  %v2813_v19 = vld [vmem:[%s3814_s11 + $0x18] sm:$0xff]   ;;  %v2819_v30 = vld [vmem:[%s3814_s11 + $0x68] sm:$0xff]   ;;  %v2820_v9 = vld [vmem:[%s3815_s12 + $0x20] sm:$0xff]  }
 0x2ff   :  { %v1681_v40 = vsel %vm1039_vm9, %v1674_v32, %v1680_v17  ;;  %v1618_v41 = vmax.f32 %v1616_v56, %v1617_v12  ;;  %v1628_v43 = vmax.f32 %v1626_v59, %v1627_v33  ;;  %v2806_v17 = vld [vmem:[%s3815_s12 + $0x48] sm:$0xff]   ;;  %v2816_v50 = vld [vmem:[%s3815_s12 + $0x18] sm:$0xff]   ;;  %v2818_v56 = vld [vmem:[%s3815_s12 + $0x60] sm:$0xff]  }
 0x300   :  { %v1611_v46 = vmax.f32 %v1609_v23, %v1610_v6  ;;  %v1682_v36 = vsel %vm1041_vm10, %v1675_v37, %v1681_v40  ;;  %v1621_v53 = vmax.f32 %v1619_v38, %v1620_v45  ;;  %v2817_v59 = vld [vmem:[%s3814_s11 + $0x20] sm:$0xff]   ;;  %v2822_v23 = vld [vmem:[%s3815_s12 + $0x68] sm:$0xff]   ;;  %v2823_v32 = vld [vmem:[%s3814_s11 + $0x70] sm:$0xff]  }
 0x301   :  { %v1638_v10 = vpack.c.bf16 %v1618_v41, %v1618_v41  ;;  %v1629_v47 = vrot.slane %v1628_v43, 2  ;;  %2578 = vmatpush3.bf16.msra.mxu1 %v2795_v54  ;;  %v2821_v3 = vld [vmem:[%s3814_s11 + $0x28] sm:$0xff]   ;;  %v2825_v33 = vld [vmem:[%s3814_s11 + $0x30] sm:$0xff]   ;;  %v2827_v6 = vld [vmem:[%s3814_s11 + $0x78] sm:$0xff]  }
 0x302   :  { %v1637_v48 = vpack.c.bf16 %v1611_v46, %v1611_v46  ;;  %v1622_v34 = vrot.slane %v1621_v53, 2  ;;  %2579 = vmatprep.subr.bf16.mxu1 %v2860_v29  ;;  %v2824_v12 = vld [vmem:[%s3815_s12 + $0x28] sm:$0xff]   ;;  %v2826_v51 = vld [vmem:[%s3815_s12 + $0x70] sm:$0xff]   ;;  %v2829_v38 = vld [vmem:[%s3814_s11 + $0x38] sm:$0xff]  }
 0x303   :  { %v1630_v55 = vmax.f32 %v1628_v43, %v1629_v47  ;;  %v1677_v58 = vunpack.c.l.b16 %v1638_v10  ;;  %v2828_v37 = vld [vmem:[%s3815_s12 + $0x30] sm:$0xff]   ;;  %v2830_v40 = vld [vmem:[%s3815_s12 + $0x78] sm:$0xff]   ;;  %v2133_v10 = vsub.s32 0, %v3554_v31  ;;  %v2137_v47 = vsub.s32 1, %v3554_v31 }
 0x304   :  { %v1676_v57 = vunpack.c.l.b16 %v1637_v48  ;;  %v1623_v62 = vmax.f32 %v1621_v53, %v1622_v34  ;;  %v2831_v41 = vld [vmem:[%s3815_s12 + $0x38] sm:$0xff]   ;;  %v2129_v48 = vld [vmem:[%s3816_s13] sm:$0x3]  ;;  %s2862_s13 = smov [#allocation3]  }
 0x305   :  { %v1631_v60 = vrot.slane %v1630_v55, 1  ;;  %2580 = vmatpush3.bf16.msra.mxu1 %v2796_v42  ;;  %v2134_v42 = vrot.slane %v2129_v48, %v2133_v10  ;;  %s2157_s22 = sshll.u32 %s2862_s13, 4  ;;  %s2158_s22 = int_to_ptr.vmem [resolvable:$true] %s2157_s22 }
 0x306   :  { %v1683_v63 = vsel %vm1043_vm11, %v1676_v57, %v1682_v36  ;;  %v1624_v1 = vrot.slane %v1623_v62, 1  ;;  %2581 = vmatprep.subr.bf16.mxu1 %v2860_v29  ;;  %v2238_v36 = vld [vmem:[%s3809_s6] ss:$0 sm:$0xff]  ;;  %v2138_v57 = vrot.slane %v2129_v48, %v2137_v47  ;;  %s2832_s23 = scalar_lea.vmem %s2158_s22, 128  ;;  %p2837_p1 = scmp.lt.s32.totalorder %s2158_s22, %s2158_s22 }
 0x307   :  { %v1632_v0 = vmax.f32 %v1630_v55, %v1631_v60  ;;  %v1684_v8 = vsel %vm1045_vm12, %v1677_v58, %v1683_v63  ;;  %v2280_v55 = vld [vmem:[%s3813_s10] ss:$0 sm:$0xff]  ;;  %p2833_p0 = scmp.ne.s32.totalorder %s2158_s22, %s2832_s23  ;;  %p2838_p2 = scmp.lt.s32.totalorder %s2832_s23, %s2832_s23 }
 0x308   :  { %v1625_v2 = vmax.f32 %v1623_v62, %v1624_v1 }
 0x309   :  { %v1640_v39 = vpack.c.bf16 %v1632_v0, %v1632_v0  ;;  %2582 = vmatpush3.bf16.msra.mxu1 %v2797_v20  ;;  %p2839_p3 = por %p2838_p2, %p2837_p1 }
 0x30a   :  { %v1639_v35 = vpack.c.bf16 %v1625_v2, %v1625_v2  ;;  %2583 = vmatprep.subr.bf16.mxu1 %v2860_v29 }
 0x30b   :  { %v1679_v44 = vunpack.c.l.b16 %v1640_v39  ;;  %p2840_p4 = pnand %p2839_p3, %p2833_p0 }
 0x30c   :  { %v1678_v22 = vunpack.c.l.b16 %v1639_v35 }
 0x30d   :  { %2584 = vmatpush3.bf16.msra.mxu1 %v2798_v49 }
 0x30e   :  { %2585 = vmatprep.subr.bf16.mxu1 %v2860_v29  ;;  %v1685_v28 = vsel %vm1047_vm13, %v1678_v22, %v1684_v8  ;;  %v2803_v29 = vld [vmem:[%s3814_s11 + $0x48] sm:$0xff]  }
 0x30f   :  { %v1686_v16 = vsel %vm1049_vm14, %v1679_v44, %v1685_v28  ;;  %2397 = vmatprep.subr.bf16.mxu0 %v2803_v29 }
 0x310   :  { %v1687_v5 = vpack.c.b16 %v1686_v16, %v1686_v16  ;;  %2398 = vmatpush3.bf16.msra.mxu0 %v2805_v15 }
 0x311   :  { %2586 = vmatpush3.bf16.msra.mxu1 %v2799_v11  ;;  %2399 = vmatprep.subr.bf16.mxu0 %v2807_v7 }
 0x312   :  { %2417 = vmatprep.subr.bf16.mxu1 %v2802_v14 }
 0x314   :  { %2588 = vmatmul.mubr.bf16.vlgmr.msra.gmra.mrb[20].mxu1 %v1687_v5  ;;  %2400 = vmatpush3.bf16.msra.mxu0 %v2809_v52  ;;  %v2147_v52 = vstv %s3817_s14 }
 0x315   :  { %2418 = vmatpush3.bf16.msra.mxu1 %v2804_v4  ;;  %2401 = vmatprep.subr.bf16.mxu0 %v2811_v25 }
 0x316   :  { %2419 = vmatprep.subr.bf16.mxu1 %v2806_v17 }
 0x318   :  { %2402 = vmatpush3.bf16.msra.mxu0 %v2813_v19 }
 0x319   :  { %2420 = vmatpush3.bf16.msra.mxu1 %v2808_v61  ;;  %2403 = vmatprep.subr.bf16.mxu0 %v2815_v27 }
 0x31a   :  { %2421 = vmatprep.subr.bf16.mxu1 %v2810_v24 }
 0x31c   :  { %2404 = vmatpush3.bf16.msra.mxu0 %v2817_v59 }
 0x31d   :  { %2422 = vmatpush3.bf16.msra.mxu1 %v2812_v26  ;;  %2405 = vmatprep.subr.bf16.mxu0 %v2819_v30 }
 0x31e   :  { %2423 = vmatprep.subr.bf16.mxu1 %v2814_v18 }
 0x320   :  { %2406 = vmatpush3.bf16.msra.mxu0 %v2821_v3 }
 0x321   :  { %2424 = vmatpush3.bf16.msra.mxu1 %v2816_v50  ;;  %2407 = vmatprep.subr.bf16.mxu0 %v2823_v32 }
 0x322   :  { %2425 = vmatprep.subr.bf16.mxu1 %v2818_v56 }
 0x324   :  { %2408 = vmatpush3.bf16.msra.mxu0 %v2825_v33 }
 0x325   :  { %2426 = vmatpush3.bf16.msra.mxu1 %v2820_v9  ;;  %2409 = vmatprep.subr.bf16.mxu0 %v2827_v6 }
 0x326   :  { %2427 = vmatprep.subr.bf16.mxu1 %v2822_v23 }
 0x328   :  { %2410 = vmatpush3.bf16.msra.mxu0 %v2829_v38 }
 0x329   :  { %2428 = vmatpush3.bf16.msra.mxu1 %v2824_v12 }
 0x32a   :  { %2429 = vmatprep.subr.bf16.mxu1 %v2826_v51 }
 0x32d   :  { %2430 = vmatpush3.bf16.msra.mxu1 %v2828_v37 }
 0x32e   :  { %2431 = vmatprep.subr.bf16.mxu1 %v2830_v40 }
 0x331   :  { %2432 = vmatpush3.bf16.msra.mxu1 %v2831_v41 }
 0x3c7   :  { %v1135_v43 = vpop.f32.mrb[16].mxu1 }
 0x3c8   :  { %v2537_v54 = vpop.f32.mrb[17].mxu1  ;;  %v1136_v53 = vadd.f32 %v2238_v36, %v1135_v43 }
 0x3c9   :  { %v1138_v46 = vpop.f32.mrb[18].mxu1 }
 0x3ca   :  { %v2538_v45 = vpop.f32.mrb[19].mxu1  ;;  %v1779_v62 = vmul.f32 %v1136_v53, %v1136_v53  ;;  %v2141_v31 = vmul.f32 %v2134_v42, %v1136_v53  ;;  %v1777_v2 = vpack.c.bf16 %v1136_v53, %v1136_v53 }
 0x3cc   :  { %v1781_v35 = vpack.c.bf16 %v1779_v62, %v1779_v62 }
 0x3e7   :  { %v1771_v34 = vpop.f32.mrb[20].mxu1 }
 0x3e8   :  { %v1772_v58 = vadd.f32 %v2280_v55, %v1771_v34  ;;  %v2589_v60 = vpop.f32.mrb[21].mxu1 }
 0x3e9   :  { %v1774_v63 = vpop.f32.mrb[22].mxu1 }
 0x3ea   :  { %v2590_v0 = vpop.f32.mrb[23].mxu1  ;;  %v1778_v20 = vpack.c.bf16 %v1772_v58, %v1772_v58  ;;  %v1780_v8 = vmul.f32 %v1772_v58, %v1772_v58  ;;  %v2142_v1 = vmul.f32 %v2138_v57, %v1772_v58 }
 0x3ec   :  { %1943 = vmatprep.mubr.bf16.mxu0 %v1778_v20  ;;  %v1782_v39 = vpack.c.bf16 %v1780_v8, %v1780_v8  ;;  %v2143_v49 = vadd.f32 %v2142_v1, %v2141_v31 }
 0x3ed   :  { %1944 = vmatmul.mubr.bf16.vlgmr.msra.gmra.mrb[48].mxu0 %v1777_v2 }
 0x3ee   :  { %2111 = vmatprep.mubr.bf16.mxu1 %v1782_v39 }
 0x3ef   :  { %2112 = vmatmul.mubr.bf16.vlgmr.msra.gmra.mrb[24].mxu1 %v1781_v35 }
 0x4c0   :  { %v2411_v22 = vpop.f32.mrb[48].mxu0 }
 0x4c1   :  { %v2412_v44 = vpop.f32.mrb[49].mxu0 }
 0x4c2   :  { %v2413_v11 = vadd.f32 %v2412_v44, %v2411_v22  ;;  %v2414_v28 = vpop.f32.mrb[50].mxu0  ;;  %v2433_v16 = vpop.f32.mrb[24].mxu1 }
 0x4c3   :  { %v2415_v5 = vpop.f32.mrb[51].mxu0  ;;  %v2434_v13 = vpop.f32.mrb[25].mxu1 }
 0x4c4   :  { %v2119_v21 = vmul.f32 %v2413_v11, %v2413_v11  ;;  %v2435_v14 = vadd.f32 %v2434_v13, %v2433_v16  ;;  %v2436_v29 = vpop.f32.mrb[26].mxu1 }
 0x4c5   :  { %v2437_v4 = vpop.f32.mrb[27].mxu1 }
 0x4c6   :  { %v2121_v17 = vsel %vm2120_vm15, %v2119_v21, 0.0  ;;  %v2124_v15 = vsel %vm2120_vm15, %v2435_v14, 0.0 }
 0x4c7   :  { %2122 = vadd.xlane.f32.xlu0 %v2121_v17  ;;  %2125 = vadd.xlane.f32.xlu1 %v2124_v15 }
 0x4cb   :  { %2144 = vadd.xlane.f32.xlu0 %v2143_v49 }
 0x554   :  { %v2123_v7 = vpop.xlane.xlu0 %2122  ;;  %v2126_v61 = vpop.xlane.xlu1 %2125 }
 0x555   :  { %v2127_v24 = vsub.f32 %v2123_v7, %v2126_v61 }
 0x557   :  { %v2128_v25 = vmul.f32 0.5, %v2127_v24 }
 0x558   :  { %v2145_v18 = vpop.xlane.xlu0 %2144 }
 0x559   :  { %v2148_v26 = vadd.f32 %v2147_v52, %v2128_v25 }
 0x55b   :  { %v2149_v19 = vadd.f32 %v2148_v26, %v2145_v18 }
 0x55d   :  { %2150 = vst [vmem:[#allocation3] sm:$0xff] %v2149_v19 }
 0x55e   :  { %2843 = shalt.err (!%p2840_p4)
}
 0x55f   :  { %s2844_s25 = scalar_lea.hbm %s3818_s15, 128 }
 0x560   :  { %p2845_p5 = scmp.ne.s32.totalorder %s3818_s15, %s2844_s25  ;;  %p2848_p6 = scmp.lt.u32.totalorder %s2844_s25, %s3818_s15 }
 0x562   :  { %p2850_p7 = pnand %p2848_p6, %p2845_p5 }
 0x564   :  { %2853 = shalt.err (!%p2850_p7)
}
 0x565   :  { %2160 = dma.vmem_to_hbm [thread:$0]  %s2158_s22, 128, %s3818_s15, [#allocation4]  }
 0x566   :  { %2854 = dma.done.wait [#allocation4], 128  }
 0x567   :  { %2855 = vsyncadd [#allocation4], 4294967168 }
 0x568   :  { %2164 = vsyncpa [#allocation4], 1 }

</bundles_post_ra>
